<compile_context>
chip_gen: v7x
topology: tpu7x:2x2x1
jax: 0.10.0
libtpu: 0.0.40
codegen_flags: <defaults>
</compile_context>

<pallas_src>
import functools

import numpy as np
import jax
import jax.numpy as jnp
from jax.experimental import pallas as pl
from jax.experimental.pallas import tpu as pltpu

_HIGHEST = jax.lax.Precision.HIGHEST


def _up_block_kernel(x_ref, mb_ref, ec_ref, er_ref, m2_ref, beff_ref, o_ref,
                     *, H, W, Cin, Cout, images_per_step):
    """One grid step processes `images_per_step` images.

    x_ref    : (B, H+2, Cin*W)          channel-packed input, zero rows top/bottom
    mb_ref   : (2, 2, Cin*W, 2*Cin*W)   transposed-conv mixing matrices, indexed [p, a]
    ec_ref   : (2*Cin*W, Cin*(Wo+2))    column un-interleave + reflect-pad 0/1 selector
    er_ref   : (2, Ho+2, H)             row    un-interleave + reflect-pad 0/1 selector
    m2_ref   : (3, Cin*(Wo+2), Cout*Wo) 3x3-conv (+ BN scale) mixing matrices, [dy]
    beff_ref : (1, Cout*Wo)             fully folded bias row
    o_ref    : (B, Ho, Cout*Wo)         lane-dense output slab
    """
    f32 = jnp.float32
    Ho, Wo = 2 * H, 2 * W

    def mm(a, b):
        return jnp.dot(a, b, precision=_HIGHEST, preferred_element_type=f32)

    for i in range(images_per_step):
        xi = x_ref[i]                                    # (H+2, Cin*W), one load
        # three deduplicated row-shifted views of the zero-row-padded input
        xs = [xi[r0:r0 + H, :] for r0 in range(3)]       # each (H, Cin*W)

        # ---- transposed conv -> phase maps -> reflect-padded upsampled map ----------
        # V_p packs both column phases (q=0,1) and all Cin channels on the lane axis.
        upad = jnp.zeros((Ho + 2, Cin * (Wo + 2)), f32)
        for p in range(2):
            v = mm(xs[p], mb_ref[p, 0]) + mm(xs[p + 1], mb_ref[p, 1])   # (H, 2*Cin*W)
            rows_p = mm(v, ec_ref[...])                  # (H, Cin*(Wo+2))
            upad = upad + mm(er_ref[p], rows_p)          # (Ho+2, Cin*(Wo+2))

        # ---- 3x3 reflect conv + folded BatchNorm affine + ReLU6 ---------------------
        acc = jnp.zeros((Ho, Cout * Wo), f32)
        for dy in range(3):
            acc = acc + mm(upad[dy:dy + Ho, :], m2_ref[dy])
        o_ref[i] = jnp.clip(acc + beff_ref[...], 0.0, 6.0)


def up_block(x_nchw, consts, *, images_per_step=1):
    """x_nchw: (N, Cin, H, W) f32.  Returns (N, Cout, 2H, 2W) f32 (eval-mode Up_block)."""
    N, Cin, H, W = x_nchw.shape
    Cout = consts["beff"].shape[-1] // (2 * W)
    Ho, Wo = 2 * H, 2 * W
    assert N % images_per_step == 0
    B = images_per_step

    # Channel-packed, zero-row-padded input slab.  Tiny wrapper-side transform (few KB,
    # one fused XLA op); it removes all in-kernel padding / halo stores / relayouts.
    xpk = jnp.pad(jnp.transpose(x_nchw, (0, 2, 1, 3)).reshape(N, H, Cin * W),
                  ((0, 0), (1, 1), (0, 0)))

    kern = functools.partial(_up_block_kernel, H=H, W=W, Cin=Cin, Cout=Cout,
                             images_per_step=B)

    def const_spec(arr):  # grid-resident constant: same block every step -> one DMA
        nd = arr.ndim
        return pl.BlockSpec(arr.shape, lambda g, _nd=nd: (0,) * _nd)

    out = pl.pallas_call(
        kern,
        out_shape=jax.ShapeDtypeStruct((N, Ho, Cout * Wo), jnp.float32),
        grid_spec=pltpu.PrefetchScalarGridSpec(
            num_scalar_prefetch=0,
            grid=(N // B,),
            in_specs=[
                pl.BlockSpec((B, H + 2, Cin * W), lambda g: (g, 0, 0)),
                const_spec(consts["mb"]),
                const_spec(consts["ec"]),
                const_spec(consts["er"]),
                const_spec(consts["m2"]),
                const_spec(consts["beff"]),
            ],
            out_specs=pl.BlockSpec((B, Ho, Cout * Wo), lambda g: (g, 0, 0)),
        ),
        # "parallel" batch grid: with N=2, images_per_step=1 both v7x TCs get one step.
        # On single-TC v5e/v6e, raise images_per_step instead (amortizes step overhead).
        compiler_params=pltpu.CompilerParams(dimension_semantics=("parallel",)),
    )(xpk, consts["mb"], consts["ec"], consts["er"], consts["m2"], consts["beff"])

    # The kernel's natural output is the lane-dense (N, Ho, Cout*Wo) slab; convert back
    # to NCHW only because the PyTorch spec returns NCHW (skip if the consumer can take
    # the packed / NHWC layout).
    out = out.reshape(N, Ho, Cout, Wo)
    return jnp.transpose(out, (0, 2, 1, 3))


def build_up_block_consts(params, H, W, eps=1e-5):
    """Fold all Up_block weights into the dense mixing matrices used by the kernel.

    Built once on the host (numpy), reused for every forward call.
    """
    wt = np.asarray(params["wt"], np.float32)     # (Cin, Cin, 4, 4) ConvTranspose2d
    bt = np.asarray(params["bt"], np.float32)     # (Cin,)
    w2 = np.asarray(params["w2"], np.float32)     # (Cout, Cin, 3, 3) Conv2d
    cb2 = np.asarray(params["cb2"], np.float32)   # (Cout,)
    gamma = np.asarray(params["gamma"], np.float32)
    beta = np.asarray(params["beta"], np.float32)
    mean = np.asarray(params["mean"], np.float32)
    var = np.asarray(params["var"], np.float32)

    Cin, Cout = wt.shape[0], w2.shape[0]
    Ho, Wo = 2 * H, 2 * W
    LV = Cin * W                  # packed width of one column phase
    LU = Cin * (Wo + 2)           # packed width of the reflect-padded upsampled map
    LO = Cout * Wo                # packed width of the output

    # -- transposed conv:  V_p[m, q*LV + cm*W + n] = u0[cm, 2m+p, 2n+q]
    #    = sum_{a,b,ci} x[ci, m+p+a-1, n+q+b-1] * wt[ci, cm, 3-p-2a, 3-q-2b]
    mb = np.zeros((2, 2, LV, 2 * LV), np.float32)
    for p in range(2):
        for a in range(2):
            ky = 3 - p - 2 * a
            for q in range(2):
                for b in range(2):
                    kx = 3 - q - 2 * b
                    for ci in range(Cin):
                        for cm in range(Cin):
                            wv = wt[ci, cm, ky, kx]
                            for n in range(W):
                                cx = n + q + b - 1
                                if 0 <= cx < W:       # out-of-range cols are zero-pad
                                    mb[p, a, ci * W + cx, q * LV + cm * W + n] += wv

    def refl(t, size):            # reflect padding of width 1 (no edge repeat)
        if t == -1:
            return 1
        if t == size:
            return size - 2
        return t

    # -- column selector: un-interleave q-phases + reflect pad (block-diag over cm)
    ec = np.zeros((2 * LV, LU), np.float32)
    for c in range(Wo + 2):
        s = refl(c - 1, Wo)
        q, n = s % 2, s // 2
        for cm in range(Cin):
            ec[q * LV + cm * W + n, cm * (Wo + 2) + c] = 1.0

    # -- row selector: un-interleave p-phases + reflect pad
    er = np.zeros((2, Ho + 2, H), np.float32)
    for r in range(Ho + 2):
        s = refl(r - 1, Ho)
        er[s % 2, r, s // 2] = 1.0

    # -- 3x3 conv with BN scale folded in
    s2 = gamma / np.sqrt(var + eps)
    m2 = np.zeros((3, LU, LO), np.float32)
    for dy in range(3):
        for dx in range(3):
            for cm in range(Cin):
                for co in range(Cout):
                    wv = s2[co] * w2[co, cm, dy, dx]
                    for x in range(Wo):
                        m2[dy, cm * (Wo + 2) + x + dx, co * Wo + x] += wv

    # -- fully folded bias: deconv bias pushed through the 3x3 conv + conv bias + BN
    k = np.einsum("ocyx,c->o", w2, bt)
    b_eff = s2 * (k + cb2 - mean) + beta
    beff = np.repeat(b_eff, Wo)[None, :]              # (1, Cout*Wo)

    return {"mb": jnp.asarray(mb), "ec": jnp.asarray(ec), "er": jnp.asarray(er),
            "m2": jnp.asarray(m2), "beff": jnp.asarray(beff)}


def make_params(key, Cin, Cout):
    ks = jax.random.split(key, 8)
    return {
        "wt": 0.2 * jax.random.normal(ks[0], (Cin, Cin, 4, 4), jnp.float32),
        "bt": 0.05 * jax.random.normal(ks[1], (Cin,), jnp.float32),
        "w2": 0.2 * jax.random.normal(ks[2], (Cout, Cin, 3, 3), jnp.float32),
        "cb2": 0.05 * jax.random.normal(ks[3], (Cout,), jnp.float32),
        "gamma": 1.0 + 0.1 * jax.random.normal(ks[4], (Cout,), jnp.float32),
        "beta": 0.1 * jax.random.normal(ks[5], (Cout,), jnp.float32),
        "mean": 0.05 * jax.random.normal(ks[6], (Cout,), jnp.float32),
        "var": 1.0 + 0.1 * jnp.abs(jax.random.normal(ks[7], (Cout,), jnp.float32)),
    }


def ref_forward(x, p, eps=1e-5):
    """Pure-JAX reference matching PyTorch Up_block in eval mode."""
    # ConvTranspose2d(k=4, s=2, p=1) == conv of the 2x lhs-dilated input with the
    # spatially flipped kernel (in/out swapped), padding k-1-p = 2.
    w_eq = jnp.transpose(jnp.flip(p["wt"], axis=(2, 3)), (1, 0, 2, 3))
    u = jax.lax.conv_general_dilated(
        x, w_eq, window_strides=(1, 1), padding=((2, 2), (2, 2)),
        lhs_dilation=(2, 2), dimension_numbers=("NCHW", "OIHW", "NCHW"),
        precision=_HIGHEST)
    u = u + p["bt"][None, :, None, None]
    upad = jnp.pad(u, ((0, 0), (0, 0), (1, 1), (1, 1)), mode="reflect")
    y = jax.lax.conv_general_dilated(
        upad, p["w2"], (1, 1), "VALID",
        dimension_numbers=("NCHW", "OIHW", "NCHW"), precision=_HIGHEST)
    y = y + p["cb2"][None, :, None, None]
    scale = (p["gamma"] / jnp.sqrt(p["var"] + eps))[None, :, None, None]
    y = (y - p["mean"][None, :, None, None]) * scale + p["beta"][None, :, None, None]
    return jnp.clip(y, 0.0, 6.0)


if __name__ == "__main__":
    # Up_block(input_channels=4, output_channels=8) on a 2 x 4 x 16 x 16 input.
    N, Cin, H, W = 2, 4, 16, 16
    Cout = 8

    key = jax.random.PRNGKey(0)
    kx, kp = jax.random.split(key)
    x = jax.random.normal(kx, (N, Cin, H, W), jnp.float32)
    params = make_params(kp, Cin, Cout)
    consts = build_up_block_consts(params, H, W)

    fwd = jax.jit(functools.partial(up_block, images_per_step=1))
    out = jax.block_until_ready(fwd(x, consts))
    ref = jax.block_until_ready(ref_forward(x, params))

    assert out.shape == (N, Cout, 2 * H, 2 * W), out.shape
    max_err = float(jnp.max(jnp.abs(out - ref)))
    assert jnp.allclose(out, ref, atol=2e-4, rtol=2e-4), max_err

    print("KERNEL_OK")
</pallas_src>

<mosaic_0001>
module attributes {stable_mosaic.version = 11 : i64} {
  func.func @_up_block_kernel(%arg0: i32, %arg1: memref<1x18x64xf32, #tpu.memory_space<vmem>>, %arg2: memref<2x2x64x128xf32, #tpu.memory_space<vmem>>, %arg3: memref<128x136xf32, #tpu.memory_space<vmem>>, %arg4: memref<2x34x16xf32, #tpu.memory_space<vmem>>, %arg5: memref<3x136x256xf32, #tpu.memory_space<vmem>>, %arg6: memref<1x256xf32, #tpu.memory_space<vmem>>, %arg7: memref<1x32x256xf32, #tpu.memory_space<vmem>>) attributes {dimension_semantics = [#tpu.dimension_semantics<parallel>], iteration_bounds = array<i64: 2>, scalar_prefetch = 0 : i64, scratch_operands = 0 : i64, tpu.core_type = #tpu.core_type<tc>, window_params = [{transform_indices = @transform_0, window_bounds = array<i64: 1, 18, 64>}, {pipeline_mode = #tpu.pipeline_mode<synchronous>, transform_indices = @transform_1, window_bounds = array<i64: 2, 2, 64, 128>}, {pipeline_mode = #tpu.pipeline_mode<synchronous>, transform_indices = @transform_2, window_bounds = array<i64: 128, 136>}, {pipeline_mode = #tpu.pipeline_mode<synchronous>, transform_indices = @transform_3, window_bounds = array<i64: 2, 34, 16>}, {pipeline_mode = #tpu.pipeline_mode<synchronous>, transform_indices = @transform_4, window_bounds = array<i64: 3, 136, 256>}, {pipeline_mode = #tpu.pipeline_mode<synchronous>, transform_indices = @transform_5, window_bounds = array<i64: 1, 256>}, {transform_indices = @transform_6, window_bounds = array<i64: 1, 32, 256>}]} {
    %c0 = arith.constant 0 : index
    %c0_0 = arith.constant 0 : index
    %c0_1 = arith.constant 0 : index
    %0 = vector.load %arg1[%c0, %c0_0, %c0_1] : memref<1x18x64xf32, #tpu.memory_space<vmem>>, vector<1x18x64xf32>
    %1 = vector.shape_cast %0 : vector<1x18x64xf32> to vector<18x64xf32>
    %2 = vector.extract_strided_slice %1 {offsets = [0, 0], sizes = [16, 64], strides = [1, 1]} : vector<18x64xf32> to vector<16x64xf32>
    %3 = vector.extract_strided_slice %1 {offsets = [1, 0], sizes = [16, 64], strides = [1, 1]} : vector<18x64xf32> to vector<16x64xf32>
    %4 = vector.extract_strided_slice %1 {offsets = [2, 0], sizes = [16, 64], strides = [1, 1]} : vector<18x64xf32> to vector<16x64xf32>
    %cst = arith.constant 0.000000e+00 : f32
    %5 = vector.broadcast %cst : f32 to vector<34x136xf32>
    %c0_2 = arith.constant 0 : index
    %c0_3 = arith.constant 0 : index
    %c0_4 = arith.constant 0 : index
    %c0_5 = arith.constant 0 : index
    %6 = vector.load %arg2[%c0_2, %c0_3, %c0_4, %c0_5] : memref<2x2x64x128xf32, #tpu.memory_space<vmem>>, vector<1x1x64x128xf32>
    %7 = vector.shape_cast %6 : vector<1x1x64x128xf32> to vector<64x128xf32>
    %cst_6 = arith.constant dense<0.000000e+00> : vector<16x128xf32>
    %8 = tpu.matmul %2, %7, %cst_6 {dimension_numbers = #tpu.dot_dimension_numbers<[1], [0], [0], [1], [0, 0, 1, 1], [], []>, precision = #tpu.contract_precision<fp32>} : vector<16x64xf32>, vector<64x128xf32>, vector<16x128xf32> -> vector<16x128xf32>
    %c0_7 = arith.constant 0 : index
    %c1 = arith.constant 1 : index
    %c0_8 = arith.constant 0 : index
    %c0_9 = arith.constant 0 : index
    %9 = vector.load %arg2[%c0_7, %c1, %c0_8, %c0_9] : memref<2x2x64x128xf32, #tpu.memory_space<vmem>>, vector<1x1x64x128xf32>
    %10 = vector.shape_cast %9 : vector<1x1x64x128xf32> to vector<64x128xf32>
    %cst_10 = arith.constant dense<0.000000e+00> : vector<16x128xf32>
    %11 = tpu.matmul %3, %10, %cst_10 {dimension_numbers = #tpu.dot_dimension_numbers<[1], [0], [0], [1], [0, 0, 1, 1], [], []>, precision = #tpu.contract_precision<fp32>} : vector<16x64xf32>, vector<64x128xf32>, vector<16x128xf32> -> vector<16x128xf32>
    %12 = arith.addf %8, %11 : vector<16x128xf32>
    %c0_11 = arith.constant 0 : index
    %c0_12 = arith.constant 0 : index
    %13 = vector.load %arg3[%c0_11, %c0_12] : memref<128x136xf32, #tpu.memory_space<vmem>>, vector<128x136xf32>
    %cst_13 = arith.constant dense<0.000000e+00> : vector<16x136xf32>
    %14 = tpu.matmul %12, %13, %cst_13 {dimension_numbers = #tpu.dot_dimension_numbers<[1], [0], [0], [1], [0, 0, 1, 1], [], []>, precision = #tpu.contract_precision<fp32>} : vector<16x128xf32>, vector<128x136xf32>, vector<16x136xf32> -> vector<16x136xf32>
    %c0_14 = arith.constant 0 : index
    %c0_15 = arith.constant 0 : index
    %c0_16 = arith.constant 0 : index
    %15 = vector.load %arg4[%c0_14, %c0_15, %c0_16] : memref<2x34x16xf32, #tpu.memory_space<vmem>>, vector<1x34x16xf32>
    %16 = vector.shape_cast %15 : vector<1x34x16xf32> to vector<34x16xf32>
    %cst_17 = arith.constant dense<0.000000e+00> : vector<34x136xf32>
    %17 = tpu.matmul %16, %14, %cst_17 {dimension_numbers = #tpu.dot_dimension_numbers<[1], [0], [0], [1], [0, 0, 1, 1], [], []>, precision = #tpu.contract_precision<fp32>} : vector<34x16xf32>, vector<16x136xf32>, vector<34x136xf32> -> vector<34x136xf32>
    %18 = arith.addf %5, %17 : vector<34x136xf32>
    %c1_18 = arith.constant 1 : index
    %c0_19 = arith.constant 0 : index
    %c0_20 = arith.constant 0 : index
    %c0_21 = arith.constant 0 : index
    %19 = vector.load %arg2[%c1_18, %c0_19, %c0_20, %c0_21] : memref<2x2x64x128xf32, #tpu.memory_space<vmem>>, vector<1x1x64x128xf32>
    %20 = vector.shape_cast %19 : vector<1x1x64x128xf32> to vector<64x128xf32>
    %cst_22 = arith.constant dense<0.000000e+00> : vector<16x128xf32>
    %21 = tpu.matmul %3, %20, %cst_22 {dimension_numbers = #tpu.dot_dimension_numbers<[1], [0], [0], [1], [0, 0, 1, 1], [], []>, precision = #tpu.contract_precision<fp32>} : vector<16x64xf32>, vector<64x128xf32>, vector<16x128xf32> -> vector<16x128xf32>
    %c1_23 = arith.constant 1 : index
    %c1_24 = arith.constant 1 : index
    %c0_25 = arith.constant 0 : index
    %c0_26 = arith.constant 0 : index
    %22 = vector.load %arg2[%c1_23, %c1_24, %c0_25, %c0_26] : memref<2x2x64x128xf32, #tpu.memory_space<vmem>>, vector<1x1x64x128xf32>
    %23 = vector.shape_cast %22 : vector<1x1x64x128xf32> to vector<64x128xf32>
    %cst_27 = arith.constant dense<0.000000e+00> : vector<16x128xf32>
    %24 = tpu.matmul %4, %23, %cst_27 {dimension_numbers = #tpu.dot_dimension_numbers<[1], [0], [0], [1], [0, 0, 1, 1], [], []>, precision = #tpu.contract_precision<fp32>} : vector<16x64xf32>, vector<64x128xf32>, vector<16x128xf32> -> vector<16x128xf32>
    %25 = arith.addf %21, %24 : vector<16x128xf32>
    %c0_28 = arith.constant 0 : index
    %c0_29 = arith.constant 0 : index
    %26 = vector.load %arg3[%c0_28, %c0_29] : memref<128x136xf32, #tpu.memory_space<vmem>>, vector<128x136xf32>
    %cst_30 = arith.constant dense<0.000000e+00> : vector<16x136xf32>
    %27 = tpu.matmul %25, %26, %cst_30 {dimension_numbers = #tpu.dot_dimension_numbers<[1], [0], [0], [1], [0, 0, 1, 1], [], []>, precision = #tpu.contract_precision<fp32>} : vector<16x128xf32>, vector<128x136xf32>, vector<16x136xf32> -> vector<16x136xf32>
    %c1_31 = arith.constant 1 : index
    %c0_32 = arith.constant 0 : index
    %c0_33 = arith.constant 0 : index
    %28 = vector.load %arg4[%c1_31, %c0_32, %c0_33] : memref<2x34x16xf32, #tpu.memory_space<vmem>>, vector<1x34x16xf32>
    %29 = vector.shape_cast %28 : vector<1x34x16xf32> to vector<34x16xf32>
    %cst_34 = arith.constant dense<0.000000e+00> : vector<34x136xf32>
    %30 = tpu.matmul %29, %27, %cst_34 {dimension_numbers = #tpu.dot_dimension_numbers<[1], [0], [0], [1], [0, 0, 1, 1], [], []>, precision = #tpu.contract_precision<fp32>} : vector<34x16xf32>, vector<16x136xf32>, vector<34x136xf32> -> vector<34x136xf32>
    %31 = arith.addf %18, %30 : vector<34x136xf32>
    %cst_35 = arith.constant 0.000000e+00 : f32
    %32 = vector.broadcast %cst_35 : f32 to vector<32x256xf32>
    %33 = vector.extract_strided_slice %31 {offsets = [0, 0], sizes = [32, 136], strides = [1, 1]} : vector<34x136xf32> to vector<32x136xf32>
    %c0_36 = arith.constant 0 : index
    %c0_37 = arith.constant 0 : index
    %c0_38 = arith.constant 0 : index
    %34 = vector.load %arg5[%c0_36, %c0_37, %c0_38] : memref<3x136x256xf32, #tpu.memory_space<vmem>>, vector<1x136x256xf32>
    %35 = vector.shape_cast %34 : vector<1x136x256xf32> to vector<136x256xf32>
    %cst_39 = arith.constant dense<0.000000e+00> : vector<32x256xf32>
    %36 = tpu.matmul %33, %35, %cst_39 {dimension_numbers = #tpu.dot_dimension_numbers<[1], [0], [0], [1], [0, 0, 1, 1], [], []>, precision = #tpu.contract_precision<fp32>} : vector<32x136xf32>, vector<136x256xf32>, vector<32x256xf32> -> vector<32x256xf32>
    %37 = arith.addf %32, %36 : vector<32x256xf32>
    %38 = vector.extract_strided_slice %31 {offsets = [1, 0], sizes = [32, 136], strides = [1, 1]} : vector<34x136xf32> to vector<32x136xf32>
    %c1_40 = arith.constant 1 : index
    %c0_41 = arith.constant 0 : index
    %c0_42 = arith.constant 0 : index
    %39 = vector.load %arg5[%c1_40, %c0_41, %c0_42] : memref<3x136x256xf32, #tpu.memory_space<vmem>>, vector<1x136x256xf32>
    %40 = vector.shape_cast %39 : vector<1x136x256xf32> to vector<136x256xf32>
    %cst_43 = arith.constant dense<0.000000e+00> : vector<32x256xf32>
    %41 = tpu.matmul %38, %40, %cst_43 {dimension_numbers = #tpu.dot_dimension_numbers<[1], [0], [0], [1], [0, 0, 1, 1], [], []>, precision = #tpu.contract_precision<fp32>} : vector<32x136xf32>, vector<136x256xf32>, vector<32x256xf32> -> vector<32x256xf32>
    %42 = arith.addf %37, %41 : vector<32x256xf32>
    %43 = vector.extract_strided_slice %31 {offsets = [2, 0], sizes = [32, 136], strides = [1, 1]} : vector<34x136xf32> to vector<32x136xf32>
    %c2 = arith.constant 2 : index
    %c0_44 = arith.constant 0 : index
    %c0_45 = arith.constant 0 : index
    %44 = vector.load %arg5[%c2, %c0_44, %c0_45] : memref<3x136x256xf32, #tpu.memory_space<vmem>>, vector<1x136x256xf32>
    %45 = vector.shape_cast %44 : vector<1x136x256xf32> to vector<136x256xf32>
    %cst_46 = arith.constant dense<0.000000e+00> : vector<32x256xf32>
    %46 = tpu.matmul %43, %45, %cst_46 {dimension_numbers = #tpu.dot_dimension_numbers<[1], [0], [0], [1], [0, 0, 1, 1], [], []>, precision = #tpu.contract_precision<fp32>} : vector<32x136xf32>, vector<136x256xf32>, vector<32x256xf32> -> vector<32x256xf32>
    %47 = arith.addf %42, %46 : vector<32x256xf32>
    %c0_47 = arith.constant 0 : index
    %c0_48 = arith.constant 0 : index
    %48 = vector.load %arg6[%c0_47, %c0_48] : memref<1x256xf32, #tpu.memory_space<vmem>>, vector<1x256xf32>
    %49 = vector.broadcast %48 : vector<1x256xf32> to vector<32x256xf32>
    %50 = arith.addf %47, %49 : vector<32x256xf32>
    %cst_49 = arith.constant 0.000000e+00 : f32
    %cst_50 = arith.constant 6.000000e+00 : f32
    %51 = vector.broadcast %cst_49 : f32 to vector<32x256xf32>
    %52 = arith.maximumf %51, %50 : vector<32x256xf32>
    %53 = vector.broadcast %cst_50 : f32 to vector<32x256xf32>
    %54 = arith.minimumf %53, %52 : vector<32x256xf32>
    %c0_51 = arith.constant 0 : index
    %c0_52 = arith.constant 0 : index
    %c0_53 = arith.constant 0 : index
    %55 = vector.load %arg7[%c0_51, %c0_52, %c0_53] : memref<1x32x256xf32, #tpu.memory_space<vmem>>, vector<1x32x256xf32>
    %56 = vector.shape_cast %55 : vector<1x32x256xf32> to vector<32x256xf32>
    %57 = vector.shape_cast %54 : vector<32x256xf32> to vector<1x32x256xf32>
    tpu.vector_store %arg7[%c0_51, %c0_52, %c0_53], %57 {strides = array<i32>} : memref<1x32x256xf32, #tpu.memory_space<vmem>>, vector<1x32x256xf32>,
    return
  }
  func.func @transform_0(%arg0: i32) -> (i32, i32, i32) {
    %c0_i32 = arith.constant 0 : i32
    %c0_i32_0 = arith.constant 0 : i32
    %c0_i32_1 = arith.constant 0 : i32
    return %arg0, %c0_i32, %c0_i32_0 : i32, i32, i32
  }
  func.func @transform_1(%arg0: i32) -> (i32, i32, i32, i32) {
    %c0_i32 = arith.constant 0 : i32
    %c0_i32_0 = arith.constant 0 : i32
    %c0_i32_1 = arith.constant 0 : i32
    %c0_i32_2 = arith.constant 0 : i32
    %c0_i32_3 = arith.constant 0 : i32
    return %c0_i32, %c0_i32_0, %c0_i32_1, %c0_i32_2 : i32, i32, i32, i32
  }
  func.func @transform_2(%arg0: i32) -> (i32, i32) {
    %c0_i32 = arith.constant 0 : i32
    %c0_i32_0 = arith.constant 0 : i32
    %c0_i32_1 = arith.constant 0 : i32
    return %c0_i32, %c0_i32_0 : i32, i32
  }
  func.func @transform_3(%arg0: i32) -> (i32, i32, i32) {
    %c0_i32 = arith.constant 0 : i32
    %c0_i32_0 = arith.constant 0 : i32
    %c0_i32_1 = arith.constant 0 : i32
    %c0_i32_2 = arith.constant 0 : i32
    return %c0_i32, %c0_i32_0, %c0_i32_1 : i32, i32, i32
  }
  func.func @transform_4(%arg0: i32) -> (i32, i32, i32) {
    %c0_i32 = arith.constant 0 : i32
    %c0_i32_0 = arith.constant 0 : i32
    %c0_i32_1 = arith.constant 0 : i32
    %c0_i32_2 = arith.constant 0 : i32
    return %c0_i32, %c0_i32_0, %c0_i32_1 : i32, i32, i32
  }
  func.func @transform_5(%arg0: i32) -> (i32, i32) {
    %c0_i32 = arith.constant 0 : i32
    %c0_i32_0 = arith.constant 0 : i32
    %c0_i32_1 = arith.constant 0 : i32
    return %c0_i32, %c0_i32_0 : i32, i32
  }
  func.func @transform_6(%arg0: i32) -> (i32, i32, i32) {
    %c0_i32 = arith.constant 0 : i32
    %c0_i32_0 = arith.constant 0 : i32
    %c0_i32_1 = arith.constant 0 : i32
    return %arg0, %c0_i32, %c0_i32_0 : i32, i32, i32
  }
}

</mosaic_0001>

<bundles_post_ra>
// kernel: up_block.1
= control target key start
LH: loop header
LB: loop body
LE: loop exit
PB: predicated region body
PF: predicated region fallthrough
CT: control target
= control target key end

     0   :  { %11 = vsyncpa [#allocation3], 0  ;;  %s12060_s21 = smov 0   ;;  %s16273_s0 = inlined_call_operand.vmem [shape: f32[2,18,64], index: 0, kind: input, shape index: {}]   ;;  %s16274_s1 = inlined_call_operand.hbm [shape: f32[2,2,64,128], index: 1, kind: input, shape index: {}]   ;;  %s16275_s2 = inlined_call_operand.vmem [shape: f32[128,136], index: 2, kind: input, shape index: {}]   ;;  %s16276_s3 = inlined_call_operand.vmem [shape: f32[2,34,16], index: 3, kind: input, shape index: {}]   ;;  %s16277_s4 = inlined_call_operand.vmem [shape: f32[3,136,256], index: 4, kind: input, shape index: {}]   ;;  %s16278_s5 = inlined_call_operand.vmem [shape: f32[1,256], index: 5, kind: input, shape index: {}]   ;;  %s16279_s6 = inlined_call_operand.vmem [shape: f32[2,32,256], index: 6, kind: output, shape index: {}]  }
   0x1 LB: > { %s12066_s22 = sadd.s32 4294967295, %s12019_s21   ;;  %p9453_p0 = scmp.ge.s32.totalorder %s12019_s21, 1  ;;  %s12019_s21 = sphi %s12060_s21, %s17_s21  }
   0x2   : > { %p179_p1 = scmp.lt.s32.totalorder %s12019_s21, 3  ;;  %s12021_s23 = smov [#allocation2]  }
   0x3   : > { %s191_s24 = sshll.u32 %s12021_s23, 4  ;;  %p16280_p3 = scmp.eq.s32.totalorder %s12066_s22, 0  ;;  %s192_s24 = int_to_ptr.vmem [resolvable:$true] %s191_s24 }
   0x4   : > { %p12070_p2 = pnand %p9453_p0, %p179_p1  ;;  %s11981_s29 = scalar_lea.hbm %s16274_s1, 4096 }
   0x5   : > { %p11982_p6 = scmp.ne.s32.totalorder %s16274_s1, %s11981_s29  ;;  %p11988_p10 = scmp.lt.u32.totalorder %s11981_s29, %s16274_s1 }
   0x6   : > { %s16790_s25 = scalar_select %p12070_p2, 1, 0 }
   0x7   : > { %p11960_p4 = pneg %p12070_p2 }
   0x9   : > { %p12079_p5 = pnand %p16280_p3, %p11960_p4 }
   0xb   : > { %p11983_p7 = pneg %p12079_p5 }
   0xd   : > { %p11984_p8 = pnand %p11983_p7, %p11982_p6 }
   0xf   : > { %p11985_p9 = pneg %p11984_p8 }
  0x11   : > { %p11990_p11 = pnand %p11988_p10, %p11985_p9 }
  0x13   : > { %11993 = shalt.err (!%p11990_p11)
}
  0x14   : > { %s11994_s10 = scalar_lea.vmem %s192_s24, 4096  ;;  %p12002_p1 = scmp.lt.s32.totalorder %s192_s24, %s192_s24 }
  0x15   : > { %p11995_p12 = scmp.ne.s32.totalorder %s192_s24, %s11994_s10  ;;  %p12003_p4 = scmp.lt.s32.totalorder %s11994_s10, %s11994_s10 }
  0x17   : > { %p11997_p13 = pnand %p11995_p12, %p11983_p7  ;;  %p12004_p3 = por %p12003_p4, %p12002_p1 }
  0x19   : > { %p11998_p0 = pneg %p11997_p13 }
  0x1b   : > { %p12005_p2 = pnand %p12004_p3, %p11998_p0 }
  0x1d   : > { %12008 = shalt.err (!%p12005_p2)
}
  0x1e   : > { %s12022_s11 = smov 128   ;;  %s12023_s12 = smov 8  }
  0x1f   : > { %11963 = dma.hbm_to_vmem [thread:$0]  (!%p12079_p5), %s16274_s1, 4096, %s192_s24, [#allocation3], %s12022_s11, %s12022_s11, %s12023_s12  }
  0x20   : > { %p16792_p6 = scmp.ne.s32.totalorder %s16790_s25, 0 }
  0x22   : > { %227 = sbr.rel (%p16792_p6) target bundleno = 2360 (0x938), region = 44 }
  0x29   : > { %p16793_p8 = scmp.eq.s32.totalorder %s12066_s22, 0 }
  0x2b   : > { %12014 = dma.done.wait (%p16793_p8), [#allocation3], 4096   ;;  %p16794_p7 = pmov %p16793_p8 }
  0x2c   : > { %p257_p2 = scmp.lt.s32.totalorder %s12066_s22, 1  ;;  %v279_v0 = vld [vmem:[#allocation2 + $0x40] sm:$0xff]  ;;  %v280_v1 = vld [vmem:[#allocation2 + $0x48] sm:$0xff]  ;;  %v281_v2 = vld [vmem:[#allocation2 + $0x50] sm:$0xff]  ;;  %vm290_vm0 = vcmask 1046528   ;;  %vm296_vm1 = vcmask 523264  }
  0x2d   : > { %12016 = vsyncadd (%p16794_p7), [#allocation3], 4294963200  ;;  %v302_v3 = vand.u32 4294901760, %v279_v0  ;;  %v305_v4 = vand.u32 4294901760, %v280_v1  ;;  %v282_v5 = vld [vmem:[#allocation2 + $0x58] sm:$0xff]  ;;  %v308_v6 = vand.u32 4294901760, %v281_v2 }
  0x2e   : > { %s17722_s22 = smov (!%p257_p2, %s12066_s22), 1  ;;  %v283_v7 = vld [vmem:[#allocation2 + $0x60] sm:$0xff]  ;;  %v284_v8 = vld [vmem:[#allocation2 + $0x68] sm:$0xff]  ;;  %v311_v9 = vand.u32 4294901760, %v282_v5  ;;  %v285_v12 = vld [vmem:[#allocation2 + $0x70] sm:$0xff]  ;;  %vm2424_vm2 = vcmask 1045504  }
  0x2f   : > { %s11955_s15 = smul.u32 24, %s17722_s22  ;;  %v314_v10 = vand.u32 4294901760, %v283_v7  ;;  %v317_v11 = vand.u32 4294901760, %v284_v8  ;;  %v286_v13 = vld [vmem:[#allocation2 + $0x78] sm:$0xff]  ;;  %v12118_v15 = vpack.c.bf16 %v305_v4, %v302_v3  ;;  %v320_v20 = vand.u32 4294901760, %v285_v12  ;;  %s9536_s27 = sshll.u32 %s17722_s22, 6 }
  0x30   : > { %v12125_v19 = vpack.c.bf16 %v311_v9, %v308_v6  ;;  %v12128_v22 = vsub.f32 %v279_v0, %v302_v3  ;;  %v323_v24 = vand.u32 4294901760, %v286_v13  ;;  %v12133_v25 = vsub.f32 %v280_v1, %v305_v4  ;;  %s16255_s30 = scalar_lea.vmem %s16279_s6, %s9536_s27 }
  0x31   : > { %s12113_s18 = scalar_lea.vmem %s16273_s0, %s11955_s15  ;;  %10234 = vmatprep.subr.bf16.mxu0 %v12118_v15  ;;  %v12131_v23 = vpack.c.bf16 %v317_v11, %v314_v10  ;;  %v12138_v29 = vsub.f32 %v281_v2, %v308_v6  ;;  %v12140_v30 = vsub.f32 %v282_v5, %v311_v9  ;;  %v12146_v34 = vsub.f32 %v283_v7, %v314_v10 }
  0x32   : > { %v12116_v14 = vld [vmem:[%s12113_s18] sm:$0xff]  ;;  %v12121_v16 = vld [vmem:[%s12113_s18 + $0x8] sm:$0xff]  ;;  %v269_v18 = vld [vmem:[%s12113_s18 + $0x10] sm:$0x3]  ;;  %10236 = vmatpush3.bf16.msra.mxu0 %v12118_v15  ;;  %v397_v28 = vand.u32 4294901760, %v12128_v22  ;;  %v404_v32 = vand.u32 4294901760, %v12133_v25  ;;  %v12169_v46 = vsub.f32 %v284_v8, %v317_v11  ;;  %v12172_v47 = vpack.c.bf16 %v323_v24, %v320_v20 }
  0x33   : > { %v291_v17 = vrot.slane %v12116_v14, 1  ;;  %v292_v21 = vrot.slane %v12121_v16, 1  ;;  %v294_v26 = vrot.slane %v269_v18, 1  ;;  %10238 = vmatprep.subr.bf16.mxu0 %v12125_v19  ;;  %v411_v38 = vand.u32 4294901760, %v12138_v29 }
  0x34   : > { %v398_v36 = vsub.f32 %v12128_v22, %v397_v28  ;;  %v405_v39 = vsub.f32 %v12133_v25, %v404_v32  ;;  %v418_v41 = vand.u32 4294901760, %v12140_v30  ;;  %v425_v42 = vand.u32 4294901760, %v12146_v34 }
  0x35   : > { %v293_v27 = vsel %vm290_vm0, %v291_v17, %v292_v21  ;;  %v295_v33 = vsel %vm290_vm0, %v292_v21, %v294_v26  ;;  %v412_v45 = vsub.f32 %v12138_v29, %v411_v38  ;;  %v432_v52 = vand.u32 4294901760, %v12169_v46  ;;  %v271_v21 = vld [vmem:[#allocation2 + $0x8] sm:$0xff] }
  0x36   : > { %v297_v31 = vsel %vm296_vm1, %v293_v27, 0  ;;  %v299_v37 = vsel %vm296_vm1, %v295_v33, 0  ;;  %10240 = vmatpush3.bf16.msra.mxu0 %v12125_v19  ;;  %v399_v44 = vand.u32 4294901760, %v398_v36  ;;  %v406_v48 = vand.u32 4294901760, %v405_v39  ;;  %v273_v33 = vld [vmem:[#allocation2 + $0x18] sm:$0xff] }
  0x37   : > { %v12148_v35 = vand.u32 4294901760, %v297_v31  ;;  %v12158_v40 = vand.u32 4294901760, %v299_v37  ;;  %10242 = vmatprep.subr.bf16.mxu0 %v12131_v23  ;;  %v419_v50 = vsub.f32 %v12140_v30, %v418_v41  ;;  %v12184_v53 = vsub.f32 %v285_v12, %v320_v20  ;;  %v270_v20 = vld [vmem:[#allocation2] sm:$0xff] }
  0x38   : > { %v426_v55 = vsub.f32 %v12146_v34, %v425_v42  ;;  %v10249_v57 = vpack.c.bf16 %v406_v48, %v399_v44  ;;  %v413_v58 = vand.u32 4294901760, %v412_v45  ;;  %v12195_v59 = vsub.f32 %v286_v13, %v323_v24 }
  0x39   : > { %16795 = vst [vmem:[#allocation5_spill] sm:$0xff] %v12148_v35  ;;  %16796 = vst [vmem:[#allocation6_spill] sm:$0xff] %v12158_v40  ;;  %v12164_v43 = vsub.f32 %v297_v31, %v12148_v35  ;;  %v12175_v49 = vsub.f32 %v299_v37, %v12158_v40  ;;  %v420_v61 = vand.u32 4294901760, %v419_v50  ;;  %v433_v62 = vsub.f32 %v12169_v46, %v432_v52  ;;  %v272_v31 = vld [vmem:[#allocation2 + $0x10] sm:$0xff]  ;;  %v275_v50 = vld [vmem:[#allocation2 + $0x28] sm:$0xff] }
  0x3a   : > { %10244 = vmatpush3.bf16.msra.mxu0 %v12131_v23  ;;  %v439_v63 = vand.u32 4294901760, %v12184_v53  ;;  %v446_v1 = vand.u32 4294901760, %v12195_v59  ;;  %v427_v3 = vand.u32 4294901760, %v426_v55  ;;  %v10265_v12 = vpack.c.bf16 %v12133_v25, %v12128_v22 }
  0x3b   : > { %16797 = vst [vmem:[#allocation7_spill] sm:$0xff] %v12164_v43  ;;  %16798 = vst [vmem:[#allocation8_spill] sm:$0xff] %v12175_v49  ;;  %v12181_v51 = vand.u32 4294901760, %v12164_v43  ;;  %v12187_v54 = vand.u32 4294901760, %v12175_v49  ;;  %10246 = vmatprep.subr.bf16.mxu0 %v12172_v47  ;;  %v10253_v4 = vpack.c.bf16 %v420_v61, %v413_v58  ;;  %v434_v5 = vand.u32 4294901760, %v433_v62 }
  0x3c   : > { %v440_v6 = vsub.f32 %v12184_v53, %v439_v63  ;;  %v447_v7 = vsub.f32 %v12195_v59, %v446_v1  ;;  %v10269_v13 = vpack.c.bf16 %v12140_v30, %v12138_v29  ;;  %v10273_v17 = vpack.c.bf16 %v12169_v46, %v12146_v34 }
  0x3d   : > { %16799 = vst [vmem:[#allocation9_spill] sm:$0xff] %v12181_v51  ;;  %16800 = vst [vmem:[#allocation10_spill] sm:$0xff] %v12187_v54  ;;  %v377_v56 = vsub.f32 %v12164_v43, %v12181_v51  ;;  %v387_v60 = vsub.f32 %v12175_v49, %v12187_v54  ;;  %v10257_v8 = vpack.c.bf16 %v434_v5, %v427_v3  ;;  %v886_v24 = vand.u32 4294901760, %v270_v20  ;;  %v276_v3 = vld [vmem:[#allocation2 + $0x30] sm:$0xff] }
  0x3e   : > { %10248 = vmatpush3.bf16.msra.mxu0 %v12172_v47  ;;  %v441_v9 = vand.u32 4294901760, %v440_v6  ;;  %v448_v10 = vand.u32 4294901760, %v447_v7  ;;  %v10277_v18 = vpack.c.bf16 %v12195_v59, %v12184_v53  ;;  %v881_v26 = vsel %vm296_vm1, %v12116_v14, 0  ;;  %v274_v14 = vld [vmem:[#allocation2 + $0x20] sm:$0xff] }
  0x3f   : > { %v12204_v0 = vand.u32 4294901760, %v377_v56  ;;  %v12207_v2 = vand.u32 4294901760, %v387_v60  ;;  %10250 = vmatprep.subr.bf16.mxu0 %v10249_v57  ;;  %v889_v27 = vand.u32 4294901760, %v271_v21  ;;  %v12232_v36 = vsub.f32 %v270_v20, %v886_v24 }
  0x40   : > { %v10261_v11 = vpack.c.bf16 %v448_v10, %v441_v9  ;;  %v12235_v37 = vand.u32 4294901760, %v881_v26  ;;  %v892_v44 = vand.u32 4294901760, %v272_v31  ;;  %v895_v45 = vand.u32 4294901760, %v273_v33 }
  0x41   : > { %16801 = vst [vmem:[#allocation11_spill] sm:$0xff] %v12204_v0  ;;  %16802 = vst [vmem:[#allocation12_spill] sm:$0xff] %v12207_v2  ;;  %9793 = vmatprep.mubr.f32.mxu0 %v12204_v0  ;;  %v12237_v39 = vsub.f32 %v271_v21, %v889_v27  ;;  %v883_v48 = vsel %vm296_vm1, %v12121_v16, 0  ;;  %v16288_v55 = vand.u32 4294901760, %v12232_v36  ;;  %v898_v61 = vand.u32 4294901760, %v274_v14 }
  0x42   : > { %9794 = vmatmul.mubr.f32.vlgmr.msra.gmra.mrb[0].mxu0 %v12207_v2  ;;  %v12245_v56 = vsub.f32 %v272_v31, %v892_v44  ;;  %v12250_v58 = vsub.f32 %v881_v26, %v12235_v37  ;;  %v12254_v62 = vand.u32 4294901760, %v883_v48  ;;  %v901_v16 = vand.u32 4294901760, %v275_v50 }
  0x43   : > { %10252 = vmatpush3.bf16.msra.mxu0 %v10249_v57  ;;  %9812 = vmatprep.mubr.f32.mxu0 %v12148_v35  ;;  %v12247_v57 = vsub.f32 %v273_v33, %v895_v45  ;;  %v16287_v60 = vand.u32 4294901760, %v12237_v39  ;;  %v982_v5 = vsub.f32 %v12232_v36, %v16288_v55  ;;  %v10301_v33 = vpack.c.bf16 %v418_v41, %v411_v38 }
  0x44   : > { %10254 = vmatprep.subr.bf16.mxu0 %v10253_v4  ;;  %v16286_v6 = vand.u32 4294901760, %v12245_v56  ;;  %v16289_v9 = vand.u32 4294901760, %v12250_v58  ;;  %v12316_v29 = vpack.c.bf16 %v895_v45, %v892_v44  ;;  %v12318_v30 = vpack.c.bf16 %v901_v16, %v898_v61 }
  0x45   : > { %v16285_v7 = vand.u32 4294901760, %v12247_v57  ;;  %v989_v10 = vsub.f32 %v12237_v39, %v16287_v60  ;;  %v983_v20 = vand.u32 4294901760, %v982_v5  ;;  %v1470_v5 = vld [vmem:[%s16275_s2 + $0x28] sm:$0xff]  ;;  %vm4504_vm3 = vcmask 130048  }
  0x46   : > { %v12282_v21 = vsub.f32 %v12245_v56, %v16286_v6  ;;  %v12293_v22 = vsub.f32 %v12250_v58, %v16289_v9  ;;  %v1469_v6 = vld [vmem:[%s16275_s2 + $0x20] sm:$0xff]  ;;  %vm6010_vm4 = vcmask 64512  }
  0x47   : > { %10256 = vmatpush3.bf16.msra.mxu0 %v10253_v4  ;;  %v277_v4 = vld [vmem:[#allocation2 + $0x38] sm:$0xff]  ;;  %v12287_v26 = vsub.f32 %v12247_v57, %v16285_v7  ;;  %v990_v25 = vand.u32 4294901760, %v989_v10 }
  0x48   : > { %10258 = vmatprep.subr.bf16.mxu0 %v10257_v8  ;;  %v1472_v10 = vld [vmem:[%s16275_s2 + $0x38] sm:$0xff] }
  0x4b   : > { %10260 = vmatpush3.bf16.msra.mxu0 %v10257_v8  ;;  %v12262_v8 = vsub.f32 %v274_v14, %v898_v61  ;;  %v10305_v14 = vpack.c.bf16 %v432_v52, %v425_v42  ;;  %v12331_v52 = vpack.c.bf16 %v990_v25, %v983_v20  ;;  %v1467_v61 = vld [vmem:[%s16275_s2 + $0x10] sm:$0xff]  ;;  %v1505_v20 = vand.u32 4294901760, %v1470_v5 }
  0x4c   : > { %10262 = vmatprep.subr.bf16.mxu0 %v10261_v11  ;;  %v1509_v25 = vand.u32 4294901760, %v1472_v10 }
  0x4d   : > { %v16283_v31 = vand.u32 4294901760, %v12262_v8 }
  0x4e   : > { %v12383_v55 = vpack.c.bf16 %v1509_v25, %v1505_v20 }
  0x4f   : > { %10264 = vmatpush3.bf16.msra.mxu0 %v10261_v11  ;;  %v12268_v11 = vsub.f32 %v275_v50, %v901_v16  ;;  %v12312_v50 = vpack.c.bf16 %v446_v1, %v439_v63  ;;  %v12327_v42 = vsub.f32 %v12262_v8, %v16283_v31  ;;  %v1466_v63 = vld [vmem:[%s16275_s2 + $0x8] sm:$0xff]  ;;  %v1468_v1 = vld [vmem:[%s16275_s2 + $0x18] sm:$0xff] }
  0x50   : > { %10266 = vmatprep.subr.bf16.mxu0 %v10265_v12  ;;  %v1497_v44 = vand.u32 4294901760, %v1466_v63  ;;  %v1501_v45 = vand.u32 4294901760, %v1468_v1 }
  0x52   : > { %9813 = vmatmul.mubr.f32.vlgmr.msra.gmra.mrb[0].mxu0 %v12158_v40  ;;  %v12367_v31 = vsub.f32 %v1466_v63, %v1497_v44  ;;  %v12385_v63 = vsub.f32 %v1470_v5, %v1505_v20 }
  0x53   : > { %10268 = vmatpush3.bf16.msra.mxu0 %v10265_v12  ;;  %9831 = vmatprep.mubr.f32.mxu0 %v12164_v43  ;;  %v12272_v12 = vsub.f32 %v883_v48, %v12254_v62 }
  0x54   : > { %10270 = vmatprep.subr.bf16.mxu0 %v10269_v13 }
  0x55   : > { %v16284_v48 = vand.u32 4294901760, %v12272_v12 }
  0x57   : > { %10272 = vmatpush3.bf16.msra.mxu0 %v10269_v13  ;;  %v10297_v13 = vpack.c.bf16 %v404_v32, %v397_v28  ;;  %v16282_v28 = vand.u32 4294901760, %v12268_v11 }
  0x58   : > { %10274 = vmatprep.subr.bf16.mxu0 %v10273_v17 }
  0x59   : > { %v12336_v53 = vsub.f32 %v12268_v11, %v16282_v28  ;;  %v12365_v28 = vpack.c.bf16 %v1501_v45, %v1497_v44 }
  0x5b   : > { %10276 = vmatpush3.bf16.msra.mxu0 %v10273_v17  ;;  %v904_v17 = vand.u32 4294901760, %v276_v3 }
  0x5c   : > { %10278 = vmatprep.subr.bf16.mxu0 %v10277_v18 }
  0x5d   : > { %v12296_v32 = vsub.f32 %v276_v3, %v904_v17  ;;  %v12314_v3 = vpack.c.bf16 %v889_v27, %v886_v24  ;;  %v1465_v24 = vld [vmem:[%s16275_s2] sm:$0xff]  ;;  %v12352_v27 = vsub.f32 %v12272_v12, %v16284_v48  ;;  %v12369_v48 = vsub.f32 %v1468_v1, %v1501_v45 }
  0x5e   : > { %v1499_v16 = vand.u32 4294901760, %v1465_v24  ;;  %v16290_v1 = vand.u32 4294901760, %v12367_v31  ;;  %v12390_v45 = vsub.f32 %v1472_v10, %v1509_v25 }
  0x5f   : > { %10280 = vmatpush3.bf16.msra.mxu0 %v10277_v18  ;;  %v907_v18 = vand.u32 4294901760, %v277_v4 }
  0x60   : > { %10282 = vmatprep.subr.bf16.mxu0 %v12118_v15  ;;  %v12371_v7 = vsub.f32 %v1465_v24, %v1499_v16  ;;  %v16291_v24 = vand.u32 4294901760, %v12369_v48  ;;  %v1619_v5 = vsub.f32 %v12367_v31, %v16290_v1  ;;  %v16298_v20 = vand.u32 4294901760, %v12390_v45 }
  0x61   : > { %v12320_v38 = vpack.c.bf16 %v907_v18, %v904_v17  ;;  %v1503_v17 = vand.u32 4294901760, %v1467_v61 }
  0x62   : > { %9832 = vmatmul.mubr.f32.vlgmr.msra.gmra.mrb[0].mxu0 %v12175_v49  ;;  %v16292_v44 = vand.u32 4294901760, %v12371_v7  ;;  %v1620_v34 = vand.u32 4294901760, %v1619_v5 }
  0x63   : > { %10284 = vmatpush3.bf16.msra.mxu0 %v12118_v15  ;;  %9850 = vmatprep.mubr.f32.mxu0 %v12181_v51  ;;  %v12381_v60 = vsub.f32 %v1467_v61, %v1503_v17  ;;  %v1507_v61 = vand.u32 4294901760, %v1469_v6 }
  0x64   : > { %10286 = vmatprep.subr.bf16.mxu0 %v12125_v19  ;;  %v1625_v10 = vsub.f32 %v12371_v7, %v16292_v44  ;;  %v1476_v44 = vld [vmem:[%s16275_s2 + $0x58] sm:$0xff] }
  0x65   : > { %v16293_v9 = vand.u32 4294901760, %v12381_v60  ;;  %v12412_v1 = vsub.f32 %v1469_v6, %v1507_v61  ;;  %v1473_v6 = vld [vmem:[%s16275_s2 + $0x40] sm:$0xff] }
  0x66   : > { %v1515_v2 = vand.u32 4294901760, %v1473_v6 }
  0x67   : > { %10288 = vmatpush3.bf16.msra.mxu0 %v12125_v19  ;;  %v1637_v25 = vsub.f32 %v12381_v60, %v16293_v9  ;;  %v1626_v9 = vand.u32 4294901760, %v1625_v10  ;;  %v16301_v51 = vand.u32 4294901760, %v12412_v1 }
  0x68   : > { %10290 = vmatprep.subr.bf16.mxu0 %v12131_v23 }
  0x6b   : > { %10292 = vmatpush3.bf16.msra.mxu0 %v12131_v23 }
  0x6c   : > { %10294 = vmatprep.subr.bf16.mxu0 %v12172_v47 }
  0x6f   : > { %10296 = vmatpush3.bf16.msra.mxu0 %v12172_v47 }
  0x70   : > { %10298 = vmatprep.subr.bf16.mxu0 %v10297_v13 }
  0x72   : > { %9851 = vmatmul.mubr.f32.vlgmr.msra.gmra.mrb[0].mxu0 %v12187_v54 }
  0x73   : > { %10300 = vmatpush3.bf16.msra.mxu0 %v10297_v13  ;;  %9869 = vmatprep.mubr.f32.mxu0 %v12148_v35  ;;  %v12363_v13 = vsub.f32 %v277_v4, %v907_v18  ;;  %v1471_v4 = vld [vmem:[%s16275_s2 + $0x30] sm:$0xff]  ;;  %v12379_v18 = vpack.c.bf16 %v1503_v17, %v1499_v16  ;;  %v16294_v16 = vand.u32 4294901760, %v12385_v63 }
  0x74   : > { %10302 = vmatprep.subr.bf16.mxu0 %v10301_v33  ;;  %v1511_v17 = vand.u32 4294901760, %v1471_v4 }
  0x75   : > { %v1643_v59 = vsub.f32 %v12385_v63, %v16294_v16  ;;  %v1655_v16 = vsub.f32 %v12390_v45, %v16298_v20  ;;  %v1517_v20 = vand.u32 4294901760, %v1476_v44 }
  0x76   : > { %v12410_v41 = vpack.c.bf16 %v1511_v17, %v1507_v61  ;;  %v1638_v61 = vand.u32 4294901760, %v1637_v25  ;;  %v12428_v49 = vsub.f32 %v1471_v4, %v1511_v17  ;;  %v1649_v25 = vsub.f32 %v12412_v1, %v16301_v51  ;;  %v1478_v4 = vld [vmem:[%s16275_s2 + $0x68] sm:$0xff]  ;;  %v1480_v17 = vld [vmem:[%s16275_s2 + $0x78] sm:$0xff] }
  0x77   : > { %10304 = vmatpush3.bf16.msra.mxu0 %v10301_v33  ;;  %v1631_v33 = vsub.f32 %v12369_v48, %v16291_v24  ;;  %v1474_v24 = vld [vmem:[%s16275_s2 + $0x48] sm:$0xff]  ;;  %v1644_v54 = vand.u32 4294901760, %v1643_v59 }
  0x78   : > { %10306 = vmatprep.subr.bf16.mxu0 %v10305_v14  ;;  %16803 = vst [vmem:[#allocation13_spill] sm:$0xff] %v12428_v49  ;;  %v1513_v10 = vand.u32 4294901760, %v1474_v24  ;;  %v12435_v43 = vpack.c.bf16 %v1638_v61, %v1626_v9  ;;  %v16303_v59 = vand.u32 4294901760, %v12428_v49  ;;  %v1650_v61 = vand.u32 4294901760, %v1649_v25 }
  0x79   : > { %v1632_v46 = vand.u32 4294901760, %v1631_v33  ;;  %v1656_v33 = vand.u32 4294901760, %v1655_v16  ;;  %v1521_v25 = vand.u32 4294901760, %v1478_v4 }
  0x7a   : > { %16805 = vst [vmem:[#allocation15_spill] sm:$0xff] %v12435_v43  ;;  %v12450_v9 = vsub.f32 %v1474_v24, %v1513_v10  ;;  %v1477_v24 = vld [vmem:[%s16275_s2 + $0x60] sm:$0xff] }
  0x7b   : > { %10308 = vmatpush3.bf16.msra.mxu0 %v10305_v14  ;;  %v1475_v14 = vld [vmem:[%s16275_s2 + $0x50] sm:$0xff]  ;;  %v12433_v5 = vpack.c.bf16 %v1632_v46, %v1620_v34  ;;  %v12446_v34 = vpack.c.bf16 %v1656_v33, %v1644_v54  ;;  %v12448_v46 = vpack.c.bf16 %v1517_v20, %v1513_v10  ;;  %v12460_v54 = vsub.f32 %v1476_v44, %v1517_v20 }
  0x7c   : > { %10310 = vmatprep.subr.bf16.mxu0 %v12312_v50  ;;  %16807 = vst [vmem:[#allocation17_spill] sm:$0xff] %v12450_v9  ;;  %v1519_v16 = vand.u32 4294901760, %v1475_v14  ;;  %v12462_v33 = vsub.f32 %v1473_v6, %v1515_v2  ;;  %v16306_v10 = vand.u32 4294901760, %v12450_v9  ;;  %v1525_v6 = vand.u32 4294901760, %v1480_v17 }
  0x7d   : > { %16804 = vst [vmem:[#allocation14_spill] sm:$0xff] %v12433_v5  ;;  %10458 = vmatprep.subr.bf16.mxu1 %v12433_v5  ;;  %16806 = vst [vmem:[#allocation16_spill] sm:$0xff] %v12446_v34  ;;  %v1523_v44 = vand.u32 4294901760, %v1477_v24 }
  0x7e   : > { %10460 = vmatpush1.bf16.msra.mxu1 %v12435_v43  ;;  %16808 = vst [vmem:[#allocation18_spill] sm:$0xff] %v12460_v54  ;;  %16809 = vst [vmem:[#allocation19_spill] sm:$0xff] %v12462_v33  ;;  %v12469_v51 = vpack.c.bf16 %v1519_v16, %v1515_v2  ;;  %v12471_v43 = vsub.f32 %v1475_v14, %v1519_v16  ;;  %v1667_v2 = vsub.f32 %v12450_v9, %v16306_v10 }
  0x7f   : > { %10312 = vmatpush3.bf16.msra.mxu0 %v12312_v50  ;;  %v1661_v50 = vsub.f32 %v12428_v49, %v16303_v59  ;;  %10462 = vmatprep.subr.bf16.mxu1 %v12446_v34  ;;  %v12482_v16 = vsub.f32 %v1478_v4, %v1521_v25  ;;  %v16814_v5 = vand.u32 4294901760, %v12462_v33  ;;  %v12496_v14 = vpack.c.bf16 %v1525_v6, %v1521_v25  ;;  %v1482_v4 = vld [vmem:[%s16275_s2 + $0x88] sm:$0xff] }
  0x80   : > { %10314 = vmatprep.subr.bf16.mxu0 %v12118_v15  ;;  %16810 = vst [vmem:[#allocation20_spill] sm:$0xff] %v12471_v43  ;;  %v16815_v0 = vand.u32 4294901760, %v12471_v43  ;;  %v12505_v9 = vsub.f32 %v1480_v17, %v1525_v6  ;;  %v12508_v25 = vsub.f32 %v1477_v24, %v1523_v44  ;;  %v1529_v6 = vand.u32 4294901760, %v1482_v4 }
  0x81   : > { %v1662_v59 = vand.u32 4294901760, %v1661_v50  ;;  %16811 = vst [vmem:[#allocation21_spill] sm:$0xff] %v12482_v16  ;;  %v1479_v50 = vld [vmem:[%s16275_s2 + $0x70] sm:$0xff]  ;;  %v1673_v10 = vsub.f32 %v12462_v33, %v16814_v5  ;;  %v1484_v33 = vld [vmem:[%s16275_s2 + $0x98] sm:$0xff] }
  0x82   : > { %9870 = vmatmul.mubr.f32.vlgmr.msra.gmra.mrb[0].mxu0 %v12158_v40  ;;  %16816 = vst [vmem:[#allocation23_spill] sm:$0xff] %v12505_v9  ;;  %v1527_v5 = vand.u32 4294901760, %v1479_v50  ;;  %16817 = vst [vmem:[#allocation24_spill] sm:$0xff] %v12508_v25  ;;  %v1533_v49 = vand.u32 4294901760, %v1484_v33 }
  0x83   : > { %10316 = vmatpush3.bf16.msra.mxu0 %v12118_v15  ;;  %9888 = vmatprep.mubr.f32.mxu0 %v12148_v35  ;;  %v12488_v20 = vpack.c.bf16 %v1662_v59, %v1650_v61  ;;  %v16813_v15 = vand.u32 4294901760, %v12460_v54  ;;  %v1668_v35 = vand.u32 4294901760, %v1667_v2  ;;  %v1685_v59 = vsub.f32 %v12471_v43, %v16815_v0 }
  0x84   : > { %10318 = vmatprep.subr.bf16.mxu0 %v12125_v19  ;;  %v16316_v61 = vand.u32 4294901760, %v12482_v16 }
  0x85   : > { %16812 = vst [vmem:[#allocation22_spill] sm:$0xff] %v12488_v20  ;;  %v1679_v34 = vsub.f32 %v12460_v54, %v16813_v15  ;;  %10464 = vmatpush1.bf16.msra.mxu1 %v12488_v20  ;;  %v1674_v54 = vand.u32 4294901760, %v1673_v10  ;;  %v1686_v2 = vand.u32 4294901760, %v1685_v59  ;;  %v12524_v10 = vpack.c.bf16 %v1527_v5, %v1523_v44 }
  0x86   : > { %v1691_v0 = vsub.f32 %v12482_v16, %v16316_v61  ;;  %v12527_v59 = vsub.f32 %v1479_v50, %v1527_v5  ;;  %v1483_v61 = vld [vmem:[%s16275_s2 + $0x90] sm:$0xff]  ;;  %v16821_v16 = vand.u32 4294901760, %v12505_v9  ;;  %v12542_v50 = vsub.f32 %v1482_v4, %v1529_v6 }
  0x87   : > { %v1680_v15 = vand.u32 4294901760, %v1679_v34  ;;  %10320 = vmatpush3.bf16.msra.mxu0 %v12125_v19  ;;  %v1481_v34 = vld [vmem:[%s16275_s2 + $0x80] sm:$0xff]  ;;  %v16324_v19 = vand.u32 4294901760, %v12508_v25  ;;  %v12532_v17 = vpack.c.bf16 %v1686_v2, %v1674_v54  ;;  %v12546_v5 = vpack.c.bf16 %v1533_v49, %v1529_v6 }
  0x88   : > { %10322 = vmatprep.subr.bf16.mxu0 %v12131_v23  ;;  %16819 = vst [vmem:[#allocation26_spill] sm:$0xff] %v12527_v59  ;;  %v1692_v20 = vand.u32 4294901760, %v1691_v0  ;;  %v1703_v43 = vsub.f32 %v12505_v9, %v16821_v16  ;;  %v16327_v44 = vand.u32 4294901760, %v12527_v59  ;;  %16822 = vst [vmem:[#allocation28_spill] sm:$0xff] %v12542_v50  ;;  %v12548_v16 = vsub.f32 %v1484_v33, %v1533_v49  ;;  %v1486_v0 = vld [vmem:[%s16275_s2 + $0xa8] sm:$0xff]  ;;  %v1485_v49 = vld [vmem:[%s16275_s2 + $0xa0] sm:$0xff] }
  0x89   : > { %v12522_v24 = vpack.c.bf16 %v1680_v15, %v1668_v35  ;;  %16820 = vst [vmem:[#allocation27_spill] sm:$0xff] %v12532_v17  ;;  %v1697_v35 = vsub.f32 %v12508_v25, %v16324_v19  ;;  %v1531_v15 = vand.u32 4294901760, %v1481_v34  ;;  %v1535_v2 = vand.u32 4294901760, %v1483_v61 }
  0x8a   : > { %v1704_v54 = vand.u32 4294901760, %v1703_v43  ;;  %16823 = vst [vmem:[#allocation29_spill] sm:$0xff] %v12548_v16  ;;  %v1709_v4 = vsub.f32 %v12527_v59, %v16327_v44  ;;  %v1488_v43 = vld [vmem:[%s16275_s2 + $0xb8] sm:$0xff]  ;;  %v16334_v6 = vand.u32 4294901760, %v12548_v16  ;;  %v1537_v25 = vand.u32 4294901760, %v1486_v0 }
  0x8b   : > { %16818 = vst [vmem:[#allocation25_spill] sm:$0xff] %v12522_v24  ;;  %10466 = vmatprep.subr.bf16.mxu1 %v12522_v24  ;;  %10324 = vmatpush3.bf16.msra.mxu0 %v12131_v23  ;;  %v1698_v19 = vand.u32 4294901760, %v1697_v35  ;;  %v16332_v23 = vand.u32 4294901760, %v12542_v50  ;;  %v12569_v35 = vpack.c.bf16 %v1535_v2, %v1531_v15  ;;  %v12571_v24 = vsub.f32 %v1483_v61, %v1535_v2 }
  0x8c   : > { %10468 = vmatpush1.bf16.msra.mxu1 %v12532_v17  ;;  %10326 = vmatprep.subr.bf16.mxu0 %v12172_v47  ;;  %v12558_v17 = vsub.f32 %v1481_v34, %v1531_v15  ;;  %v12566_v33 = vpack.c.bf16 %v1704_v54, %v1692_v20  ;;  %v1710_v44 = vand.u32 4294901760, %v1709_v4  ;;  %v1727_v20 = vsub.f32 %v12548_v16, %v16334_v6  ;;  %v1487_v54 = vld [vmem:[%s16275_s2 + $0xb0] sm:$0xff]  ;;  %v1490_v6 = vld [vmem:[%s16275_s2 + $0xc8] sm:$0xff] }
  0x8d   : > { %16826 = vst [vmem:[#allocation32_spill] sm:$0xff] %v12571_v24  ;;  %v1715_v34 = vsub.f32 %v12542_v50, %v16332_v23  ;;  %v1541_v61 = vand.u32 4294901760, %v1488_v43  ;;  %v1539_v2 = vand.u32 4294901760, %v1485_v49  ;;  %v16829_v16 = vand.u32 4294901760, %v12571_v24 }
  0x8e   : > { %16824 = vst [vmem:[#allocation30_spill] sm:$0xff] %v12558_v17  ;;  %16825 = vst [vmem:[#allocation31_spill] sm:$0xff] %v12566_v33  ;;  %v16341_v59 = vand.u32 4294901760, %v12558_v17  ;;  %10470 = vmatprep.subr.bf16.mxu1 %v12566_v33  ;;  %v12587_v4 = vpack.c.bf16 %v1710_v44, %v1698_v19  ;;  %v12592_v33 = vsub.f32 %v1486_v0, %v1537_v25  ;;  %v1728_v15 = vand.u32 4294901760, %v1727_v20  ;;  %v1492_v20 = vld [vmem:[%s16275_s2 + $0xd8] sm:$0xff] }
  0x8f   : > { %10328 = vmatpush3.bf16.msra.mxu0 %v12172_v47  ;;  %v1716_v23 = vand.u32 4294901760, %v1715_v34  ;;  %v1733_v50 = vsub.f32 %v12571_v24, %v16829_v16  ;;  %v12600_v9 = vpack.c.bf16 %v1541_v61, %v1537_v25  ;;  %v12602_v19 = vsub.f32 %v1488_v43, %v1541_v61 }
  0x90   : > { %10330 = vmatprep.subr.bf16.mxu0 %v12314_v3  ;;  %16827 = vst [vmem:[#allocation33_spill] sm:$0xff] %v12587_v4  ;;  %v1721_v47 = vsub.f32 %v12558_v17, %v16341_v59  ;;  %16828 = vst [vmem:[#allocation34_spill] sm:$0xff] %v12592_v33  ;;  %10472 = vmatpush1.bf16.msra.mxu1 %v12587_v4  ;;  %v16347_v0 = vand.u32 4294901760, %v12592_v33  ;;  %v1543_v34 = vand.u32 4294901760, %v1487_v54  ;;  %v16832_v25 = vand.u32 4294901760, %v12293_v22 }
  0x91   : > { %16830 = vst [vmem:[#allocation35_spill] sm:$0xff] %v12602_v19  ;;  %v12607_v59 = vsub.f32 %v1485_v49, %v1539_v2  ;;  %v12615_v16 = vpack.c.bf16 %v1728_v15, %v1716_v23  ;;  %v1734_v43 = vand.u32 4294901760, %v1733_v50  ;;  %v16348_v61 = vand.u32 4294901760, %v12602_v19  ;;  %v1489_v49 = vld [vmem:[%s16275_s2 + $0xc0] sm:$0xff] }
  0x92   : > { %9889 = vmatmul.mubr.f32.vlgmr.msra.gmra.mrb[0].mxu0 %v12158_v40  ;;  %v1722_v44 = vand.u32 4294901760, %v1721_v47  ;;  %v1545_v47 = vand.u32 4294901760, %v1490_v6  ;;  %v1739_v4 = vsub.f32 %v12592_v33, %v16347_v0  ;;  %v12625_v40 = vpack.c.bf16 %v1543_v34, %v1539_v2  ;;  %v1491_v2 = vld [vmem:[%s16275_s2 + $0xd0] sm:$0xff] }
  0x93   : > { %16831 = vst [vmem:[#allocation36_spill] sm:$0xff] %v12607_v59  ;;  %10332 = vmatpush3.bf16.msra.mxu0 %v12314_v3  ;;  %9907 = vmatprep.mubr.f32.mxu0 %v16832_v25  ;;  %16833 = vst [vmem:[#allocation37_spill] sm:$0xff] %v12615_v16  ;;  %v16350_v22 = vand.u32 4294901760, %v12607_v59  ;;  %v12628_v23 = vsub.f32 %v1487_v54, %v1543_v34  ;;  %v1751_v15 = vsub.f32 %v12602_v19, %v16348_v61 }
  0x94   : > { %10334 = vmatprep.subr.bf16.mxu0 %v12316_v29  ;;  %10474 = vmatprep.subr.bf16.mxu1 %v12615_v16  ;;  %v12631_v50 = vpack.c.bf16 %v1734_v43, %v1722_v44  ;;  %v1549_v25 = vand.u32 4294901760, %v1492_v20  ;;  %v12636_v24 = vsub.f32 %v1490_v6, %v1545_v47  ;;  %v1740_v0 = vand.u32 4294901760, %v1739_v4  ;;  %v1494_v43 = vld [vmem:[%s16275_s2 + $0xe8] sm:$0xff] }
  0x95   : > { %16834 = vst [vmem:[#allocation38_spill] sm:$0xff] %v12628_v23  ;;  %v1745_v54 = vsub.f32 %v12607_v59, %v16350_v22  ;;  %v16360_v34 = vand.u32 4294901760, %v12628_v23  ;;  %v1547_v44 = vand.u32 4294901760, %v1489_v49  ;;  %v1752_v6 = vand.u32 4294901760, %v1751_v15  ;;  %v1496_v15 = vld [vmem:[%s16275_s2 + $0xf8] sm:$0xff] }
  0x96   : > { %16835 = vst [vmem:[#allocation39_spill] sm:$0xff] %v12631_v50  ;;  %16836 = vst [vmem:[#allocation40_spill] sm:$0xff] %v12636_v24  ;;  %10476 = vmatpush1.bf16.msra.mxu1 %v12631_v50  ;;  %v12650_v61 = vpack.c.bf16 %v1549_v25, %v1545_v47  ;;  %v16361_v4 = vand.u32 4294901760, %v12636_v24  ;;  %v12653_v16 = vsub.f32 %v1492_v20, %v1549_v25  ;;  %v1551_v19 = vand.u32 4294901760, %v1491_v2 }
  0x97   : > { %10336 = vmatpush3.bf16.msra.mxu0 %v12316_v29  ;;  %v1746_v22 = vand.u32 4294901760, %v1745_v54  ;;  %v1757_v59 = vsub.f32 %v12628_v23, %v16360_v34  ;;  %v12659_v33 = vsub.f32 %v1489_v49, %v1547_v44  ;;  %v12664_v47 = vpack.c.bf16 %v1752_v6, %v1740_v0 }
  0x98   : > { %16837 = vst [vmem:[#allocation41_spill] sm:$0xff] %v12653_v16  ;;  %10338 = vmatprep.subr.bf16.mxu0 %v12318_v30  ;;  %v1763_v20 = vsub.f32 %v12636_v24, %v16361_v4  ;;  %v16365_v25 = vand.u32 4294901760, %v12653_v16  ;;  %v1553_v54 = vand.u32 4294901760, %v1494_v43  ;;  %v12670_v17 = vpack.c.bf16 %v1551_v19, %v1547_v44 }
  0x99   : > { %16838 = vst [vmem:[#allocation42_spill] sm:$0xff] %v12664_v47  ;;  %v1758_v50 = vand.u32 4294901760, %v1757_v59  ;;  %v16370_v34 = vand.u32 4294901760, %v12659_v33  ;;  %v12673_v49 = vsub.f32 %v1491_v2, %v1551_v19  ;;  %10478 = vmatprep.subr.bf16.mxu1 %v12664_v47  ;;  %v1557_v4 = vand.u32 4294901760, %v1496_v15 }
  0x9a   : > { %v1764_v0 = vand.u32 4294901760, %v1763_v20  ;;  %v1775_v6 = vsub.f32 %v12653_v16, %v16365_v25  ;;  %v12680_v24 = vsub.f32 %v1494_v43, %v1553_v54  ;;  %v1030_v59 = vand.u32 4294901760, %v12363_v13 }
  0x9b   : > { %10340 = vmatpush3.bf16.msra.mxu0 %v12318_v30  ;;  %v12684_v44 = vpack.c.bf16 %v1758_v50, %v1746_v22  ;;  %v1769_v19 = vsub.f32 %v12659_v33, %v16370_v34  ;;  %v16371_v2 = vand.u32 4294901760, %v12673_v49  ;;  %v12690_v47 = vpack.c.bf16 %v1557_v4, %v1553_v54 }
  0x9c   : > { %10342 = vmatprep.subr.bf16.mxu0 %v12320_v38  ;;  %v1776_v20 = vand.u32 4294901760, %v1775_v6  ;;  %v16372_v25 = vand.u32 4294901760, %v12680_v24  ;;  %v12693_v16 = vsub.f32 %v1496_v15, %v1557_v4  ;;  %v972_v43 = vand.u32 4294901760, %v12352_v27 }
  0x9d   : > { %16839 = vst [vmem:[#allocation43_spill] sm:$0xff] %v12684_v44  ;;  %v1011_v23 = vand.u32 4294901760, %v12327_v42  ;;  %10480 = vmatpush1.bf16.msra.mxu1 %v12684_v44  ;;  %v1770_v22 = vand.u32 4294901760, %v1769_v19  ;;  %v1781_v50 = vsub.f32 %v12673_v49, %v16371_v2  ;;  %v16840_v54 = vand.u32 4294901760, %v12282_v21  ;;  %v16874_v44 = vld [vmem:[#allocation23_spill] sm:$0xff] }
  0x9e   : > { %v16841_v6 = vand.u32 4294901760, %v12287_v26  ;;  %v12706_v4 = vpack.c.bf16 %v1776_v20, %v1764_v0  ;;  %v1787_v42 = vsub.f32 %v12680_v24, %v16372_v25  ;;  %v16375_v27 = vand.u32 4294901760, %v12693_v16 }
  0x9f   : > { %10344 = vmatpush3.bf16.msra.mxu0 %v12320_v38  ;;  %v1018_v15 = vand.u32 4294901760, %v12336_v53  ;;  %v16843_v19 = vand.u32 4294901760, %v12296_v32  ;;  %v1031_v21 = vsub.f32 %v12363_v13, %v1030_v59  ;;  %v1782_v26 = vand.u32 4294901760, %v1781_v50 }
  0xa0   : > { %v10349_v34 = vpack.c.bf16 %v16841_v6, %v16840_v54  ;;  %16842 = vst [vmem:[#allocation44_spill] sm:$0xff] %v12706_v4  ;;  %10346 = vmatprep.subr.bf16.mxu0 %v12331_v52  ;;  %10482 = vmatprep.subr.bf16.mxu1 %v12706_v4  ;;  %v1788_v0 = vand.u32 4294901760, %v1787_v42  ;;  %v1799_v20 = vsub.f32 %v12693_v16, %v16375_v27  ;;  %v16848_v42 = vand.u32 4294901760, %v12237_v39 }
  0xa1   : > { %v1024_v2 = vsub.f32 %v12296_v32, %v16843_v19  ;;  %v12724_v54 = vpack.c.bf16 %v1782_v26, %v1770_v22  ;;  %v10353_v6 = vpack.c.bf16 %v1018_v15, %v1011_v23  ;;  %v1032_v25 = vand.u32 4294901760, %v1031_v21 }
  0xa2   : > { %9908 = vmatmul.mubr.f32.vlgmr.msra.gmra.mrb[0].mxu0 %v972_v43  ;;  %v1800_v53 = vand.u32 4294901760, %v1799_v20  ;;  %v10365_v23 = vpack.c.bf16 %v12247_v57, %v12245_v56  ;;  %v16847_v22 = vand.u32 4294901760, %v12232_v36  ;;  %v16850_v21 = vand.u32 4294901760, %v12247_v57  ;;  %v1495_v57 = vld [vmem:[%s16275_s2 + $0xf0] sm:$0xff] }
  0xa3   : > { %16844 = vst [vmem:[#allocation45_spill] sm:$0xff] %v12724_v54  ;;  %10348 = vmatpush3.bf16.msra.mxu0 %v12331_v52  ;;  %9926 = vmatprep.mubr.f32.mxu0 %v12235_v37  ;;  %v1025_v19 = vand.u32 4294901760, %v1024_v2  ;;  %v10361_v52 = vpack.c.bf16 %v12237_v39, %v12232_v36  ;;  %v16846_v2 = vand.u32 4294901760, %v12250_v58  ;;  %v16852_v36 = vand.u32 4294901760, %v12262_v8 }
  0xa4   : > { %10350 = vmatprep.subr.bf16.mxu0 %v10349_v34  ;;  %10484 = vmatpush1.bf16.msra.mxu1 %v12724_v54  ;;  %v12729_v50 = vpack.c.bf16 %v1800_v53, %v1788_v0  ;;  %v10393_v15 = vpack.c.bf16 %v16848_v42, %v16847_v22  ;;  %v16851_v0 = vand.u32 4294901760, %v12272_v12  ;;  %v16853_v39 = vand.u32 4294901760, %v12268_v11 }
  0xa5   : > { %v10357_v43 = vpack.c.bf16 %v1032_v25, %v1025_v19  ;;  %v10373_v25 = vpack.c.bf16 %v12363_v13, %v12296_v32  ;;  %v16854_v53 = vand.u32 4294901760, %v12296_v32  ;;  %v16376_v19 = vmov 0.0  }
  0xa6   : > { %16845 = vst [vmem:[#allocation46_spill] sm:$0xff] %v12729_v50  ;;  %10486 = vmatprep.subr.bf16.mxu1 %v12729_v50  ;;  %v10401_v20 = vpack.c.bf16 %v16853_v39, %v16852_v36  ;;  %1840 = vmatprep.mubr.f32.mxu1 %v16376_v19  ;;  %v16872_v4 = vmov 0.0  }
  0xa7   : > { %10352 = vmatpush3.bf16.msra.mxu0 %v10349_v34  ;;  %v10369_v34 = vpack.c.bf16 %v12268_v11, %v12262_v8  ;;  %v1559_v8 = vand.u32 4294901760, %v1495_v57 }
  0xa8   : > { %10354 = vmatprep.subr.bf16.mxu0 %v10353_v6 }
  0xab   : > { %10356 = vmatpush3.bf16.msra.mxu0 %v10353_v6  ;;  %v12821_v6 = vpack.c.bf16 %v12369_v48, %v12367_v31 }
  0xac   : > { %10358 = vmatprep.subr.bf16.mxu0 %v10357_v43 }
  0xad   : > { %16858 = vst [vmem:[#allocation50_spill] sm:$0xff] %v12821_v6 }
  0xaf   : > { %10360 = vmatpush3.bf16.msra.mxu0 %v10357_v43 }
  0xb0   : > { %10362 = vmatprep.subr.bf16.mxu0 %v10361_v52 }
  0xb2   : > { %9927 = vmatmul.mubr.f32.vlgmr.msra.gmra.mrb[0].mxu0 %v12254_v62 }
  0xb3   : > { %10364 = vmatpush3.bf16.msra.mxu0 %v10361_v52  ;;  %9945 = vmatprep.mubr.f32.mxu0 %v12250_v58  ;;  %v16849_v58 = vand.u32 4294901760, %v12245_v56  ;;  %v10405_v56 = vpack.c.bf16 %v1030_v59, %v16854_v53  ;;  %v2416_v52 = vld [vmem:[#allocation2 + $0xc0] sm:$0xff] }
  0xb4   : > { %10366 = vmatprep.subr.bf16.mxu0 %v10365_v23 }
  0xb5   : > { %v10397_v26 = vpack.c.bf16 %v16850_v21, %v16849_v58 }
  0xb7   : > { %10368 = vmatpush3.bf16.msra.mxu0 %v10365_v23  ;;  %v2417_v23 = vld [vmem:[#allocation2 + $0xc8] sm:$0xff] }
  0xb8   : > { %10370 = vmatprep.subr.bf16.mxu0 %v10369_v34 }
  0xbb   : > { %10372 = vmatpush3.bf16.msra.mxu0 %v10369_v34  ;;  %v2435_v34 = vand.u32 4294901760, %v2416_v52 }
  0xbc   : > { %10374 = vmatprep.subr.bf16.mxu0 %v10373_v25 }
  0xbd   : > { %v2529_v22 = vsub.f32 %v2416_v52, %v2435_v34 }
  0xbf   : > { %10376 = vmatpush3.bf16.msra.mxu0 %v10373_v25  ;;  %v2438_v25 = vand.u32 4294901760, %v2417_v23 }
  0xc0   : > { %10378 = vmatprep.subr.bf16.mxu0 %v12314_v3 }
  0xc1   : > { %v2536_v42 = vsub.f32 %v2417_v23, %v2438_v25 }
  0xc2   : > { %9946 = vmatmul.mubr.f32.vlgmr.msra.gmra.mrb[0].mxu0 %v12272_v12  ;;  %v12806_v12 = vsub.f32 %v1495_v57, %v1559_v8 }
  0xc3   : > { %10380 = vmatpush3.bf16.msra.mxu0 %v12314_v3  ;;  %9964 = vmatprep.mubr.f32.mxu0 %v16846_v2  ;;  %v12829_v2 = vpack.c.bf16 %v2438_v25, %v2435_v34  ;;  %v2537_v58 = vand.u32 4294901760, %v2536_v42  ;;  %v12838_v53 = vpack.c.bf16 %v2536_v42, %v2529_v22 }
  0xc4   : > { %10382 = vmatprep.subr.bf16.mxu0 %v12316_v29  ;;  %16856 = vst [vmem:[#allocation48_spill] sm:$0xff] %v12806_v12 }
  0xc7   : > { %10384 = vmatpush3.bf16.msra.mxu0 %v12316_v29 }
  0xc8   : > { %10386 = vmatprep.subr.bf16.mxu0 %v12318_v30 }
  0xcb   : > { %10388 = vmatpush3.bf16.msra.mxu0 %v12318_v30 }
  0xcc   : > { %10390 = vmatprep.subr.bf16.mxu0 %v12320_v38 }
  0xcf   : > { %10392 = vmatpush3.bf16.msra.mxu0 %v12320_v38 }
  0xd0   : > { %10394 = vmatprep.subr.bf16.mxu0 %v10393_v15 }
  0xd2   : > { %9965 = vmatmul.mubr.f32.vlgmr.msra.gmra.mrb[0].mxu0 %v16851_v0 }
  0xd3   : > { %10396 = vmatpush3.bf16.msra.mxu0 %v10393_v15  ;;  %9983 = vmatprep.mubr.f32.mxu0 %v12235_v37  ;;  %v2530_v15 = vand.u32 4294901760, %v2529_v22 }
  0xd4   : > { %10398 = vmatprep.subr.bf16.mxu0 %v10397_v26 }
  0xd5   : > { %v2531_v21 = vsub.f32 %v2529_v22, %v2530_v15  ;;  %v12853_v22 = vpack.c.bf16 %v12381_v60, %v12371_v7 }
  0xd7   : > { %10400 = vmatpush3.bf16.msra.mxu0 %v10397_v26  ;;  %v2538_v26 = vsub.f32 %v2536_v42, %v2537_v58  ;;  %v2532_v0 = vand.u32 4294901760, %v2531_v21  ;;  %16861 = vst [vmem:[#allocation53_spill] sm:$0xff] %v12853_v22 }
  0xd8   : > { %10402 = vmatprep.subr.bf16.mxu0 %v10401_v20 }
  0xd9   : > { %v2539_v36 = vand.u32 4294901760, %v2538_v26 }
  0xdb   : > { %10404 = vmatpush3.bf16.msra.mxu0 %v10401_v20  ;;  %v12832_v39 = vpack.c.bf16 %v2539_v36, %v2532_v0  ;;  %v2418_v36 = vld [vmem:[#allocation2 + $0xd0] sm:$0xff] }
  0xdc   : > { %10406 = vmatprep.subr.bf16.mxu0 %v10405_v56 }
  0xdf   : > { %10408 = vmatpush3.bf16.msra.mxu0 %v10405_v56  ;;  %v12840_v56 = vpack.c.bf16 %v2537_v58, %v2530_v15  ;;  %v12859_v15 = vpack.c.bf16 %v12390_v45, %v12385_v63 }
  0xe0   : > { %10410 = vmatprep.subr.bf16.mxu0 %v12314_v3 }
  0xe1   : > { %16859 = vst [vmem:[#allocation51_spill] sm:$0xff] %v12840_v56  ;;  %16863 = vst [vmem:[#allocation55_spill] sm:$0xff] %v12859_v15 }
  0xe2   : > { %9984 = vmatmul.mubr.f32.vlgmr.msra.gmra.mrb[0].mxu0 %v12254_v62 }
  0xe3   : > { %10412 = vmatpush3.bf16.msra.mxu0 %v12314_v3  ;;  %10002 = vmatprep.mubr.f32.mxu0 %v12235_v37  ;;  %v1493_v37 = vld [vmem:[%s16275_s2 + $0xe0] sm:$0xff]  ;;  %v16373_v3 = vand.u32 4294901760, %v12806_v12 }
  0xe4   : > { %10414 = vmatprep.subr.bf16.mxu0 %v12316_v29 }
  0xe7   : > { %10416 = vmatpush3.bf16.msra.mxu0 %v12316_v29 }
  0xe8   : > { %10418 = vmatprep.subr.bf16.mxu0 %v12318_v30 }
  0xeb   : > { %10420 = vmatpush3.bf16.msra.mxu0 %v12318_v30  ;;  %v1805_v30 = vsub.f32 %v12806_v12, %v16373_v3  ;;  %v2421_v3 = vld [vmem:[#allocation2 + $0xe8] sm:$0xff] }
  0xec   : > { %10422 = vmatprep.subr.bf16.mxu0 %v12320_v38  ;;  %v2450_v50 = vand.u32 4294901760, %v2421_v3 }
  0xed   : > { %v1806_v13 = vand.u32 4294901760, %v1805_v30 }
  0xef   : > { %10424 = vmatpush3.bf16.msra.mxu0 %v12320_v38 }
  0xf0   : > { %10426 = vmatprep.subr.bf16.mxu0 %v12365_v28 }
  0xf2   : > { %10003 = vmatmul.mubr.f32.vlgmr.msra.gmra.mrb[0].mxu0 %v12254_v62  ;;  %v1555_v62 = vand.u32 4294901760, %v1493_v37 }
  0xf3   : > { %10428 = vmatpush1.bf16.msra.mxu0 %v12379_v18  ;;  %1593 = vmatprep.mubr.f32.mxu0 %v16376_v19 }
  0xf4   : > { %10430 = vmatprep.subr.bf16.mxu0 %v12383_v55  ;;  %v12804_v11 = vsub.f32 %v1493_v37, %v1555_v62  ;;  %v12826_v43 = vpack.c.bf16 %v1559_v8, %v1555_v62  ;;  %v11978_v37 = vld [vmem:[%s12113_s18] sm:$0xff]  ;;  %v11979_v62 = vld [vmem:[%s12113_s18 + $0x8] sm:$0xff] }
  0xf5   : > { %v2425_v57 = vrot.slane %v11978_v37, 2  ;;  %v2426_v8 = vrot.slane %v11979_v62, 2  ;;  %v2419_v37 = vld [vmem:[#allocation2 + $0xd8] sm:$0xff] }
  0xf6   : > { %16855 = vst [vmem:[#allocation47_spill] sm:$0xff] %v12804_v11  ;;  %v16374_v32 = vand.u32 4294901760, %v12804_v11  ;;  %v12836_v20 = vpack.c.bf16 %v12806_v12, %v12804_v11  ;;  %v2444_v27 = vand.u32 4294901760, %v2419_v37  ;;  %v2422_v12 = vld [vmem:[#allocation2 + $0xf0] sm:$0xff] }
  0xf7   : > { %10432 = vmatpush1.bf16.msra.mxu0 %v12410_v41 }
  0xf8   : > { %10434 = vmatprep.subr.bf16.mxu0 %v12448_v46  ;;  %v1793_v29 = vsub.f32 %v12804_v11, %v16374_v32  ;;  %v2441_v32 = vand.u32 4294901760, %v2418_v36  ;;  %v2423_v11 = vld [vmem:[#allocation2 + $0xf8] sm:$0xff]  ;;  %v12909_v56 = vsub.f32 %v2419_v37, %v2444_v27 }
  0xf9   : > { %v2456_v37 = vand.u32 4294901760, %v2423_v11 }
  0xfa   : > { %v1794_v38 = vand.u32 4294901760, %v1793_v29  ;;  %v2427_v29 = vsel %vm2424_vm2, %v2425_v57, %v2426_v8  ;;  %v16864_v57 = vld [vmem:[#allocation13_spill] sm:$0xff]  ;;  %v12898_v54 = vsub.f32 %v2418_v36, %v2441_v32 }
  0xfb   : > { %10436 = vmatpush1.bf16.msra.mxu0 %v12469_v51  ;;  %v2430_v30 = vsel %vm296_vm1, %v2427_v29, 0  ;;  %v12876_v62 = vpack.c.bf16 %v16864_v57, %v12412_v1  ;;  %v16897_v57 = vld [vmem:[#allocation41_spill] sm:$0xff] }
  0xfc   : > { %10438 = vmatprep.subr.bf16.mxu0 %v12496_v14  ;;  %v12816_v59 = vpack.c.bf16 %v1806_v13, %v1794_v38  ;;  %v11980_v38 = vld [vmem:[%s12113_s18 + $0x10] sm:$0x3]  ;;  %v12847_v52 = vand.u32 4294901760, %v2430_v30 }
  0xfd   : > { %v2428_v13 = vrot.slane %v11980_v38, 2  ;;  %16865 = vst [vmem:[#allocation56_spill] sm:$0xff] %v12876_v62  ;;  %v16866_v38 = vld [vmem:[#allocation17_spill] sm:$0xff] }
  0xfe   : > { %16857 = vst [vmem:[#allocation49_spill] sm:$0xff] %v12816_v59  ;;  %10488 = vmatpush1.bf16.msra.mxu1 %v12816_v59  ;;  %v12866_v26 = vsub.f32 %v2430_v30, %v12847_v52 }
  0xff   : > { %10440 = vmatpush1.bf16.msra.mxu0 %v12524_v10  ;;  %10490 = vmatprep.subr.bf16.mxu1 %v12821_v6  ;;  %v2429_v58 = vsel %vm2424_vm2, %v2426_v8, %v2428_v13  ;;  %v16867_v13 = vld [vmem:[#allocation18_spill] sm:$0xff] }
 0x100   : > { %10442 = vmatprep.subr.bf16.mxu0 %v12546_v5  ;;  %v2432_v8 = vsel %vm296_vm1, %v2429_v58, 0  ;;  %v16877_v36 = vand.u32 4294901760, %v12866_v26 }
 0x101   : > { %v12891_v29 = vand.u32 4294901760, %v2432_v8 }
 0x103   : > { %10444 = vmatpush1.bf16.msra.mxu0 %v12569_v35 }
 0x104   : > { %10446 = vmatprep.subr.bf16.mxu0 %v12600_v9 }
 0x107   : > { %10448 = vmatpush1.bf16.msra.mxu0 %v12625_v40 }
 0x108   : > { %10450 = vmatprep.subr.bf16.mxu0 %v12650_v61 }
 0x10b   : > { %10452 = vmatpush1.bf16.msra.mxu0 %v12670_v17 }
 0x10c   : > { %10454 = vmatprep.subr.bf16.mxu0 %v12690_v47 }
 0x10f   : > { %10456 = vmatpush1.bf16.msra.mxu0 %v12826_v43 }
 0x110   : > { %10618 = vmatprep.subr.bf16.mxu0 %v12829_v2 }
 0x1c5   : > { %v10004_v23 = vpop.f32.mrb[0].mxu0 }
 0x1c6   : > { %v12849_v34 = vand.u32 4294901760, %v10004_v23  ;;  %v1455_v25 = vpop.f32.mrb[1].mxu0 }
 0x1c7   : > { %v12855_v42 = vand.u32 4294901760, %v1455_v25 }
 0x1c8   : > { %16860 = vst [vmem:[#allocation52_spill] sm:$0xff] %v12849_v34  ;;  %v12863_v21 = vsub.f32 %v10004_v23, %v12849_v34  ;;  %v12884_v23 = vpack.c.bf16 %v16867_v13, %v16866_v38 }
 0x1c9   : > { %16862 = vst [vmem:[#allocation54_spill] sm:$0xff] %v12855_v42  ;;  %v12869_v0 = vsub.f32 %v1455_v25, %v12855_v42  ;;  %1842 = vmatmul.mubr.f32.vlgmr.msra.gmra.mrb[0].mxu1 %v12855_v42  ;;  %v2420_v25 = vld [vmem:[#allocation2 + $0xe0] sm:$0xff] }
 0x1ca   : > { %10492 = vmatpush1.bf16.msra.mxu1 %v12853_v22  ;;  %1847 = vmatprep.mubr.f32.mxu1 %v16376_v19  ;;  %16868 = vst [vmem:[#allocation57_spill] sm:$0xff] %v12884_v23  ;;  %v16870_v22 = vld [vmem:[#allocation20_spill] sm:$0xff]  ;;  %v2447_v59 = vand.u32 4294901760, %v2420_v25  ;;  %v16876_v42 = vand.u32 4294901760, %v12863_v21 }
 0x1cb   : > { %v16385_v30 = vand.u32 4294901760, %v12869_v0  ;;  %10494 = vmatprep.subr.bf16.mxu1 %v12859_v15  ;;  %v16869_v15 = vld [vmem:[#allocation19_spill] sm:$0xff] }
 0x1cc   : > { %v12896_v6 = vpack.c.bf16 %v16870_v22, %v16869_v15  ;;  %v12911_v22 = vpack.c.bf16 %v2444_v27, %v2441_v32  ;;  %v16879_v15 = vld [vmem:[#allocation26_spill] sm:$0xff]  ;;  %v12929_v27 = vpack.c.bf16 %v2450_v50, %v2447_v59  ;;  %v2453_v32 = vand.u32 4294901760, %v2422_v12 }
 0x1cd   : > { %v1597_v58 = vsub.f32 %v12869_v0, %v16385_v30  ;;  %1849 = vmatmul.mubr.f32.gmra.mrb[2].mxu1 %v12849_v34  ;;  %v16873_v30 = vld [vmem:[#allocation21_spill] sm:$0xff] }
 0x1ce   : > { %10496 = vmatpush1.bf16.msra.mxu1 %v12876_v62  ;;  %16871 = vst [vmem:[#allocation58_spill] sm:$0xff] %v12896_v6  ;;  %1983 = vmatprep.mubr.f32.mxu1 %v16872_v4  ;;  %v12904_v34 = vpack.c.bf16 %v16874_v44, %v16873_v30  ;;  %v1608_v62 = vsub.f32 %v12863_v21, %v16876_v42  ;;  %v16881_v44 = vld [vmem:[#allocation28_spill] sm:$0xff]  ;;  %v16882_v30 = vld [vmem:[#allocation29_spill] sm:$0xff] }
 0x1cf   : > { %v1598_v19 = vand.u32 4294901760, %v1597_v58  ;;  %10498 = vmatprep.subr.bf16.mxu1 %v12884_v23  ;;  %v2510_v58 = vsub.f32 %v12866_v26, %v16877_v36  ;;  %v16878_v23 = vld [vmem:[#allocation24_spill] sm:$0xff]  ;;  %v12922_v38 = vpack.c.bf16 %v16882_v30, %v16881_v44  ;;  %v12925_v42 = vsub.f32 %v2432_v8, %v12891_v29  ;;  %v16888_v30 = vld [vmem:[#allocation35_spill] sm:$0xff] }
 0x1d0   : > { %16875 = vst [vmem:[#allocation59_spill] sm:$0xff] %v12904_v34  ;;  %v12918_v13 = vpack.c.bf16 %v16879_v15, %v16878_v23  ;;  %v1609_v36 = vand.u32 4294901760, %v1608_v62  ;;  %v12935_v44 = vsub.f32 %v2420_v25, %v2447_v59  ;;  %v12937_v8 = vsub.f32 %v2421_v3, %v2450_v50  ;;  %v16885_v23 = vld [vmem:[#allocation32_spill] sm:$0xff]  ;;  %v16887_v62 = vld [vmem:[#allocation34_spill] sm:$0xff] }
 0x1d1   : > { %1599 = vmatmul.mubr.f32.vlgmr.msra.gmra.mrb[2].mxu0 %v1598_v19  ;;  %16883 = vst [vmem:[#allocation61_spill] sm:$0xff] %v12922_v38  ;;  %v16884_v19 = vld [vmem:[#allocation30_spill] sm:$0xff]  ;;  %v12949_v59 = vpack.c.bf16 %v16888_v30, %v16887_v62  ;;  %v12951_v50 = vpack.c.bf16 %v2456_v37, %v2453_v32  ;;  %v16890_v3 = vand.u32 4294901760, %v12898_v54  ;;  %v12963_v30 = vsub.f32 %v2422_v12, %v2453_v32  ;;  %v16896_v15 = vld [vmem:[#allocation40_spill] sm:$0xff] }
 0x1d2   : > { %16880 = vst [vmem:[#allocation60_spill] sm:$0xff] %v12918_v13  ;;  %10500 = vmatpush1.bf16.msra.mxu1 %v12896_v6  ;;  %10620 = vmatpush3.bf16.msra.mxu0 %v12829_v2  ;;  %v2511_v6 = vand.u32 4294901760, %v2510_v58  ;;  %v16891_v58 = vand.u32 4294901760, %v12909_v56  ;;  %v12965_v62 = vsub.f32 %v2423_v11, %v2456_v37  ;;  %v16900_v32 = vand.u32 4294901760, %v12937_v8 }
 0x1d3   : > { %1604 = vmatprep.mubr.f32.mxu0 %v16872_v4  ;;  %10502 = vmatprep.subr.bf16.mxu1 %v12904_v34  ;;  %v12945_v34 = vpack.c.bf16 %v16885_v23, %v16884_v19  ;;  %16889 = vst [vmem:[#allocation63_spill] sm:$0xff] %v12949_v59  ;;  %v2545_v25 = vsub.f32 %v12898_v54, %v16890_v3  ;;  %v16893_v3 = vld [vmem:[#allocation36_spill] sm:$0xff]  ;;  %v16894_v19 = vld [vmem:[#allocation38_spill] sm:$0xff] }
 0x1d4   : > { %10622 = vmatprep.subr.bf16.mxu0 %v12911_v22  ;;  %v2566_v37 = vsub.f32 %v12937_v8, %v16900_v32 }
 0x1d5   : > { %1610 = vmatmul.mubr.f32.gmra.mrb[4].mxu0 %v1609_v36  ;;  %16886 = vst [vmem:[#allocation62_spill] sm:$0xff] %v12945_v34  ;;  %v2552_v36 = vsub.f32 %v12909_v56, %v16891_v58  ;;  %v12974_v58 = vpack.c.bf16 %v16894_v19, %v16893_v3  ;;  %v2546_v11 = vand.u32 4294901760, %v2545_v25  ;;  %v12994_v25 = vpack.c.bf16 %v12673_v49, %v12659_v33 }
 0x1d6   : > { %10504 = vmatpush1.bf16.msra.mxu1 %v12918_v13  ;;  %10624 = vmatpush3.bf16.msra.mxu0 %v12911_v22  ;;  %v12978_v13 = vpack.c.bf16 %v16897_v57, %v16896_v15  ;;  %v2567_v19 = vand.u32 4294901760, %v2566_v37  ;;  %v16905_v37 = vand.u32 4294901760, %v12371_v7  ;;  %v16911_v7 = vld [vmem:[#allocation13_spill] sm:$0xff] }
 0x1d7   : > { %10506 = vmatprep.subr.bf16.mxu1 %v12922_v38  ;;  %10626 = vmatprep.subr.bf16.mxu0 %v12929_v27  ;;  %v16892_v38 = vand.u32 4294901760, %v12925_v42  ;;  %16895 = vst [vmem:[#allocation36_spill] sm:$0xff] %v12974_v58  ;;  %v2553_v12 = vand.u32 4294901760, %v2552_v36  ;;  %v13000_v36 = vpack.c.bf16 %v12693_v16, %v12680_v24 }
 0x1d8   : > { %10021 = vmatprep.mubr.f32.mxu0 %v2511_v6  ;;  %16898 = vst [vmem:[#allocation40_spill] sm:$0xff] %v12978_v13  ;;  %v16899_v6 = vand.u32 4294901760, %v12935_v44 }
 0x1d9   : > { %v2520_v23 = vsub.f32 %v12925_v42, %v16892_v38 }
 0x1da   : > { %10508 = vmatpush1.bf16.msra.mxu1 %v12945_v34  ;;  %10628 = vmatpush3.bf16.msra.mxu0 %v12929_v27  ;;  %v2559_v38 = vsub.f32 %v12935_v44, %v16899_v6  ;;  %v2572_v34 = vand.u32 4294901760, %v12963_v30  ;;  %v10637_v6 = vpack.c.bf16 %v2553_v12, %v2546_v11 }
 0x1db   : > { %10510 = vmatprep.subr.bf16.mxu1 %v12949_v59  ;;  %10630 = vmatprep.subr.bf16.mxu0 %v12951_v50  ;;  %v2521_v57 = vand.u32 4294901760, %v2520_v23 }
 0x1dc   : > { %v2560_v32 = vand.u32 4294901760, %v2559_v38  ;;  %v2573_v23 = vsub.f32 %v12963_v30, %v2572_v34  ;;  %v16904_v38 = vand.u32 4294901760, %v12866_v26 }
 0x1de   : > { %10512 = vmatpush1.bf16.msra.mxu1 %v12974_v58  ;;  %10632 = vmatpush3.bf16.msra.mxu0 %v12951_v50  ;;  %v16901_v58 = vand.u32 4294901760, %v12965_v62  ;;  %v2574_v11 = vand.u32 4294901760, %v2573_v23  ;;  %v16909_v23 = vand.u32 4294901760, %v12869_v0 }
 0x1df   : > { %10514 = vmatprep.subr.bf16.mxu1 %v12978_v13  ;;  %10634 = vmatprep.subr.bf16.mxu0 %v12832_v39  ;;  %v10641_v13 = vpack.c.bf16 %v2567_v19, %v2560_v32  ;;  %v16903_v19 = vand.u32 4294901760, %v12369_v48  ;;  %v16908_v48 = vand.u32 4294901760, %v12390_v45 }
 0x1e0   : > { %v2580_v59 = vsub.f32 %v12965_v62, %v16901_v58 }
 0x1e1   : > { %10022 = vmatmul.mubr.f32.vlgmr.msra.gmra.mrb[6].mxu0 %v2521_v57  ;;  %v10657_v57 = vpack.c.bf16 %v12937_v8, %v12935_v44 }
 0x1e2   : > { %10516 = vmatpush1.bf16.msra.mxu1 %v12994_v25  ;;  %10636 = vmatpush3.bf16.msra.mxu0 %v12832_v39  ;;  %v2581_v12 = vand.u32 4294901760, %v2580_v59  ;;  %v10653_v39 = vpack.c.bf16 %v12909_v56, %v12898_v54 }
 0x1e3   : > { %10518 = vmatprep.subr.bf16.mxu1 %v13000_v36  ;;  %10638 = vmatprep.subr.bf16.mxu0 %v10637_v6 }
 0x1e4   : > { %10040 = vmatprep.mubr.f32.mxu0 %v12847_v52  ;;  %v10645_v58 = vpack.c.bf16 %v2581_v12, %v2574_v11  ;;  %v16912_v11 = vand.u32 4294901760, %v16911_v7  ;;  %v16928_v7 = vand.u32 4294901760, %v12909_v56 }
 0x1e6   : > { %10520 = vmatpush1.bf16.msra.mxu1 %v12836_v20  ;;  %10640 = vmatpush3.bf16.msra.mxu0 %v10637_v6  ;;  %v16906_v6 = vand.u32 4294901760, %v12381_v60  ;;  %v16910_v60 = vand.u32 4294901760, %v12412_v1  ;;  %v16918_v1 = vld [vmem:[#allocation19_spill] sm:$0xff] }
 0x1e7   : > { %10522 = vmatprep.subr.bf16.mxu1 %v12365_v28  ;;  %10642 = vmatprep.subr.bf16.mxu0 %v10641_v13 }
 0x1e8   : > { %v13060_v32 = vpack.c.bf16 %v16906_v6, %v16905_v37  ;;  %v13078_v12 = vpack.c.bf16 %v16912_v11, %v16910_v60  ;;  %v16922_v37 = vld [vmem:[#allocation51_spill] sm:$0xff]  ;;  %v16923_v6 = vld [vmem:[#allocation21_spill] sm:$0xff]  ;;  %v16927_v60 = vand.u32 4294901760, %v12898_v54  ;;  %v16934_v54 = vld [vmem:[#allocation28_spill] sm:$0xff] }
 0x1e9   : > { %1986 = vmatmul.mubr.f32.vlgmr.msra.gmra.mrb[0].mxu1 %v12869_v0  ;;  %v16935_v56 = vand.u32 4294901760, %v16934_v54  ;;  %v16950_v54 = vld [vmem:[#allocation38_spill] sm:$0xff] }
 0x1ea   : > { %10524 = vmatpush1.bf16.msra.mxu1 %v12379_v18  ;;  %10644 = vmatpush3.bf16.msra.mxu0 %v10641_v13  ;;  %v10661_v13 = vpack.c.bf16 %v12965_v62, %v12963_v30  ;;  %v10685_v11 = vpack.c.bf16 %v16928_v7, %v16927_v60 }
 0x1eb   : > { %1991 = vmatprep.mubr.f32.mxu1 %v16872_v4  ;;  %10526 = vmatprep.subr.bf16.mxu1 %v12383_v55 }
 0x1ec   : > { %10646 = vmatprep.subr.bf16.mxu0 %v10645_v58 }
 0x1ed   : > { %1994 = vmatmul.mubr.f32.gmra.mrb[2].mxu1 %v12863_v21 }
 0x1ee   : > { %10528 = vmatpush1.bf16.msra.mxu1 %v12410_v41  ;;  %10648 = vmatpush3.bf16.msra.mxu0 %v10645_v58  ;;  %v16915_v58 = vld [vmem:[#allocation18_spill] sm:$0xff] }
 0x1ef   : > { %10530 = vmatprep.subr.bf16.mxu1 %v12448_v46  ;;  %10650 = vmatprep.subr.bf16.mxu0 %v12838_v53 }
 0x1f0   : > { %2096 = vmatprep.mubr.f32.mxu1 %v16872_v4 }
 0x1f1   : > { %10041 = vmatmul.mubr.f32.vlgmr.msra.gmra.mrb[6].mxu0 %v12891_v29 }
 0x1f2   : > { %10532 = vmatpush1.bf16.msra.mxu1 %v12469_v51  ;;  %10652 = vmatpush3.bf16.msra.mxu0 %v12838_v53  ;;  %v16902_v53 = vand.u32 4294901760, %v12367_v31  ;;  %v16907_v31 = vand.u32 4294901760, %v12385_v63  ;;  %v16913_v63 = vld [vmem:[#allocation17_spill] sm:$0xff] }
 0x1f3   : > { %10534 = vmatprep.subr.bf16.mxu1 %v12496_v14  ;;  %10654 = vmatprep.subr.bf16.mxu0 %v10653_v39  ;;  %v16914_v45 = vand.u32 4294901760, %v16913_v63  ;;  %v16929_v63 = vand.u32 4294901760, %v12925_v42 }
 0x1f4   : > { %10059 = vmatprep.mubr.f32.mxu0 %v12866_v26  ;;  %v13050_v59 = vpack.c.bf16 %v16903_v19, %v16902_v53  ;;  %v13068_v26 = vpack.c.bf16 %v16908_v48, %v16907_v31  ;;  %v16920_v53 = vld [vmem:[#allocation20_spill] sm:$0xff]  ;;  %v16924_v31 = vand.u32 4294901760, %v16923_v6  ;;  %v16925_v48 = vld [vmem:[#allocation23_spill] sm:$0xff]  ;;  %v16939_v6 = vand.u32 4294901760, %v12937_v8 }
 0x1f5   : > { %v16921_v19 = vand.u32 4294901760, %v16920_v53 }
 0x1f6   : > { %10536 = vmatpush1.bf16.msra.mxu1 %v12524_v10  ;;  %10656 = vmatpush3.bf16.msra.mxu0 %v10653_v39  ;;  %v16916_v39 = vand.u32 4294901760, %v16915_v58 }
 0x1f7   : > { %10538 = vmatprep.subr.bf16.mxu1 %v12546_v5  ;;  %10658 = vmatprep.subr.bf16.mxu0 %v10657_v57 }
 0x1f8   : > { %v13086_v0 = vpack.c.bf16 %v16916_v39, %v16914_v45  ;;  %v16930_v45 = vld [vmem:[#allocation24_spill] sm:$0xff]  ;;  %v16932_v39 = vld [vmem:[#allocation26_spill] sm:$0xff] }
 0x1f9   : > { %v16931_v58 = vand.u32 4294901760, %v16930_v45 }
 0x1fa   : > { %10540 = vmatpush1.bf16.msra.mxu1 %v12569_v35  ;;  %10660 = vmatpush3.bf16.msra.mxu0 %v10657_v57  ;;  %v16917_v57 = vand.u32 4294901760, %v12863_v21 }
 0x1fb   : > { %10542 = vmatprep.subr.bf16.mxu1 %v12600_v9  ;;  %10662 = vmatprep.subr.bf16.mxu0 %v10661_v13 }
 0x1fe   : > { %10544 = vmatpush1.bf16.msra.mxu1 %v12625_v40  ;;  %10664 = vmatpush3.bf16.msra.mxu0 %v10661_v13  ;;  %v16919_v13 = vand.u32 4294901760, %v16918_v1 }
 0x1ff   : > { %10546 = vmatprep.subr.bf16.mxu1 %v12650_v61  ;;  %10666 = vmatprep.subr.bf16.mxu0 %v12829_v2 }
 0x201   : > { %10060 = vmatmul.mubr.f32.vlgmr.msra.gmra.mrb[6].mxu0 %v12925_v42  ;;  %v16938_v42 = vand.u32 4294901760, %v12935_v44  ;;  %v16946_v44 = vld [vmem:[#allocation35_spill] sm:$0xff] }
 0x202   : > { %10548 = vmatpush1.bf16.msra.mxu1 %v12670_v17  ;;  %10668 = vmatpush3.bf16.msra.mxu0 %v12829_v2 }
 0x203   : > { %10550 = vmatprep.subr.bf16.mxu1 %v12690_v47  ;;  %10670 = vmatprep.subr.bf16.mxu0 %v12911_v22 }
 0x204   : > { %10078 = vmatprep.mubr.f32.mxu0 %v16904_v38  ;;  %v13097_v38 = vpack.c.bf16 %v16921_v19, %v16919_v13  ;;  %v16936_v13 = vld [vmem:[#allocation29_spill] sm:$0xff] }
 0x205   : > { %v16937_v53 = vand.u32 4294901760, %v16936_v13 }
 0x206   : > { %10552 = vmatpush1.bf16.msra.mxu1 %v12826_v43  ;;  %10672 = vmatpush3.bf16.msra.mxu0 %v12911_v22 }
 0x207   : > { %10554 = vmatprep.subr.bf16.mxu1 %v13050_v59  ;;  %10674 = vmatprep.subr.bf16.mxu0 %v12929_v27  ;;  %v13127_v19 = vpack.c.bf16 %v16937_v53, %v16935_v56  ;;  %v16951_v56 = vand.u32 4294901760, %v16950_v54  ;;  %v16952_v53 = vand.u32 4294901760, %v16896_v15  ;;  %v16958_v15 = vand.u32 4294901760, %v12693_v16  ;;  %v2408_v16 = vld [vmem:[#allocation2 + $0x88] sm:$0xff]  ;;  %v2411_v54 = vld [vmem:[#allocation2 + $0xa0] sm:$0xff] }
 0x209   : > { %2100 = vmatmul.mubr.f32.vlgmr.msra.gmra.mrb[0].mxu1 %v16909_v23  ;;  %v16926_v23 = vand.u32 4294901760, %v16925_v48 }
 0x20a   : > { %10556 = vmatpush1.bf16.msra.mxu1 %v13060_v32  ;;  %10676 = vmatpush3.bf16.msra.mxu0 %v12929_v27 }
 0x20b   : > { %2105 = vmatprep.mubr.f32.mxu1 %v16872_v4  ;;  %10558 = vmatprep.subr.bf16.mxu1 %v13068_v26  ;;  %v13105_v21 = vpack.c.bf16 %v16926_v23, %v16924_v31  ;;  %v16940_v31 = vld [vmem:[#allocation30_spill] sm:$0xff]  ;;  %v16942_v23 = vld [vmem:[#allocation32_spill] sm:$0xff] }
 0x20c   : > { %10678 = vmatprep.subr.bf16.mxu0 %v12951_v50  ;;  %v16941_v48 = vand.u32 4294901760, %v16940_v31  ;;  %v16943_v60 = vand.u32 4294901760, %v16942_v23 }
 0x20d   : > { %2109 = vmatmul.mubr.f32.gmra.mrb[2].mxu1 %v16917_v57  ;;  %v16933_v57 = vand.u32 4294901760, %v16932_v39  ;;  %v16948_v39 = vand.u32 4294901760, %v12965_v62  ;;  %v16956_v62 = vand.u32 4294901760, %v12673_v49 }
 0x20e   : > { %10560 = vmatpush1.bf16.msra.mxu1 %v13078_v12  ;;  %10680 = vmatpush3.bf16.msra.mxu0 %v12951_v50  ;;  %v13139_v7 = vpack.c.bf16 %v16943_v60, %v16941_v48  ;;  %v16961_v48 = vld [vmem:[#allocation48_spill] sm:$0xff] }
 0x20f   : > { %10562 = vmatprep.subr.bf16.mxu1 %v13086_v0  ;;  %10682 = vmatprep.subr.bf16.mxu0 %v16922_v37  ;;  %v13120_v1 = vpack.c.bf16 %v16933_v57, %v16931_v58  ;;  %v16947_v58 = vand.u32 4294901760, %v16946_v44  ;;  %v16949_v57 = vand.u32 4294901760, %v16893_v3  ;;  %v16962_v23 = vand.u32 4294901760, %v16961_v48  ;;  %v2410_v44 = vld [vmem:[#allocation2 + $0x98] sm:$0xff] }
 0x210   : > { %2275 = vmatprep.mubr.f32.mxu1 %v16872_v4 }
 0x211   : > { %10079 = vmatmul.mubr.f32.vlgmr.msra.gmra.mrb[6].mxu0 %v16929_v63  ;;  %v16944_v63 = vld [vmem:[#allocation34_spill] sm:$0xff]  ;;  %v13157_v13 = vpack.c.bf16 %v16951_v56, %v16949_v57  ;;  %v3024_v57 = vand.u32 4294901760, %v2410_v44 }
 0x212   : > { %10564 = vmatpush1.bf16.msra.mxu1 %v13097_v38  ;;  %10684 = vmatpush3.bf16.msra.mxu0 %v16922_v37  ;;  %v10689_v37 = vpack.c.bf16 %v16939_v6, %v16938_v42  ;;  %v16945_v45 = vand.u32 4294901760, %v16944_v63  ;;  %v16953_v42 = vld [vmem:[#allocation41_spill] sm:$0xff]  ;;  %v3018_v63 = vand.u32 4294901760, %v2408_v16  ;;  %v2412_v56 = vld [vmem:[#allocation2 + $0xa8] sm:$0xff] }
 0x213   : > { %10566 = vmatprep.subr.bf16.mxu1 %v13105_v21  ;;  %10686 = vmatprep.subr.bf16.mxu0 %v10685_v11  ;;  %v16954_v6 = vand.u32 4294901760, %v16953_v42  ;;  %v2414_v42 = vld [vmem:[#allocation2 + $0xb8] sm:$0xff] }
 0x214   : > { %10097 = vmatprep.mubr.f32.mxu0 %v12847_v52  ;;  %v13146_v8 = vpack.c.bf16 %v16947_v58, %v16945_v45  ;;  %v2409_v45 = vld [vmem:[#allocation2 + $0x90] sm:$0xff]  ;;  %v16963_v58 = vld [vmem:[#allocation54_spill] sm:$0xff]  ;;  %v3036_v48 = vand.u32 4294901760, %v2414_v42 }
 0x215   : > { %v13164_v30 = vpack.c.bf16 %v16954_v6, %v16952_v53  ;;  %v16964_v53 = vld [vmem:[#allocation52_spill] sm:$0xff] }
 0x216   : > { %10568 = vmatpush1.bf16.msra.mxu1 %v13120_v1  ;;  %10688 = vmatpush3.bf16.msra.mxu0 %v10685_v11  ;;  %v10693_v11 = vpack.c.bf16 %v16948_v39, %v2572_v34  ;;  %v16955_v34 = vand.u32 4294901760, %v12659_v33  ;;  %v16959_v33 = vld [vmem:[#allocation47_spill] sm:$0xff]  ;;  %v13202_v39 = vsub.f32 %v2408_v16, %v3018_v63 }
 0x217   : > { %10570 = vmatprep.subr.bf16.mxu1 %v13127_v19  ;;  %10690 = vmatprep.subr.bf16.mxu0 %v10689_v37  ;;  %v16960_v49 = vand.u32 4294901760, %v16959_v33  ;;  %v3027_v33 = vand.u32 4294901760, %v2411_v54 }
 0x218   : > { %v13171_v3 = vpack.c.bf16 %v16956_v62, %v16955_v34  ;;  %v16404_v34 = vand.u32 4294901760, %v13202_v39 }
 0x219   : > { %v13188_v60 = vpack.c.bf16 %v16962_v23, %v16960_v49  ;;  %v3030_v49 = vand.u32 4294901760, %v2412_v56 }
 0x21a   : > { %10572 = vmatpush1.bf16.msra.mxu1 %v13139_v7  ;;  %10692 = vmatpush3.bf16.msra.mxu0 %v10689_v37  ;;  %v16957_v37 = vand.u32 4294901760, %v12680_v24  ;;  %v2407_v24 = vld [vmem:[#allocation2 + $0x80] sm:$0xff] }
 0x21b   : > { %10574 = vmatprep.subr.bf16.mxu1 %v13146_v8  ;;  %10694 = vmatprep.subr.bf16.mxu0 %v10693_v11 }
 0x21c   : > { %v13179_v31 = vpack.c.bf16 %v16958_v15, %v16957_v37  ;;  %v13216_v37 = vsub.f32 %v2410_v44, %v3024_v57  ;;  %v16965_v44 = vld [vmem:[#allocation11_spill] sm:$0xff] }
 0x21e   : > { %10576 = vmatpush1.bf16.msra.mxu1 %v13157_v13  ;;  %10696 = vmatpush3.bf16.msra.mxu0 %v10693_v11  ;;  %v3021_v11 = vand.u32 4294901760, %v2409_v45 }
 0x21f   : > { %10578 = vmatprep.subr.bf16.mxu1 %v13164_v30  ;;  %10698 = vmatprep.subr.bf16.mxu0 %v12829_v2 }
 0x220   : > { %v13214_v62 = vsub.f32 %v2409_v45, %v3021_v11  ;;  %v13220_v15 = vpack.c.bf16 %v3024_v57, %v3021_v11  ;;  %v13240_v45 = vsub.f32 %v2412_v56, %v3030_v49 }
 0x221   : > { %10098 = vmatmul.mubr.f32.vlgmr.msra.gmra.mrb[6].mxu0 %v12891_v29 }
 0x222   : > { %10580 = vmatpush1.bf16.msra.mxu1 %v13171_v3  ;;  %10700 = vmatpush3.bf16.msra.mxu0 %v12829_v2  ;;  %v3015_v2 = vand.u32 4294901760, %v2407_v24  ;;  %v16406_v16 = vand.u32 4294901760, %v13214_v62 }
 0x223   : > { %10582 = vmatprep.subr.bf16.mxu1 %v13179_v31  ;;  %10702 = vmatprep.subr.bf16.mxu0 %v12911_v22 }
 0x224   : > { %10116 = vmatprep.mubr.f32.mxu0 %v12847_v52  ;;  %v13200_v52 = vsub.f32 %v2407_v24, %v3015_v2  ;;  %v3118_v24 = vsub.f32 %v13202_v39, %v16404_v34 }
 0x226   : > { %10584 = vmatpush1.bf16.msra.mxu1 %v13188_v60  ;;  %10704 = vmatpush3.bf16.msra.mxu0 %v12911_v22  ;;  %v13206_v22 = vpack.c.bf16 %v3018_v63, %v3015_v2  ;;  %v16405_v6 = vand.u32 4294901760, %v13200_v52  ;;  %v16407_v2 = vand.u32 4294901760, %v13216_v37  ;;  %v13238_v63 = vsub.f32 %v2411_v54, %v3027_v33 }
 0x227   : > { %10586 = vmatprep.subr.bf16.mxu1 %v12365_v28  ;;  %10706 = vmatprep.subr.bf16.mxu0 %v12929_v27  ;;  %v3119_v34 = vand.u32 4294901760, %v3118_v24 }
 0x228   : > { %v3111_v23 = vsub.f32 %v13200_v52, %v16405_v6  ;;  %v3125_v6 = vsub.f32 %v13214_v62, %v16406_v16  ;;  %v3132_v54 = vsub.f32 %v13216_v37, %v16407_v2  ;;  %v3138_v56 = vand.u32 4294901760, %v13238_v63 }
 0x229   : > { %2277 = vmatmul.mubr.f32.vlgmr.msra.gmra.mrb[0].mxu1 %v16963_v58 }
 0x22a   : > { %10588 = vmatpush1.bf16.msra.mxu1 %v12379_v18  ;;  %10708 = vmatpush3.bf16.msra.mxu0 %v12929_v27  ;;  %v2413_v27 = vld [vmem:[#allocation2 + $0xb0] sm:$0xff]  ;;  %v3112_v57 = vand.u32 4294901760, %v3111_v23  ;;  %v13259_v23 = vsub.f32 %v2414_v42, %v3036_v48  ;;  %v3133_v16 = vand.u32 4294901760, %v3132_v54  ;;  %v3139_v2 = vsub.f32 %v13238_v63, %v3138_v56 }
 0x22b   : > { %2282 = vmatprep.mubr.f32.mxu1 %v16872_v4  ;;  %10590 = vmatprep.subr.bf16.mxu1 %v12383_v55 }
 0x22c   : > { %10710 = vmatprep.subr.bf16.mxu0 %v12951_v50  ;;  %v10729_v24 = vpack.c.bf16 %v3119_v34, %v3112_v57  ;;  %v3140_v34 = vand.u32 4294901760, %v3139_v2 }
 0x22d   : > { %2284 = vmatmul.mubr.f32.gmra.mrb[2].mxu1 %v16964_v53 }
 0x22e   : > { %10592 = vmatpush1.bf16.msra.mxu1 %v12410_v41  ;;  %10712 = vmatpush3.bf16.msra.mxu0 %v12951_v50  ;;  %v3033_v50 = vand.u32 4294901760, %v2413_v27 }
 0x22f   : > { %10594 = vmatprep.subr.bf16.mxu1 %v12448_v46  ;;  %10714 = vmatprep.subr.bf16.mxu0 %v13206_v22 }
 0x230   : > { %2386 = vmatprep.mubr.f32.mxu1 %v16872_v4  ;;  %v13243_v11 = vpack.c.bf16 %v3036_v48, %v3033_v50 }
 0x231   : > { %10117 = vmatmul.mubr.f32.vlgmr.msra.gmra.mrb[6].mxu0 %v12891_v29  ;;  %v13236_v29 = vpack.c.bf16 %v3030_v49, %v3027_v33  ;;  %v16408_v33 = vand.u32 4294901760, %v13240_v45  ;;  %v13257_v49 = vsub.f32 %v2413_v27, %v3033_v50  ;;  %v3159_v50 = vand.u32 4294901760, %v13259_v23 }
 0x232   : > { %10596 = vmatpush1.bf16.msra.mxu1 %v12469_v51  ;;  %10716 = vmatpush3.bf16.msra.mxu0 %v13206_v22 }
 0x233   : > { %10598 = vmatprep.subr.bf16.mxu1 %v12496_v14  ;;  %10718 = vmatprep.subr.bf16.mxu0 %v13220_v15  ;;  %v3146_v27 = vsub.f32 %v13240_v45, %v16408_v33  ;;  %v16409_v42 = vand.u32 4294901760, %v13257_v49  ;;  %v3160_v54 = vsub.f32 %v13259_v23, %v3159_v50  ;;  %v16966_v33 = vld [vmem:[#allocation12_spill] sm:$0xff] }
 0x234   : > { %10135 = vmatprep.mubr.f32.mxu0 %v16965_v44  ;;  %v3126_v44 = vand.u32 4294901760, %v3125_v6 }
 0x235   : > { %v3147_v48 = vand.u32 4294901760, %v3146_v27  ;;  %v3153_v57 = vsub.f32 %v13257_v49, %v16409_v42  ;;  %v3161_v2 = vand.u32 4294901760, %v3160_v54  ;;  %v16967_v27 = vld [vmem:[#allocation5_spill] sm:$0xff]  ;;  %v16973_v54 = vand.u32 4294901760, %v13200_v52 }
 0x236   : > { %10600 = vmatpush1.bf16.msra.mxu1 %v12524_v10  ;;  %10720 = vmatpush3.bf16.msra.mxu0 %v13220_v15  ;;  %v10733_v6 = vpack.c.bf16 %v3133_v16, %v3126_v44 }
 0x237   : > { %10602 = vmatprep.subr.bf16.mxu1 %v12546_v5  ;;  %10722 = vmatprep.subr.bf16.mxu0 %v13236_v29  ;;  %v10737_v16 = vpack.c.bf16 %v3147_v48, %v3140_v34  ;;  %v3154_v44 = vand.u32 4294901760, %v3153_v57  ;;  %v16970_v34 = vld [vmem:[#allocation8_spill] sm:$0xff]  ;;  %v16971_v48 = vld [vmem:[#allocation9_spill] sm:$0xff]  ;;  %v16972_v57 = vld [vmem:[#allocation14_spill] sm:$0xff] }
 0x239   : > { %v10741_v42 = vpack.c.bf16 %v3161_v2, %v3154_v44  ;;  %v16975_v2 = vand.u32 4294901760, %v13214_v62 }
 0x23a   : > { %10604 = vmatpush1.bf16.msra.mxu1 %v12569_v35  ;;  %10724 = vmatpush3.bf16.msra.mxu0 %v13236_v29 }
 0x23b   : > { %10606 = vmatprep.subr.bf16.mxu1 %v12600_v9  ;;  %10726 = vmatprep.subr.bf16.mxu0 %v13243_v11 }
 0x23e   : > { %10608 = vmatpush1.bf16.msra.mxu1 %v12625_v40  ;;  %10728 = vmatpush3.bf16.msra.mxu0 %v13243_v11 }
 0x23f   : > { %10610 = vmatprep.subr.bf16.mxu1 %v12650_v61  ;;  %10730 = vmatprep.subr.bf16.mxu0 %v10729_v24 }
 0x241   : > { %10136 = vmatmul.mubr.f32.vlgmr.msra.gmra.mrb[6].mxu0 %v16966_v33  ;;  %v10745_v33 = vpack.c.bf16 %v13202_v39, %v13200_v52  ;;  %v16978_v52 = vand.u32 4294901760, %v13240_v45 }
 0x242   : > { %10612 = vmatpush1.bf16.msra.mxu1 %v12670_v17  ;;  %10732 = vmatpush3.bf16.msra.mxu0 %v10729_v24  ;;  %v16968_v24 = vld [vmem:[#allocation6_spill] sm:$0xff] }
 0x243   : > { %10614 = vmatprep.subr.bf16.mxu1 %v12690_v47  ;;  %10734 = vmatprep.subr.bf16.mxu0 %v10733_v6 }
 0x244   : > { %10154 = vmatprep.mubr.f32.mxu0 %v16967_v27 }
 0x246   : > { %10616 = vmatpush1.bf16.msra.mxu1 %v12826_v43  ;;  %10736 = vmatpush3.bf16.msra.mxu0 %v10733_v6  ;;  %v16969_v6 = vld [vmem:[#allocation7_spill] sm:$0xff] }
 0x247   : > { %10738 = vmatprep.subr.bf16.mxu0 %v10737_v16  ;;  %10810 = vmatprep.subr.bf16.mxu1 %v12365_v28 }
 0x249   : > { %2388 = vmatmul.mubr.f32.vlgmr.msra.gmra.mrb[0].mxu1 %v16963_v58  ;;  %v10749_v58 = vpack.c.bf16 %v13216_v37, %v13214_v62 }
 0x24a   : > { %10740 = vmatpush3.bf16.msra.mxu0 %v10737_v16  ;;  %2393 = vmatprep.mubr.f32.mxu1 %v16872_v4  ;;  %v16974_v16 = vand.u32 4294901760, %v13202_v39  ;;  %v10785_v39 = vpack.c.bf16 %v16978_v52, %v3138_v56 }
 0x24b   : > { %10742 = vmatprep.subr.bf16.mxu0 %v10741_v42  ;;  %10812 = vmatpush1.bf16.msra.mxu1 %v12379_v18 }
 0x24c   : > { %10814 = vmatprep.subr.bf16.mxu1 %v12383_v55  ;;  %v10777_v44 = vpack.c.bf16 %v16974_v16, %v16973_v54 }
 0x24d   : > { %2395 = vmatmul.mubr.f32.gmra.mrb[2].mxu1 %v16964_v53  ;;  %v10753_v53 = vpack.c.bf16 %v13240_v45, %v13238_v63 }
 0x24e   : > { %10744 = vmatpush3.bf16.msra.mxu0 %v10741_v42  ;;  %3690 = vmatprep.mubr.f32.mxu1 %v16872_v4  ;;  %v10757_v42 = vpack.c.bf16 %v13259_v23, %v13257_v49 }
 0x24f   : > { %10746 = vmatprep.subr.bf16.mxu0 %v10745_v33  ;;  %10816 = vmatpush1.bf16.msra.mxu1 %v12410_v41 }
 0x250   : > { %10818 = vmatprep.subr.bf16.mxu1 %v12448_v46 }
 0x251   : > { %10155 = vmatmul.mubr.f32.vlgmr.msra.gmra.mrb[6].mxu0 %v16968_v24 }
 0x252   : > { %10748 = vmatpush3.bf16.msra.mxu0 %v10745_v33  ;;  %10173 = vmatprep.mubr.f32.mxu0 %v16969_v6  ;;  %v16976_v33 = vand.u32 4294901760, %v13216_v37  ;;  %v16977_v6 = vld [vmem:[#allocation10_spill] sm:$0xff] }
 0x253   : > { %10750 = vmatprep.subr.bf16.mxu0 %v10749_v58  ;;  %10820 = vmatpush1.bf16.msra.mxu1 %v12469_v51 }
 0x254   : > { %10822 = vmatprep.subr.bf16.mxu1 %v12496_v14 }
 0x256   : > { %10752 = vmatpush3.bf16.msra.mxu0 %v10749_v58  ;;  %v10781_v58 = vpack.c.bf16 %v16976_v33, %v16975_v2 }
 0x257   : > { %10754 = vmatprep.subr.bf16.mxu0 %v10753_v53  ;;  %10824 = vmatpush1.bf16.msra.mxu1 %v12524_v10 }
 0x258   : > { %10826 = vmatprep.subr.bf16.mxu1 %v12546_v5 }
 0x25a   : > { %10756 = vmatpush3.bf16.msra.mxu0 %v10753_v53  ;;  %v16979_v53 = vand.u32 4294901760, %v13257_v49 }
 0x25b   : > { %10758 = vmatprep.subr.bf16.mxu0 %v10757_v42  ;;  %10828 = vmatpush1.bf16.msra.mxu1 %v12569_v35 }
 0x25c   : > { %10830 = vmatprep.subr.bf16.mxu1 %v12600_v9  ;;  %v10789_v62 = vpack.c.bf16 %v3159_v50, %v16979_v53  ;;  %v16989_v53 = vld [vmem:[#allocation42_spill] sm:$0xff] }
 0x25e   : > { %10760 = vmatpush3.bf16.msra.mxu0 %v10757_v42 }
 0x25f   : > { %10762 = vmatprep.subr.bf16.mxu0 %v13206_v22  ;;  %10832 = vmatpush1.bf16.msra.mxu1 %v12625_v40 }
 0x260   : > { %10834 = vmatprep.subr.bf16.mxu1 %v12650_v61 }
 0x261   : > { %10174 = vmatmul.mubr.f32.vlgmr.msra.gmra.mrb[6].mxu0 %v16970_v34 }
 0x262   : > { %10764 = vmatpush3.bf16.msra.mxu0 %v13206_v22  ;;  %10192 = vmatprep.mubr.f32.mxu0 %v16971_v48 }
 0x263   : > { %10766 = vmatprep.subr.bf16.mxu0 %v13220_v15  ;;  %10836 = vmatpush1.bf16.msra.mxu1 %v12670_v17 }
 0x264   : > { %10838 = vmatprep.subr.bf16.mxu1 %v12690_v47 }
 0x266   : > { %10768 = vmatpush3.bf16.msra.mxu0 %v13220_v15 }
 0x267   : > { %10770 = vmatprep.subr.bf16.mxu0 %v13236_v29  ;;  %10840 = vmatpush1.bf16.msra.mxu1 %v12826_v43 }
 0x268   : > { %10842 = vmatprep.subr.bf16.mxu1 %v16972_v57 }
 0x26a   : > { %10772 = vmatpush3.bf16.msra.mxu0 %v13236_v29 }
 0x26b   : > { %10774 = vmatprep.subr.bf16.mxu0 %v13243_v11 }
 0x26e   : > { %10776 = vmatpush3.bf16.msra.mxu0 %v13243_v11 }
 0x26f   : > { %10778 = vmatprep.subr.bf16.mxu0 %v10777_v44 }
 0x271   : > { %10193 = vmatmul.mubr.f32.vlgmr.msra.gmra.mrb[6].mxu0 %v16977_v6 }
 0x272   : > { %10780 = vmatpush3.bf16.msra.mxu0 %v10777_v44  ;;  %10211 = vmatprep.mubr.f32.mxu0 %v16967_v27 }
 0x273   : > { %10782 = vmatprep.subr.bf16.mxu0 %v10781_v58 }
 0x276   : > { %10784 = vmatpush3.bf16.msra.mxu0 %v10781_v58 }
 0x277   : > { %10786 = vmatprep.subr.bf16.mxu0 %v10785_v39 }
 0x27a   : > { %10788 = vmatpush3.bf16.msra.mxu0 %v10785_v39 }
 0x27b   : > { %10790 = vmatprep.subr.bf16.mxu0 %v10789_v62 }
 0x27e   : > { %10792 = vmatpush3.bf16.msra.mxu0 %v10789_v62 }
 0x27f   : > { %10794 = vmatprep.subr.bf16.mxu0 %v13206_v22 }
 0x281   : > { %10212 = vmatmul.mubr.f32.vlgmr.msra.gmra.mrb[6].mxu0 %v16968_v24 }
 0x282   : > { %10796 = vmatpush3.bf16.msra.mxu0 %v13206_v22  ;;  %10230 = vmatprep.mubr.f32.mxu0 %v16967_v27 }
 0x283   : > { %10798 = vmatprep.subr.bf16.mxu0 %v13220_v15 }
 0x286   : > { %10800 = vmatpush3.bf16.msra.mxu0 %v13220_v15 }
 0x287   : > { %10802 = vmatprep.subr.bf16.mxu0 %v13236_v29 }
 0x28a   : > { %10804 = vmatpush3.bf16.msra.mxu0 %v13236_v29 }
 0x28b   : > { %10806 = vmatprep.subr.bf16.mxu0 %v13243_v11 }
 0x28e   : > { %10808 = vmatpush3.bf16.msra.mxu0 %v13243_v11 }
 0x291   : > { %10231 = vmatmul.mubr.f32.vlgmr.msra.gmra.mrb[6].mxu0 %v16968_v24 }
 0x292   : > { %4728 = vmatprep.mubr.f32.mxu0 %v16872_v4 }
 0x2a4   : > { %v1600_v37 = vpop.f32.mrb[2].mxu0 }
 0x2a5   : > { %v1602_v22 = vpop.f32.mrb[3].mxu0 }
 0x2a8   : > { %v1611_v63 = vpop.f32.mrb[4].mxu0 }
 0x2a9   : > { %v1613_v45 = vpop.f32.mrb[5].mxu0 }
 0x31c   : > { %v2389_v56 = vpop.f32.mrb[0].mxu1 }
 0x31d   : > { %v11625_v49 = vadd.f32 %v2389_v56, %v1600_v37  ;;  %v2391_v23 = vpop.f32.mrb[1].mxu1 }
 0x31e   : > { %v11626_v15 = vadd.f32 %v2391_v23, %v1602_v22 }
 0x31f   : > { %v5224_v50 = vand.u32 4294901760, %v11625_v49 }
 0x320   : > { %v5222_v27 = vand.u32 4294901760, %v11626_v15  ;;  %v2396_v42 = vpop.f32.mrb[2].mxu1 }
 0x321   : > { %v13358_v29 = vsub.f32 %v11625_v49, %v5224_v50  ;;  %v11627_v34 = vadd.f32 %v2396_v42, %v1611_v63  ;;  %v2398_v48 = vpop.f32.mrb[3].mxu1 }
 0x322   : > { %v13360_v11 = vsub.f32 %v11626_v15, %v5222_v27  ;;  %v11628_v24 = vadd.f32 %v2398_v48, %v1613_v45 }
 0x323   : > { %v5354_v57 = vand.u32 4294901760, %v13358_v29  ;;  %v5228_v54 = vand.u32 4294901760, %v11627_v34 }
 0x324   : > { %v5348_v16 = vand.u32 4294901760, %v13360_v11  ;;  %v5226_v44 = vand.u32 4294901760, %v11628_v24 }
 0x325   : > { %v13364_v2 = vpack.c.bf16 %v5228_v54, %v5224_v50  ;;  %v13366_v33 = vsub.f32 %v11627_v34, %v5228_v54  ;;  %v5355_v52 = vsub.f32 %v13358_v29, %v5354_v57 }
 0x326   : > { %v13368_v58 = vsub.f32 %v11628_v24, %v5226_v44  ;;  %v13370_v6 = vpack.c.bf16 %v5226_v44, %v5222_v27  ;;  %v5349_v37 = vsub.f32 %v13360_v11, %v5348_v16 }
 0x327   : > { %v5366_v39 = vand.u32 4294901760, %v13366_v33  ;;  %v5356_v23 = vand.u32 4294901760, %v5355_v52 }
 0x328   : > { %v5360_v62 = vand.u32 4294901760, %v13368_v58  ;;  %v5350_v50 = vand.u32 4294901760, %v5349_v37 }
 0x329   : > { %v5367_v63 = vsub.f32 %v13366_v33, %v5366_v39  ;;  %v13381_v45 = vpack.c.bf16 %v5366_v39, %v5354_v57 }
 0x32a   : > { %v5361_v56 = vsub.f32 %v13368_v58, %v5360_v62  ;;  %v13384_v49 = vpack.c.bf16 %v5360_v62, %v5348_v16 }
 0x32b   : > { %v5368_v15 = vand.u32 4294901760, %v5367_v63 }
 0x32c   : > { %v5362_v27 = vand.u32 4294901760, %v5361_v56  ;;  %v16980_v56 = vld [vmem:[#allocation15_spill] sm:$0xff] }
 0x32d   : > { %v13386_v42 = vpack.c.bf16 %v5368_v15, %v5356_v23  ;;  %v16981_v23 = vld [vmem:[#allocation16_spill] sm:$0xff] }
 0x32e   : > { %v13388_v34 = vpack.c.bf16 %v5362_v27, %v5350_v50  ;;  %v16982_v50 = vld [vmem:[#allocation22_spill] sm:$0xff]  ;;  %v16983_v27 = vld [vmem:[#allocation25_spill] sm:$0xff] }
 0x364   : > { %v10232_v48 = vpop.f32.mrb[6].mxu0 }
 0x365   : > { %v13390_v24 = vand.u32 4294901760, %v10232_v48  ;;  %v3584_v54 = vpop.f32.mrb[7].mxu0 }
 0x366   : > { %v13392_v44 = vand.u32 4294901760, %v3584_v54 }
 0x367   : > { %v13395_v57 = vsub.f32 %v10232_v48, %v13390_v24  ;;  %v16984_v48 = vld [vmem:[#allocation27_spill] sm:$0xff] }
 0x368   : > { %v13398_v16 = vsub.f32 %v3584_v54, %v13392_v44  ;;  %v16985_v54 = vld [vmem:[#allocation31_spill] sm:$0xff] }
 0x369   : > { %v3704_v52 = vand.u32 4294901760, %v13395_v57 }
 0x36a   : > { %v3693_v39 = vand.u32 4294901760, %v13398_v16 }
 0x36b   : > { %v3705_v63 = vsub.f32 %v13395_v57, %v3704_v52 }
 0x36c   : > { %v3694_v62 = vsub.f32 %v13398_v16, %v3693_v39 }
 0x36d   : > { %v3706_v15 = vand.u32 4294901760, %v3705_v63  ;;  %v16990_v63 = vld [vmem:[#allocation43_spill] sm:$0xff] }
 0x36e   : > { %v3695_v37 = vand.u32 4294901760, %v3694_v62  ;;  %v16986_v62 = vld [vmem:[#allocation33_spill] sm:$0xff] }
 0x370   : > { %3696 = vmatmul.mubr.f32.vlgmr.msra.gmra.mrb[4].mxu1 %v3695_v37  ;;  %v16987_v37 = vld [vmem:[#allocation37_spill] sm:$0xff] }
 0x371   : > { %10844 = vmatpush1.bf16.msra.mxu1 %v16980_v56  ;;  %3701 = vmatprep.mubr.f32.mxu1 %v16872_v4  ;;  %v16988_v56 = vld [vmem:[#allocation39_spill] sm:$0xff] }
 0x372   : > { %10846 = vmatprep.subr.bf16.mxu1 %v16981_v23  ;;  %v16991_v23 = vld [vmem:[#allocation44_spill] sm:$0xff] }
 0x374   : > { %3707 = vmatmul.mubr.f32.gmra.mrb[6].mxu1 %v3706_v15  ;;  %v16992_v15 = vld [vmem:[#allocation45_spill] sm:$0xff] }
 0x375   : > { %10848 = vmatpush1.bf16.msra.mxu1 %v16982_v50  ;;  %3937 = vmatprep.mubr.f32.mxu1 %v16872_v4  ;;  %v16993_v50 = vld [vmem:[#allocation46_spill] sm:$0xff] }
 0x376   : > { %10850 = vmatprep.subr.bf16.mxu1 %v16983_v27  ;;  %v16994_v27 = vld [vmem:[#allocation49_spill] sm:$0xff] }
 0x379   : > { %10852 = vmatpush1.bf16.msra.mxu1 %v16984_v48  ;;  %v16995_v48 = vld [vmem:[#allocation50_spill] sm:$0xff] }
 0x37a   : > { %10854 = vmatprep.subr.bf16.mxu1 %v16985_v54  ;;  %v16996_v54 = vld [vmem:[#allocation53_spill] sm:$0xff] }
 0x37d   : > { %10856 = vmatpush1.bf16.msra.mxu1 %v16986_v62  ;;  %v16997_v62 = vld [vmem:[#allocation55_spill] sm:$0xff] }
 0x37e   : > { %10858 = vmatprep.subr.bf16.mxu1 %v16987_v37  ;;  %v16999_v37 = vld [vmem:[#allocation57_spill] sm:$0xff] }
 0x381   : > { %10860 = vmatpush1.bf16.msra.mxu1 %v16988_v56  ;;  %v17000_v56 = vld [vmem:[#allocation58_spill] sm:$0xff] }
 0x382   : > { %10862 = vmatprep.subr.bf16.mxu1 %v16989_v53  ;;  %v16998_v53 = vld [vmem:[#allocation56_spill] sm:$0xff] }
 0x385   : > { %10864 = vmatpush1.bf16.msra.mxu1 %v16990_v63  ;;  %v17001_v63 = vld [vmem:[#allocation59_spill] sm:$0xff] }
 0x386   : > { %10866 = vmatprep.subr.bf16.mxu1 %v16991_v23  ;;  %v17002_v23 = vld [vmem:[#allocation60_spill] sm:$0xff] }
 0x389   : > { %10868 = vmatpush1.bf16.msra.mxu1 %v16992_v15  ;;  %v17003_v15 = vld [vmem:[#allocation61_spill] sm:$0xff] }
 0x38a   : > { %10870 = vmatprep.subr.bf16.mxu1 %v16993_v50  ;;  %v17004_v50 = vld [vmem:[#allocation62_spill] sm:$0xff] }
 0x38d   : > { %10872 = vmatpush1.bf16.msra.mxu1 %v16994_v27  ;;  %v17005_v27 = vld [vmem:[#allocation63_spill] sm:$0xff] }
 0x38e   : > { %10874 = vmatprep.subr.bf16.mxu1 %v16995_v48  ;;  %v17006_v48 = vld [vmem:[#allocation36_spill] sm:$0xff] }
 0x390   : > { %3939 = vmatmul.mubr.f32.vlgmr.msra.gmra.mrb[4].mxu1 %v13392_v44 }
 0x391   : > { %10876 = vmatpush1.bf16.msra.mxu1 %v16996_v54  ;;  %3944 = vmatprep.mubr.f32.mxu1 %v16872_v4  ;;  %v17007_v54 = vld [vmem:[#allocation40_spill] sm:$0xff] }
 0x392   : > { %10878 = vmatprep.subr.bf16.mxu1 %v16997_v62 }
 0x394   : > { %3946 = vmatmul.mubr.f32.gmra.mrb[6].mxu1 %v13390_v24 }
 0x395   : > { %10880 = vmatpush1.bf16.msra.mxu1 %v16998_v53  ;;  %4080 = vmatprep.mubr.f32.mxu1 %v16872_v4 }
 0x396   : > { %10882 = vmatprep.subr.bf16.mxu1 %v16999_v37  ;;  %v9465_v37 = vld [vmem:[%s16276_s3 + $0x48] sm:$0x3] }
 0x399   : > { %10884 = vmatpush1.bf16.msra.mxu1 %v17000_v56 }
 0x39a   : > { %10886 = vmatprep.subr.bf16.mxu1 %v17001_v63  ;;  %v4518_v63 = vsel %vm4504_vm3, %v9465_v37, 0  ;;  %v9466_v37 = vld [vmem:[%s16277_s4 + $0x110] sm:$0xff] }
 0x39d   : > { %10888 = vmatpush1.bf16.msra.mxu1 %v17002_v23  ;;  %v13553_v23 = vand.u32 4294901760, %v4518_v63 }
 0x39e   : > { %10890 = vmatprep.subr.bf16.mxu1 %v17003_v15 }
 0x3a1   : > { %10892 = vmatpush1.bf16.msra.mxu1 %v17004_v50 }
 0x3a2   : > { %10894 = vmatprep.subr.bf16.mxu1 %v17005_v27 }
 0x3a5   : > { %10896 = vmatpush1.bf16.msra.mxu1 %v17006_v48 }
 0x3a6   : > { %10898 = vmatprep.subr.bf16.mxu1 %v17007_v54  ;;  %v13570_v54 = vsub.f32 %v4518_v63, %v13553_v23 }
 0x3a9   : > { %10900 = vmatpush1.bf16.msra.mxu1 %v12994_v25 }
 0x3aa   : > { %10902 = vmatprep.subr.bf16.mxu1 %v13000_v36 }
 0x3ad   : > { %10904 = vmatpush1.bf16.msra.mxu1 %v12836_v20 }
 0x3ae   : > { %10906 = vmatprep.subr.bf16.mxu1 %v12365_v28 }
 0x3b0   : > { %4083 = vmatmul.mubr.f32.vlgmr.msra.gmra.mrb[4].mxu1 %v13398_v16 }
 0x3b1   : > { %10908 = vmatpush1.bf16.msra.mxu1 %v12379_v18  ;;  %4088 = vmatprep.mubr.f32.mxu1 %v16872_v4 }
 0x3b2   : > { %10910 = vmatprep.subr.bf16.mxu1 %v12383_v55 }
 0x3b4   : > { %4091 = vmatmul.mubr.f32.gmra.mrb[6].mxu1 %v13395_v57  ;;  %v9463_v57 = vld [vmem:[%s16276_s3 + $0x38] sm:$0xff] }
 0x3b5   : > { %10912 = vmatpush1.bf16.msra.mxu1 %v12410_v41  ;;  %4193 = vmatprep.mubr.f32.mxu1 %v16872_v4 }
 0x3b6   : > { %10914 = vmatprep.subr.bf16.mxu1 %v12448_v46 }
 0x3b9   : > { %10916 = vmatpush1.bf16.msra.mxu1 %v12469_v51 }
 0x3ba   : > { %10918 = vmatprep.subr.bf16.mxu1 %v12496_v14 }
 0x3bd   : > { %10920 = vmatpush1.bf16.msra.mxu1 %v12524_v10 }
 0x3be   : > { %10922 = vmatprep.subr.bf16.mxu1 %v12546_v5 }
 0x3c1   : > { %10924 = vmatpush1.bf16.msra.mxu1 %v12569_v35 }
 0x3c2   : > { %10926 = vmatprep.subr.bf16.mxu1 %v12600_v9 }
 0x3c5   : > { %10928 = vmatpush1.bf16.msra.mxu1 %v12625_v40 }
 0x3c6   : > { %10930 = vmatprep.subr.bf16.mxu1 %v12650_v61 }
 0x3c9   : > { %10932 = vmatpush1.bf16.msra.mxu1 %v12670_v17 }
 0x3ca   : > { %10934 = vmatprep.subr.bf16.mxu1 %v12690_v47 }
 0x3cd   : > { %10936 = vmatpush1.bf16.msra.mxu1 %v12826_v43 }
 0x3ce   : > { %10938 = vmatprep.subr.bf16.mxu1 %v13050_v59 }
 0x3d0   : > { %4197 = vmatmul.mubr.f32.vlgmr.msra.gmra.mrb[4].mxu1 %v3693_v39  ;;  %v9464_v39 = vld [vmem:[%s16276_s3 + $0x40] sm:$0xff] }
 0x3d1   : > { %10940 = vmatpush1.bf16.msra.mxu1 %v13060_v32  ;;  %4202 = vmatprep.mubr.f32.mxu1 %v16872_v4  ;;  %v4515_v53 = vsel %vm4504_vm3, %v9464_v39, 0  ;;  %v9467_v39 = vld [vmem:[%s16277_s4 + $0x118] sm:$0xff] }
 0x3d2   : > { %10942 = vmatprep.subr.bf16.mxu1 %v13068_v26  ;;  %v13548_v56 = vand.u32 4294901760, %v4515_v53 }
 0x3d4   : > { %4206 = vmatmul.mubr.f32.gmra.mrb[6].mxu1 %v3704_v52  ;;  %v4512_v52 = vsel %vm4504_vm3, %v9463_v57, 0  ;;  %v13565_v48 = vsub.f32 %v4515_v53, %v13548_v56  ;;  %v9469_v53 = vld [vmem:[%s16277_s4 + $0x128] sm:$0xff] }
 0x3d5   : > { %10944 = vmatpush1.bf16.msra.mxu1 %v13078_v12  ;;  %4372 = vmatprep.mubr.f32.mxu1 %v16872_v4  ;;  %v13540_v62 = vand.u32 4294901760, %v4512_v52  ;;  %v6023_v63 = vand.u32 4294901760, %v9469_v53 }
 0x3d6   : > { %10946 = vmatprep.subr.bf16.mxu1 %v13086_v0 }
 0x3d7   : > { %v4612_v27 = vsub.f32 %v4512_v52, %v13540_v62 }
 0x3d9   : > { %10948 = vmatpush1.bf16.msra.mxu1 %v13097_v38 }
 0x3da   : > { %10950 = vmatprep.subr.bf16.mxu1 %v13105_v21  ;;  %v9461_v21 = vld [vmem:[%s16276_s3 + $0x28] sm:$0xff] }
 0x3dd   : > { %10952 = vmatpush1.bf16.msra.mxu1 %v13120_v1 }
 0x3de   : > { %10954 = vmatprep.subr.bf16.mxu1 %v13127_v19 }
 0x3e1   : > { %10956 = vmatpush1.bf16.msra.mxu1 %v13139_v7 }
 0x3e2   : > { %10958 = vmatprep.subr.bf16.mxu1 %v13146_v8 }
 0x3e5   : > { %10960 = vmatpush1.bf16.msra.mxu1 %v13157_v13 }
 0x3e6   : > { %10962 = vmatprep.subr.bf16.mxu1 %v13164_v30 }
 0x3e9   : > { %10964 = vmatpush1.bf16.msra.mxu1 %v13171_v3  ;;  %v4506_v3 = vsel %vm4504_vm3, %v9461_v21, 0 }
 0x3ea   : > { %10966 = vmatprep.subr.bf16.mxu1 %v13179_v31 }
 0x3ed   : > { %10968 = vmatpush1.bf16.msra.mxu1 %v13188_v60  ;;  %v9462_v60 = vld [vmem:[%s16276_s3 + $0x30] sm:$0xff] }
 0x3ee   : > { %10970 = vmatprep.subr.bf16.mxu1 %v12365_v28 }
 0x3f0   : > { %4374 = vmatmul.mubr.f32.vlgmr.msra.gmra.mrb[4].mxu1 %v13392_v44 }
 0x3f1   : > { %10972 = vmatpush1.bf16.msra.mxu1 %v12379_v18  ;;  %4379 = vmatprep.mubr.f32.mxu1 %v16872_v4 }
 0x3f2   : > { %10974 = vmatprep.subr.bf16.mxu1 %v12383_v55 }
 0x3f4   : > { %4381 = vmatmul.mubr.f32.gmra.mrb[6].mxu1 %v13390_v24 }
 0x3f5   : > { %10976 = vmatpush1.bf16.msra.mxu1 %v12410_v41  ;;  %4483 = vmatprep.mubr.f32.mxu1 %v16872_v4 }
 0x3f6   : > { %10978 = vmatprep.subr.bf16.mxu1 %v12448_v46 }
 0x3f9   : > { %10980 = vmatpush1.bf16.msra.mxu1 %v12469_v51 }
 0x3fa   : > { %10982 = vmatprep.subr.bf16.mxu1 %v12496_v14 }
 0x3fd   : > { %10984 = vmatpush1.bf16.msra.mxu1 %v12524_v10 }
 0x3fe   : > { %10986 = vmatprep.subr.bf16.mxu1 %v12546_v5 }
 0x401   : > { %10988 = vmatpush1.bf16.msra.mxu1 %v12569_v35 }
 0x402   : > { %10990 = vmatprep.subr.bf16.mxu1 %v12600_v9 }
 0x405   : > { %10992 = vmatpush1.bf16.msra.mxu1 %v12625_v40 }
 0x406   : > { %10994 = vmatprep.subr.bf16.mxu1 %v12650_v61 }
 0x409   : > { %10996 = vmatpush1.bf16.msra.mxu1 %v12670_v17 }
 0x40a   : > { %10998 = vmatprep.subr.bf16.mxu1 %v12690_v47 }
 0x40d   : > { %11000 = vmatpush1.bf16.msra.mxu1 %v12826_v43 }
 0x410   : > { %4485 = vmatmul.mubr.f32.vlgmr.msra.gmra.mrb[4].mxu1 %v13392_v44  ;;  %v4509_v44 = vsel %vm4504_vm3, %v9462_v60, 0 }
 0x411   : > { %4490 = vmatprep.mubr.f32.mxu1 %v16872_v4  ;;  %v13531_v16 = vand.u32 4294901760, %v4509_v44 }
 0x413   : > { %v4601_v50 = vsub.f32 %v4509_v44, %v13531_v16 }
 0x414   : > { %4492 = vmatmul.mubr.f32.gmra.mrb[6].mxu1 %v13390_v24  ;;  %v13524_v24 = vand.u32 4294901760, %v4506_v3 }
 0x415   : > { %4588 = vmatprep.mubr.f32.mxu1 %v16872_v4 }
 0x416   : > { %v4590_v15 = vsub.f32 %v4506_v3, %v13524_v24  ;;  %v2405_v3 = vld [vmem:[%s16276_s3 + $0x20] sm:$0x3] }
 0x417   : > { %v13664_v52 = vsel %vm4504_vm3, %v2405_v3, 0 }
 0x4e3   : > { %v4486_v51 = vpop.f32.mrb[4].mxu1 }
 0x4e4   : > { %v4522_v55 = vand.u32 4294901760, %v4486_v51  ;;  %v4488_v28 = vpop.f32.mrb[5].mxu1 }
 0x4e5   : > { %v4520_v40 = vand.u32 4294901760, %v4488_v28 }
 0x4e6   : > { %v4651_v41 = vsub.f32 %v4486_v51, %v4522_v55  ;;  %v4591_v51 = vand.u32 4294901760, %v4590_v15 }
 0x4e7   : > { %v4645_v18 = vsub.f32 %v4488_v28, %v4520_v40  ;;  %v4493_v46 = vpop.f32.mrb[6].mxu1  ;;  %v4613_v28 = vand.u32 4294901760, %v4612_v27 }
 0x4e8   : > { %v4652_v9 = vand.u32 4294901760, %v4651_v41  ;;  %v4526_v14 = vand.u32 4294901760, %v4493_v46  ;;  %v4495_v17 = vpop.f32.mrb[7].mxu1 }
 0x4e9   : > { %v4646_v10 = vand.u32 4294901760, %v4645_v18  ;;  %v4524_v5 = vand.u32 4294901760, %v4495_v17 }
 0x4ea   : > { %v13511_v35 = vpack.c.bf16 %v4526_v14, %v4522_v55  ;;  %v4663_v61 = vsub.f32 %v4493_v46, %v4526_v14  ;;  %v4653_v20 = vsub.f32 %v4651_v41, %v4652_v9  ;;  %v4602_v55 = vand.u32 4294901760, %v4601_v50  ;;  %v2402_v46 = vld [vmem:[%s16276_s3 + $0x8] sm:$0xff] }
 0x4eb   : > { %v13513_v47 = vpack.c.bf16 %v4524_v5, %v4520_v40  ;;  %v4657_v43 = vsub.f32 %v4495_v17, %v4524_v5  ;;  %v4647_v59 = vsub.f32 %v4645_v18, %v4646_v10  ;;  %v4624_v40 = vand.u32 4294901760, %v13565_v48 }
 0x4ec   : > { %v4664_v25 = vand.u32 4294901760, %v4663_v61  ;;  %v11011_v36 = vpack.c.bf16 %v4663_v61, %v4651_v41  ;;  %v4654_v19 = vand.u32 4294901760, %v4653_v20  ;;  %v4635_v41 = vand.u32 4294901760, %v13570_v54 }
 0x4ed   : > { %v4658_v32 = vand.u32 4294901760, %v4657_v43  ;;  %11002 = vmatprep.subr.bf16.mxu1 %v13513_v47  ;;  %v11009_v26 = vpack.c.bf16 %v4657_v43, %v4645_v18  ;;  %v4648_v8 = vand.u32 4294901760, %v4647_v59  ;;  %v2401_v18 = vld [vmem:[%s16276_s3] sm:$0xff]  ;;  %v4592_v14 = vsub.f32 %v4590_v15, %v4591_v51 }
 0x4ee   : > { %v4665_v12 = vsub.f32 %v4663_v61, %v4664_v25  ;;  %11004 = vmatpush1.bf16.msra.mxu1 %v13511_v35  ;;  %v11019_v0 = vpack.c.bf16 %v4664_v25, %v4652_v9  ;;  %v5208_v9 = vsel %vm4504_vm3, %v2401_v18, 0  ;;  %v5211_v17 = vsel %vm4504_vm3, %v2402_v46, 0  ;;  %v2403_v61 = vld [vmem:[%s16276_s3 + $0x10] sm:$0xff]  ;;  %v9475_v18 = vld [vmem:[%s16277_s4 + $0x158] sm:$0xff] }
 0x4ef   : > { %v4659_v38 = vsub.f32 %v4657_v43, %v4658_v32  ;;  %v11017_v1 = vpack.c.bf16 %v4658_v32, %v4646_v10  ;;  %v4593_v10 = vand.u32 4294901760, %v4592_v14  ;;  %v13599_v5 = vand.u32 4294901760, %v5208_v9  ;;  %v2404_v43 = vld [vmem:[%s16276_s3 + $0x18] sm:$0xff] }
 0x4f0   : > { %v4666_v7 = vand.u32 4294901760, %v4665_v12  ;;  %v5217_v32 = vsel %vm4504_vm3, %v2404_v43, 0  ;;  %v13703_v14 = vsub.f32 %v9469_v53, %v6023_v63 }
 0x4f1   : > { %v4660_v13 = vand.u32 4294901760, %v4659_v38  ;;  %4594 = vmatmul.mubr.f32.vlgmr.msra.gmra.mrb[8].mxu1 %v4593_v10  ;;  %v13613_v25 = vsub.f32 %v5208_v9, %v13599_v5  ;;  %v9477_v10 = vld [vmem:[%s16277_s4 + $0x168] sm:$0xff] }
 0x4f2   : > { %v11007_v30 = vpack.c.bf16 %v4666_v7, %v4654_v19  ;;  %4599 = vmatprep.mubr.f32.mxu1 %v16872_v4  ;;  %v4625_v19 = vsub.f32 %v13565_v48, %v4624_v40  ;;  %17010 = vst [vmem:[#allocation18_spill] sm:$0xff] %v13703_v14  ;;  %v6039_v3 = vand.u32 4294901760, %v9477_v10 }
 0x4f3   : > { %v11005_v31 = vpack.c.bf16 %v4660_v13, %v4648_v8 }
 0x4f4   : > { %v4626_v13 = vand.u32 4294901760, %v4625_v19 }
 0x4f5   : > { %11006 = vmatprep.subr.bf16.mxu0 %v11005_v31  ;;  %v4636_v31 = vsub.f32 %v13570_v54, %v4635_v41 }
 0x4f6   : > { %11008 = vmatpush1.bf16.msra.mxu0 %v11007_v30 }
 0x4f7   : > { %11010 = vmatprep.subr.bf16.mxu0 %v11009_v26  ;;  %v4614_v26 = vsub.f32 %v4612_v27, %v4613_v28  ;;  %v4637_v44 = vand.u32 4294901760, %v4636_v31 }
 0x4f9   : > { %4730 = vmatmul.mubr.f32.vlgmr.msra.gmra.mrb[8].mxu0 %v13524_v24  ;;  %v4615_v38 = vand.u32 4294901760, %v4614_v26  ;;  %v9479_v26 = vld [vmem:[%s16277_s4 + $0x178] sm:$0xff] }
 0x4fa   : > { %11012 = vmatpush1.bf16.msra.mxu0 %v11011_v36  ;;  %4735 = vmatprep.mubr.f32.mxu0 %v16872_v4  ;;  %v5214_v36 = vsel %vm4504_vm3, %v2403_v61, 0  ;;  %v9474_v61 = vld [vmem:[%s16277_s4 + $0x150] sm:$0xff]  ;;  %v6043_v53 = vand.u32 4294901760, %v9479_v26 }
 0x4fb   : > { %11014 = vmatprep.subr.bf16.mxu0 %v13513_v47  ;;  %v13623_v12 = vand.u32 4294901760, %v5214_v36  ;;  %v6037_v31 = vand.u32 4294901760, %v9474_v61 }
 0x4fd   : > { %4737 = vmatmul.mubr.f32.gmra.mrb[10].mxu0 %v13531_v16  ;;  %v13635_v7 = vsub.f32 %v5214_v36, %v13623_v12 }
 0x4fe   : > { %4742 = vmatprep.mubr.f32.mxu0 %v16872_v4 }
 0x4ff   : > { %v16410_v60 = vand.u32 4294901760, %v13635_v7 }
 0x501   : > { %4744 = vmatmul.mubr.f32.gmra.mrb[12].mxu0 %v13540_v62 }
 0x502   : > { %4749 = vmatprep.mubr.f32.mxu0 %v16872_v4 }
 0x505   : > { %4751 = vmatmul.mubr.f32.gmra.mrb[14].mxu0 %v13548_v56 }
 0x506   : > { %4756 = vmatprep.mubr.f32.mxu0 %v16872_v4 }
 0x509   : > { %4758 = vmatmul.mubr.f32.gmra.mrb[16].mxu0 %v13553_v23 }
 0x50a   : > { %4836 = vmatprep.mubr.f32.mxu0 %v16872_v4 }
 0x50d   : > { %4839 = vmatmul.mubr.f32.vlgmr.msra.gmra.mrb[8].mxu0 %v4590_v15  ;;  %v9468_v15 = vld [vmem:[%s16277_s4 + $0x120] sm:$0xff] }
 0x50e   : > { %11016 = vmatpush1.bf16.msra.mxu0 %v13511_v35  ;;  %4844 = vmatprep.mubr.f32.mxu0 %v16872_v4 }
 0x50f   : > { %11018 = vmatprep.subr.bf16.mxu0 %v11017_v1  ;;  %v13628_v1 = vand.u32 4294901760, %v5217_v32 }
 0x511   : > { %4847 = vmatmul.mubr.f32.gmra.mrb[10].mxu0 %v4601_v50 }
 0x512   : > { %4852 = vmatprep.mubr.f32.mxu0 %v16872_v4 }
 0x515   : > { %4855 = vmatmul.mubr.f32.gmra.mrb[12].mxu0 %v4612_v27  ;;  %v9471_v27 = vld [vmem:[%s16277_s4 + $0x138] sm:$0xff] }
 0x516   : > { %4860 = vmatprep.mubr.f32.mxu0 %v16872_v4 }
 0x519   : > { %4863 = vmatmul.mubr.f32.gmra.mrb[14].mxu0 %v13565_v48  ;;  %v9473_v48 = vld [vmem:[%s16277_s4 + $0x148] sm:$0xff] }
 0x51a   : > { %4868 = vmatprep.mubr.f32.mxu0 %v16872_v4 }
 0x51d   : > { %4871 = vmatmul.mubr.f32.gmra.mrb[16].mxu0 %v13570_v54  ;;  %v13688_v54 = vsub.f32 %v13635_v7, %v16410_v60  ;;  %v13773_v60 = vsub.f32 %v9479_v26, %v6043_v53 }
 0x51e   : > { %4945 = vmatprep.mubr.f32.mxu0 %v16872_v4 }
 0x51f   : > { %17025 = vst [vmem:[#allocation41_spill] sm:$0xff] %v13773_v60 }
 0x521   : > { %4949 = vmatmul.mubr.f32.vlgmr.msra.gmra.mrb[8].mxu0 %v4591_v51  ;;  %v6025_v51 = vand.u32 4294901760, %v9468_v15 }
 0x522   : > { %11020 = vmatpush1.bf16.msra.mxu0 %v11019_v0  ;;  %4954 = vmatprep.mubr.f32.mxu0 %v16872_v4  ;;  %v16412_v0 = vand.u32 4294901760, %v13613_v25 }
 0x523   : > { %11022 = vmatprep.subr.bf16.mxu0 %v13513_v47  ;;  %v4603_v47 = vsub.f32 %v4601_v50, %v4602_v55  ;;  %v6021_v50 = vand.u32 4294901760, %v9466_v37 }
 0x524   : > { %v13640_v8 = vsub.f32 %v13613_v25, %v16412_v0 }
 0x525   : > { %4958 = vmatmul.mubr.f32.gmra.mrb[10].mxu0 %v4602_v55  ;;  %v4604_v20 = vand.u32 4294901760, %v4603_v47  ;;  %v6027_v55 = vand.u32 4294901760, %v9471_v27  ;;  %v9476_v47 = vld [vmem:[%s16277_s4 + $0x160] sm:$0xff]  ;;  %v13717_v43 = vpack.c.bf16 %v6025_v51, %v6021_v50 }
 0x526   : > { %4963 = vmatprep.mubr.f32.mxu0 %v16872_v4 }
 0x527   : > { %4605 = vmatmul.mubr.f32.gmra.mrb[10].mxu1 %v4604_v20  ;;  %17012 = vst [vmem:[#allocation20_spill] sm:$0xff] %v13717_v43  ;;  %v13719_v20 = vsub.f32 %v9468_v15, %v6025_v51  ;;  %v9485_v51 = vld [vmem:[%s16277_s4 + $0x1a8] sm:$0xff] }
 0x528   : > { %4610 = vmatprep.mubr.f32.mxu1 %v16872_v4 }
 0x529   : > { %4967 = vmatmul.mubr.f32.gmra.mrb[12].mxu0 %v4613_v28  ;;  %v6031_v28 = vand.u32 4294901760, %v9473_v48  ;;  %17013 = vst [vmem:[#allocation51_spill] sm:$0xff] %v13719_v20 }
 0x52a   : > { %4972 = vmatprep.mubr.f32.mxu0 %v16872_v4 }
 0x52b   : > { %4616 = vmatmul.mubr.f32.gmra.mrb[12].mxu1 %v4615_v38  ;;  %v13721_v36 = vpack.c.bf16 %v6031_v28, %v6027_v55  ;;  %v13730_v38 = vsub.f32 %v9473_v48, %v6031_v28  ;;  %v9483_v48 = vld [vmem:[%s16277_s4 + $0x198] sm:$0xff] }
 0x52c   : > { %4621 = vmatprep.mubr.f32.mxu1 %v16872_v4 }
 0x52d   : > { %4976 = vmatmul.mubr.f32.gmra.mrb[14].mxu0 %v4624_v40  ;;  %v9470_v40 = vld [vmem:[%s16277_s4 + $0x130] sm:$0xff]  ;;  %17014 = vst [vmem:[#allocation21_spill] sm:$0xff] %v13721_v36  ;;  %17016 = vst [vmem:[#allocation24_spill] sm:$0xff] %v13730_v38 }
 0x52e   : > { %4981 = vmatprep.mubr.f32.mxu0 %v16872_v4  ;;  %v6029_v19 = vand.u32 4294901760, %v9470_v40 }
 0x52f   : > { %4627 = vmatmul.mubr.f32.gmra.mrb[14].mxu1 %v4626_v13  ;;  %v6035_v13 = vand.u32 4294901760, %v9475_v18 }
 0x530   : > { %4632 = vmatprep.mubr.f32.mxu1 %v16872_v4 }
 0x531   : > { %4985 = vmatmul.mubr.f32.gmra.mrb[16].mxu0 %v4635_v41  ;;  %v9472_v41 = vld [vmem:[%s16277_s4 + $0x140] sm:$0xff]  ;;  %v13761_v28 = vpack.c.bf16 %v6039_v3, %v6035_v13 }
 0x532   : > { %5067 = vmatprep.mubr.f32.mxu0 %v16872_v4 }
 0x533   : > { %4638 = vmatmul.mubr.f32.gmra.mrb[16].mxu1 %v4637_v44  ;;  %v6041_v44 = vand.u32 4294901760, %v9476_v47  ;;  %17021 = vst [vmem:[#allocation32_spill] sm:$0xff] %v13761_v28 }
 0x535   : > { %5069 = vmatmul.mubr.f32.vlgmr.msra.gmra.mrb[8].mxu0 %v13524_v24 }
 0x536   : > { %11024 = vmatpush1.bf16.msra.mxu0 %v13511_v35  ;;  %5074 = vmatprep.mubr.f32.mxu0 %v16872_v4  ;;  %v13602_v35 = vand.u32 4294901760, %v5211_v17 }
 0x537   : > { %11026 = vmatprep.subr.bf16.mxu0 %v13370_v6 }
 0x538   : > { %v13618_v59 = vsub.f32 %v5211_v17, %v13602_v35  ;;  %v13705_v17 = vsub.f32 %v9466_v37, %v6021_v50  ;;  %v9478_v37 = vld [vmem:[%s16277_s4 + $0x170] sm:$0xff]  ;;  %v13746_v50 = vsub.f32 %v9475_v18, %v6035_v13  ;;  %v9484_v13 = vld [vmem:[%s16277_s4 + $0x1a0] sm:$0xff] }
 0x539   : > { %5076 = vmatmul.mubr.f32.gmra.mrb[10].mxu0 %v13531_v16  ;;  %v9482_v18 = vld [vmem:[%s16277_s4 + $0x190] sm:$0xff]  ;;  %v6057_v22 = vand.u32 4294901760, %v9484_v13 }
 0x53a   : > { %5081 = vmatprep.mubr.f32.mxu0 %v16872_v4  ;;  %v16411_v21 = vand.u32 4294901760, %v13618_v59  ;;  %17011 = vst [vmem:[#allocation19_spill] sm:$0xff] %v13705_v17  ;;  %17020 = vst [vmem:[#allocation30_spill] sm:$0xff] %v13746_v50 }
 0x53c   : > { %v13647_v30 = vsub.f32 %v13618_v59, %v16411_v21  ;;  %v6055_v21 = vand.u32 4294901760, %v9485_v51 }
 0x53d   : > { %5083 = vmatmul.mubr.f32.gmra.mrb[12].mxu0 %v13540_v62 }
 0x53e   : > { %5088 = vmatprep.mubr.f32.mxu0 %v16872_v4 }
 0x541   : > { %5090 = vmatmul.mubr.f32.gmra.mrb[14].mxu0 %v13548_v56 }
 0x542   : > { %5095 = vmatprep.mubr.f32.mxu0 %v16872_v4 }
 0x545   : > { %5097 = vmatmul.mubr.f32.gmra.mrb[16].mxu0 %v13553_v23 }
 0x546   : > { %5171 = vmatprep.mubr.f32.mxu0 %v16872_v4 }
 0x549   : > { %5173 = vmatmul.mubr.f32.vlgmr.msra.gmra.mrb[8].mxu0 %v13524_v24  ;;  %v5295_v24 = vand.u32 4294901760, %v13640_v8  ;;  %v17034_v8 = vpack.c.bf16 %v13368_v58, %v13360_v11 }
 0x54a   : > { %11028 = vmatpush1.bf16.msra.mxu0 %v13364_v2  ;;  %5178 = vmatprep.mubr.f32.mxu0 %v16872_v4 }
 0x54b   : > { %11030 = vmatprep.subr.bf16.mxu0 %v13388_v34  ;;  %v13650_v34 = vsub.f32 %v5217_v32, %v13628_v1  ;;  %v13723_v32 = vsub.f32 %v9471_v27, %v6027_v55  ;;  %v9480_v27 = vld [vmem:[%s16277_s4 + $0x180] sm:$0xff]  ;;  %v13759_v55 = vand.u32 4294901760, %v13664_v52 }
 0x54d   : > { %5180 = vmatmul.mubr.f32.gmra.mrb[10].mxu0 %v13531_v16  ;;  %17015 = vst [vmem:[#allocation23_spill] sm:$0xff] %v13723_v32  ;;  %v6053_v16 = vand.u32 4294901760, %v9482_v18  ;;  %v13792_v57 = vsub.f32 %v13664_v52, %v13759_v55  ;;  %v13810_v52 = vsub.f32 %v9484_v13, %v6057_v22  ;;  %v9492_v13 = vld [vmem:[%s16277_s4 + $0x1e0] sm:$0xff] }
 0x54e   : > { %5185 = vmatprep.mubr.f32.mxu0 %v16872_v4 }
 0x54f   : > { %17036 = vst [vmem:[#allocation8_spill] sm:$0xff] %v13810_v52  ;;  %v5337_v58 = vand.u32 4294901760, %v13792_v57 }
 0x551   : > { %5187 = vmatmul.mubr.f32.gmra.mrb[12].mxu0 %v13540_v62  ;;  %v6019_v62 = vand.u32 4294901760, %v9467_v39 }
 0x552   : > { %5192 = vmatprep.mubr.f32.mxu0 %v16872_v4 }
 0x553   : > { %v13699_v46 = vpack.c.bf16 %v6023_v63, %v6019_v62  ;;  %v13701_v9 = vsub.f32 %v9467_v39, %v6019_v62  ;;  %v9481_v39 = vld [vmem:[%s16277_s4 + $0x188] sm:$0xff]  ;;  %v13742_v63 = vsub.f32 %v9470_v40, %v6029_v19  ;;  %v13763_v40 = vsub.f32 %v9477_v10, %v6039_v3 }
 0x554   : > { %v13779_v10 = vpack.c.bf16 %v6041_v44, %v6037_v31  ;;  %v6051_v3 = vand.u32 4294901760, %v9483_v48 }
 0x555   : > { %17008 = vst [vmem:[#allocation13_spill] sm:$0xff] %v13699_v46  ;;  %17009 = vst [vmem:[#allocation17_spill] sm:$0xff] %v13701_v9  ;;  %5194 = vmatmul.mubr.f32.gmra.mrb[14].mxu0 %v13548_v56  ;;  %11210 = vmatprep.subr.bf16.mxu1 %v13699_v46  ;;  %v6033_v56 = vand.u32 4294901760, %v9472_v41 }
 0x556   : > { %5199 = vmatprep.mubr.f32.mxu0 %v16872_v4  ;;  %11212 = vmatpush1.bf16.msra.mxu1 %v13717_v43  ;;  %17018 = vst [vmem:[#allocation28_spill] sm:$0xff] %v13742_v63  ;;  %17022 = vst [vmem:[#allocation34_spill] sm:$0xff] %v13763_v40 }
 0x557   : > { %11214 = vmatprep.subr.bf16.mxu1 %v13721_v36  ;;  %v13740_v62 = vpack.c.bf16 %v6033_v56, %v6029_v19  ;;  %v13744_v15 = vsub.f32 %v9472_v41, %v6033_v56  ;;  %v13765_v41 = vsub.f32 %v9474_v61, %v6037_v31  ;;  %v13771_v19 = vsub.f32 %v9476_v47, %v6041_v44 }
 0x558   : > { %v6047_v56 = vand.u32 4294901760, %v9481_v39  ;;  %17026 = vst [vmem:[#allocation47_spill] sm:$0xff] %v13779_v10  ;;  %v6049_v61 = vand.u32 4294901760, %v9480_v27  ;;  %v13796_v44 = vsub.f32 %v9483_v48, %v6051_v3  ;;  %v17039_v48 = vand.u32 4294901760, %v13650_v34 }
 0x559   : > { %17017 = vst [vmem:[#allocation26_spill] sm:$0xff] %v13740_v62  ;;  %17019 = vst [vmem:[#allocation29_spill] sm:$0xff] %v13744_v15  ;;  %5201 = vmatmul.mubr.f32.gmra.mrb[16].mxu0 %v13553_v23  ;;  %v6045_v23 = vand.u32 4294901760, %v9478_v37 }
 0x55a   : > { %17023 = vst [vmem:[#allocation35_spill] sm:$0xff] %v13765_v41  ;;  %5290 = vmatprep.mubr.f32.mxu0 %v16872_v4  ;;  %17024 = vst [vmem:[#allocation38_spill] sm:$0xff] %v13771_v19  ;;  %11216 = vmatpush1.bf16.msra.mxu1 %v13740_v62  ;;  %v13782_v0 = vpack.c.bf16 %v6047_v56, %v6043_v53  ;;  %v13784_v47 = vsub.f32 %v9481_v39, %v6047_v56 }
 0x55b   : > { %11218 = vmatprep.subr.bf16.mxu1 %v13761_v28  ;;  %v13786_v26 = vsub.f32 %v9478_v37, %v6045_v23  ;;  %v13794_v31 = vsub.f32 %v9480_v27, %v6049_v61  ;;  %17031 = vst [vmem:[#allocation12_spill] sm:$0xff] %v13796_v44  ;;  %v13800_v39 = vsub.f32 %v9485_v51, %v6055_v21  ;;  %v5317_v27 = vand.u32 4294901760, %v13688_v54 }
 0x55c   : > { %17027 = vst [vmem:[#allocation48_spill] sm:$0xff] %v13782_v0  ;;  %17028 = vst [vmem:[#allocation54_spill] sm:$0xff] %v13784_v47  ;;  %v13802_v53 = vsub.f32 %v9482_v18, %v6053_v16  ;;  %v13813_v37 = vpack.c.bf16 %v6055_v21, %v6051_v3  ;;  %v5327_v11 = vsub.f32 %v13650_v34, %v17039_v48  ;;  %v6073_v3 = vand.u32 4294901760, %v9492_v13 }
 0x55d   : > { %17029 = vst [vmem:[#allocation52_spill] sm:$0xff] %v13786_v26  ;;  %5296 = vmatmul.mubr.f32.vlgmr.msra.gmra.mrb[8].mxu0 %v5295_v24  ;;  %17030 = vst [vmem:[#allocation11_spill] sm:$0xff] %v13794_v31  ;;  %v13808_v24 = vpack.c.bf16 %v6049_v61, %v6045_v23  ;;  %v13824_v51 = vpack.c.bf16 %v6057_v22, %v6053_v16  ;;  %v17041_v22 = vpack.c.bf16 %v13366_v33, %v13358_v29  ;;  %v9493_v16 = vld [vmem:[%s16277_s4 + $0x1e8] sm:$0xff]  ;;  %v9490_v23 = vld [vmem:[%s16277_s4 + $0x1d0] sm:$0xff] }
 0x55e   : > { %11032 = vmatpush1.bf16.msra.mxu0 %v13386_v42  ;;  %5301 = vmatprep.mubr.f32.mxu0 %v16872_v4  ;;  %17032 = vst [vmem:[#allocation5_spill] sm:$0xff] %v13800_v39  ;;  %17033 = vst [vmem:[#allocation6_spill] sm:$0xff] %v13802_v53  ;;  %v17038_v42 = vand.u32 4294901760, %v13647_v30  ;;  %v5328_v21 = vand.u32 4294901760, %v5327_v11  ;;  %v5338_v30 = vsub.f32 %v13792_v57, %v5337_v58  ;;  %v17042_v29 = vand.u32 4294901760, %v13613_v25  ;;  %v9497_v11 = vld [vmem:[%s16277_s4 + $0x208] sm:$0xff] }
 0x55f   : > { %11034 = vmatprep.subr.bf16.mxu0 %v17034_v8  ;;  %11220 = vmatpush1.bf16.msra.mxu1 %v13779_v10  ;;  %17035 = vst [vmem:[#allocation7_spill] sm:$0xff] %v13808_v24  ;;  %17037 = vst [vmem:[#allocation9_spill] sm:$0xff] %v13813_v37  ;;  %v17043_v33 = vand.u32 4294901760, %v13618_v59  ;;  %v6071_v56 = vand.u32 4294901760, %v9493_v16  ;;  %v6069_v61 = vand.u32 4294901760, %v9490_v23 }
 0x560   : > { %11222 = vmatprep.subr.bf16.mxu1 %v13782_v0  ;;  %17040 = vst [vmem:[#allocation14_spill] sm:$0xff] %v13824_v51  ;;  %v5339_v54 = vand.u32 4294901760, %v5338_v30  ;;  %v6079_v30 = vand.u32 4294901760, %v9497_v11 }
 0x561   : > { %5307 = vmatmul.mubr.f32.gmra.mrb[10].mxu0 %v17038_v42 }
 0x562   : > { %5312 = vmatprep.mubr.f32.mxu0 %v16872_v4 }
 0x563   : > { %11224 = vmatpush1.bf16.msra.mxu1 %v13808_v24 }
 0x564   : > { %11226 = vmatprep.subr.bf16.mxu1 %v13813_v37 }
 0x565   : > { %5318 = vmatmul.mubr.f32.gmra.mrb[12].mxu0 %v5317_v27  ;;  %v13943_v27 = vpack.c.bf16 %v6073_v3, %v6069_v61 }
 0x566   : > { %5323 = vmatprep.mubr.f32.mxu0 %v16872_v4 }
 0x567   : > { %11228 = vmatpush1.bf16.msra.mxu1 %v13824_v51  ;;  %17049 = vst [vmem:[#allocation22_spill] sm:$0xff] %v13943_v27 }
 0x569   : > { %5329 = vmatmul.mubr.f32.gmra.mrb[14].mxu0 %v5328_v21 }
 0x56a   : > { %5334 = vmatprep.mubr.f32.mxu0 %v16872_v4 }
 0x56d   : > { %5340 = vmatmul.mubr.f32.gmra.mrb[16].mxu0 %v5339_v54  ;;  %v9494_v54 = vld [vmem:[%s16277_s4 + $0x1f0] sm:$0xff] }
 0x56e   : > { %5430 = vmatprep.mubr.f32.mxu0 %v16872_v4 }
 0x571   : > { %5432 = vmatmul.mubr.f32.vlgmr.msra.gmra.mrb[8].mxu0 %v13599_v5 }
 0x572   : > { %11036 = vmatpush1.bf16.msra.mxu0 %v17041_v22  ;;  %5437 = vmatprep.mubr.f32.mxu0 %v16872_v4  ;;  %v9496_v22 = vld [vmem:[%s16277_s4 + $0x200] sm:$0xff] }
 0x573   : > { %11038 = vmatprep.subr.bf16.mxu0 %v13370_v6 }
 0x575   : > { %5439 = vmatmul.mubr.f32.gmra.mrb[10].mxu0 %v13602_v35 }
 0x576   : > { %5444 = vmatprep.mubr.f32.mxu0 %v16872_v4 }
 0x579   : > { %5446 = vmatmul.mubr.f32.gmra.mrb[12].mxu0 %v13623_v12 }
 0x57a   : > { %5451 = vmatprep.mubr.f32.mxu0 %v16872_v4 }
 0x57d   : > { %5453 = vmatmul.mubr.f32.gmra.mrb[14].mxu0 %v13628_v1 }
 0x57e   : > { %5458 = vmatprep.mubr.f32.mxu0 %v16872_v4 }
 0x581   : > { %5460 = vmatmul.mubr.f32.gmra.mrb[16].mxu0 %v13759_v55 }
 0x582   : > { %5538 = vmatprep.mubr.f32.mxu0 %v16872_v4 }
 0x585   : > { %5541 = vmatmul.mubr.f32.vlgmr.msra.gmra.mrb[8].mxu0 %v13613_v25 }
 0x586   : > { %11040 = vmatpush1.bf16.msra.mxu0 %v13364_v2  ;;  %5546 = vmatprep.mubr.f32.mxu0 %v16872_v4 }
 0x587   : > { %11042 = vmatprep.subr.bf16.mxu0 %v13384_v49  ;;  %v17044_v49 = vand.u32 4294901760, %v13635_v7 }
 0x589   : > { %5549 = vmatmul.mubr.f32.gmra.mrb[10].mxu0 %v13618_v59 }
 0x58a   : > { %5554 = vmatprep.mubr.f32.mxu0 %v16872_v4 }
 0x58d   : > { %5557 = vmatmul.mubr.f32.gmra.mrb[12].mxu0 %v13635_v7 }
 0x58e   : > { %5562 = vmatprep.mubr.f32.mxu0 %v16872_v4 }
 0x591   : > { %5565 = vmatmul.mubr.f32.gmra.mrb[14].mxu0 %v13650_v34  ;;  %v9491_v34 = vld [vmem:[%s16277_s4 + $0x1d8] sm:$0xff] }
 0x592   : > { %5570 = vmatprep.mubr.f32.mxu0 %v16872_v4  ;;  %v6067_v18 = vand.u32 4294901760, %v9491_v34 }
 0x594   : > { %v13939_v8 = vpack.c.bf16 %v6071_v56, %v6067_v18 }
 0x595   : > { %5573 = vmatmul.mubr.f32.gmra.mrb[16].mxu0 %v13792_v57  ;;  %v17045_v57 = vmov %v17039_v48  ;;  %v9495_v48 = vld [vmem:[%s16277_s4 + $0x1f8] sm:$0xff] }
 0x596   : > { %5647 = vmatprep.mubr.f32.mxu0 %v16872_v4  ;;  %17048 = vst [vmem:[#allocation16_spill] sm:$0xff] %v13939_v8  ;;  %v6075_v21 = vand.u32 4294901760, %v9495_v48 }
 0x599   : > { %5651 = vmatmul.mubr.f32.vlgmr.msra.gmra.mrb[8].mxu0 %v17042_v29  ;;  %v6077_v29 = vand.u32 4294901760, %v9494_v54 }
 0x59a   : > { %11044 = vmatpush1.bf16.msra.mxu0 %v13381_v45  ;;  %5656 = vmatprep.mubr.f32.mxu0 %v16872_v4 }
 0x59b   : > { %11046 = vmatprep.subr.bf16.mxu0 %v13370_v6  ;;  %v9489_v6 = vld [vmem:[%s16277_s4 + $0x1c8] sm:$0xff] }
 0x59d   : > { %5660 = vmatmul.mubr.f32.gmra.mrb[10].mxu0 %v17043_v33  ;;  %v6081_v33 = vand.u32 4294901760, %v9496_v22 }
 0x59e   : > { %5665 = vmatprep.mubr.f32.mxu0 %v16872_v4 }
 0x5a1   : > { %5669 = vmatmul.mubr.f32.gmra.mrb[12].mxu0 %v17044_v49 }
 0x5a2   : > { %5674 = vmatprep.mubr.f32.mxu0 %v16872_v4 }
 0x5a5   : > { %5678 = vmatmul.mubr.f32.gmra.mrb[14].mxu0 %v17045_v57 }
 0x5a6   : > { %5683 = vmatprep.mubr.f32.mxu0 %v16872_v4 }
 0x5a9   : > { %5687 = vmatmul.mubr.f32.gmra.mrb[16].mxu0 %v5337_v58 }
 0x5aa   : > { %5769 = vmatprep.mubr.f32.mxu0 %v16872_v4 }
 0x5ad   : > { %5771 = vmatmul.mubr.f32.vlgmr.msra.gmra.mrb[8].mxu0 %v13599_v5 }
 0x5ae   : > { %11048 = vmatpush1.bf16.msra.mxu0 %v13364_v2  ;;  %5776 = vmatprep.mubr.f32.mxu0 %v16872_v4  ;;  %v9487_v2 = vld [vmem:[%s16277_s4 + $0x1b8] sm:$0xff] }
 0x5af   : > { %11050 = vmatprep.subr.bf16.mxu0 %v13699_v46  ;;  %v6059_v45 = vand.u32 4294901760, %v9487_v2 }
 0x5b1   : > { %5778 = vmatmul.mubr.f32.gmra.mrb[10].mxu0 %v13602_v35  ;;  %v13963_v49 = vsub.f32 %v9487_v2, %v6059_v45 }
 0x5b2   : > { %5783 = vmatprep.mubr.f32.mxu0 %v16872_v4 }
 0x5b3   : > { %17050 = vst [vmem:[#allocation25_spill] sm:$0xff] %v13963_v49 }
 0x5b5   : > { %5785 = vmatmul.mubr.f32.gmra.mrb[12].mxu0 %v13623_v12 }
 0x5b6   : > { %5790 = vmatprep.mubr.f32.mxu0 %v16872_v4 }
 0x5b9   : > { %5792 = vmatmul.mubr.f32.gmra.mrb[14].mxu0 %v13628_v1 }
 0x5ba   : > { %5797 = vmatprep.mubr.f32.mxu0 %v16872_v4 }
 0x5bd   : > { %5799 = vmatmul.mubr.f32.gmra.mrb[16].mxu0 %v13759_v55 }
 0x5be   : > { %5873 = vmatprep.mubr.f32.mxu0 %v16872_v4 }
 0x5c1   : > { %5875 = vmatmul.mubr.f32.vlgmr.msra.gmra.mrb[8].mxu0 %v13599_v5  ;;  %v6063_v5 = vand.u32 4294901760, %v9489_v6 }
 0x5c2   : > { %5880 = vmatprep.mubr.f32.mxu0 %v16872_v4  ;;  %11052 = vmatpush1.bf16.msra.mxu0 %v13717_v43 }
 0x5c3   : > { %11054 = vmatprep.subr.bf16.mxu0 %v13721_v36  ;;  %v13965_v57 = vsub.f32 %v9489_v6, %v6063_v5 }
 0x5c5   : > { %5882 = vmatmul.mubr.f32.gmra.mrb[10].mxu0 %v13602_v35  ;;  %v9488_v35 = vld [vmem:[%s16277_s4 + $0x1c0] sm:$0xff]  ;;  %17051 = vst [vmem:[#allocation27_spill] sm:$0xff] %v13965_v57 }
 0x5c6   : > { %5887 = vmatprep.mubr.f32.mxu0 %v16872_v4  ;;  %11056 = vmatpush1.bf16.msra.mxu0 %v13740_v62  ;;  %v6065_v59 = vand.u32 4294901760, %v9488_v35 }
 0x5c7   : > { %11058 = vmatprep.subr.bf16.mxu0 %v13761_v28  ;;  %v16434_v28 = vand.u32 4294901760, %v13730_v38 }
 0x5c9   : > { %5889 = vmatmul.mubr.f32.gmra.mrb[12].mxu0 %v13623_v12  ;;  %v13915_v12 = vpack.c.bf16 %v6063_v5, %v6059_v45  ;;  %v13993_v45 = vld [vmem:[%s16277_s4 + $0x210] sm:$0xff] }
 0x5ca   : > { %5894 = vmatprep.mubr.f32.mxu0 %v16872_v4  ;;  %11060 = vmatpush1.bf16.msra.mxu0 %v13779_v10  ;;  %v13997_v5 = vand.u32 4294901760, %v13993_v45 }
 0x5cb   : > { %11062 = vmatprep.subr.bf16.mxu0 %v13782_v0  ;;  %17046 = vst [vmem:[#allocation10_spill] sm:$0xff] %v13915_v12  ;;  %11230 = vmatprep.subr.bf16.mxu1 %v13915_v12 }
 0x5cc   : > { %17058 = vst [vmem:[#allocation44_spill] sm:$0xff] %v13997_v5 }
 0x5cd   : > { %5896 = vmatmul.mubr.f32.gmra.mrb[14].mxu0 %v13628_v1  ;;  %v13917_v1 = vpop.f32.mrb[8].mxu1 }
 0x5ce   : > { %5901 = vmatprep.mubr.f32.mxu0 %v16872_v4  ;;  %11064 = vmatpush1.bf16.msra.mxu0 %v13808_v24  ;;  %v9486_v4 = vld [vmem:[%s16277_s4 + $0x1b0] sm:$0xff] }
 0x5cf   : > { %11066 = vmatprep.subr.bf16.mxu0 %v13813_v37  ;;  %v6061_v25 = vand.u32 4294901760, %v9486_v4  ;;  %v13973_v37 = vpack.c.bf16 %v6081_v33, %v6077_v29 }
 0x5d1   : > { %5903 = vmatmul.mubr.f32.gmra.mrb[16].mxu0 %v13759_v55  ;;  %v13919_v7 = vpack.c.bf16 %v6065_v59, %v6061_v25  ;;  %v13928_v55 = vpop.f32.mrb[9].mxu1  ;;  %17055 = vst [vmem:[#allocation39_spill] sm:$0xff] %v13973_v37 }
 0x5d2   : > { %11068 = vmatpush1.bf16.msra.mxu0 %v13824_v51  ;;  %v13971_v51 = vpack.c.bf16 %v6079_v30, %v6075_v21 }
 0x5d3   : > { %17047 = vst [vmem:[#allocation15_spill] sm:$0xff] %v13919_v7  ;;  %11070 = vmatprep.subr.bf16.mxu0 %v13915_v12  ;;  %11232 = vmatpush1.bf16.msra.mxu1 %v13919_v7  ;;  %v13969_v12 = vsub.f32 %v9488_v35, %v6065_v59  ;;  %v14001_v35 = vsub.f32 %v9493_v16, %v6071_v56 }
 0x5d4   : > { %11234 = vmatprep.subr.bf16.mxu1 %v13939_v8  ;;  %17054 = vst [vmem:[#allocation37_spill] sm:$0xff] %v13971_v51  ;;  %v14005_v59 = vsub.f32 %v9492_v13, %v6073_v3  ;;  %v14023_v13 = vsub.f32 %v9496_v22, %v6081_v33 }
 0x5d5   : > { %17053 = vst [vmem:[#allocation33_spill] sm:$0xff] %v13969_v12  ;;  %17060 = vst [vmem:[#allocation46_spill] sm:$0xff] %v14001_v35 }
 0x5d6   : > { %11072 = vmatpush1.bf16.msra.mxu0 %v13919_v7  ;;  %v13967_v7 = vsub.f32 %v9486_v4, %v6061_v25  ;;  %v13999_v4 = vsub.f32 %v9491_v34, %v6067_v18  ;;  %v14003_v25 = vsub.f32 %v9490_v23, %v6069_v61  ;;  %17062 = vst [vmem:[#allocation50_spill] sm:$0xff] %v14005_v59  ;;  %17066 = vst [vmem:[#allocation57_spill] sm:$0xff] %v14023_v13 }
 0x5d7   : > { %11074 = vmatprep.subr.bf16.mxu0 %v13939_v8  ;;  %11236 = vmatpush1.bf16.msra.mxu1 %v13943_v27  ;;  %v14014_v8 = vsub.f32 %v9495_v48, %v6075_v21  ;;  %v14016_v34 = vsub.f32 %v9497_v11, %v6079_v30  ;;  %v14021_v23 = vsub.f32 %v9494_v54, %v6077_v29  ;;  %v16426_v30 = vand.u32 4294901760, %v13701_v9 }
 0x5d8   : > { %17052 = vst [vmem:[#allocation31_spill] sm:$0xff] %v13967_v7  ;;  %11238 = vmatprep.subr.bf16.mxu1 %v13971_v51  ;;  %17059 = vst [vmem:[#allocation45_spill] sm:$0xff] %v13999_v4  ;;  %v16428_v54 = vand.u32 4294901760, %v13703_v14 }
 0x5d9   : > { %17061 = vst [vmem:[#allocation49_spill] sm:$0xff] %v14003_v25  ;;  %17063 = vst [vmem:[#allocation53_spill] sm:$0xff] %v14014_v8  ;;  %v6185_v29 = vsub.f32 %v13701_v9, %v16426_v30  ;;  %v16433_v30 = vand.u32 4294901760, %v13723_v32 }
 0x5da   : > { %11076 = vmatpush1.bf16.msra.mxu0 %v13943_v27  ;;  %v13981_v27 = vld [vmem:[%s16277_s4 + $0x218] sm:$0xff]  ;;  %17064 = vst [vmem:[#allocation55_spill] sm:$0xff] %v14016_v34  ;;  %17065 = vst [vmem:[#allocation56_spill] sm:$0xff] %v14021_v23  ;;  %v6197_v33 = vsub.f32 %v13703_v14, %v16428_v54 }
 0x5db   : > { %17056 = vst [vmem:[#allocation42_spill] sm:$0xff] %v13981_v27  ;;  %11078 = vmatprep.subr.bf16.mxu0 %v13971_v51  ;;  %11240 = vmatpush1.bf16.msra.mxu1 %v13973_v37  ;;  %v13988_v6 = vand.u32 4294901760, %v13981_v27  ;;  %v5910_v51 = vld [vmem:[%s16277_s4 + $0x8] sm:$0xff]  ;;  %v6209_v54 = vsub.f32 %v13723_v32, %v16433_v30 }
 0x5dc   : > { %v7107_v18 = vand.u32 4294901760, %v5910_v51 }
 0x5dd   : > { %17057 = vst [vmem:[#allocation43_spill] sm:$0xff] %v13988_v6  ;;  %7033 = vmatprep.subr.mxu1 %v13988_v6 }
 0x5de   : > { %11080 = vmatpush1.bf16.msra.mxu0 %v13973_v37  ;;  %v5912_v37 = vld [vmem:[%s16277_s4 + $0x18] sm:$0xff]  ;;  %v14032_v48 = vsub.f32 %v5910_v51, %v7107_v18  ;;  %v6186_v51 = vand.u32 4294901760, %v6185_v29 }
 0x5df   : > { %v7111_v56 = vand.u32 4294901760, %v5912_v37  ;;  %6084 = vmatprep.subr.mxu0 %v13988_v6  ;;  %7035 = vmatpush1.msra.mxu1 %v13997_v5 }
 0x5e0   : > { %17068 = vst [vmem:[#allocation59_spill] sm:$0xff] %v14032_v48 }
 0x5e1   : > { %v14029_v3 = vpack.c.bf16 %v7111_v56, %v7107_v18  ;;  %v14034_v11 = vsub.f32 %v5912_v37, %v7111_v56  ;;  %v6198_v18 = vand.u32 4294901760, %v6197_v33  ;;  %v16429_v37 = vand.u32 4294901760, %v13705_v17 }
 0x5e2   : > { %6086 = vmatpush1.msra.mxu0 %v13997_v5  ;;  %v16430_v56 = vand.u32 4294901760, %v13719_v20 }
 0x5e3   : > { %17067 = vst [vmem:[#allocation58_spill] sm:$0xff] %v14029_v3  ;;  %11242 = vmatprep.subr.bf16.mxu1 %v14029_v3  ;;  %17069 = vst [vmem:[#allocation60_spill] sm:$0xff] %v14034_v11  ;;  %v11081_v3 = vpack.c.bf16 %v6198_v18, %v6186_v51  ;;  %v6191_v0 = vsub.f32 %v13705_v17, %v16429_v37  ;;  %v6221_v51 = vsub.f32 %v13730_v38, %v16434_v28 }
 0x5e4   : > { %v6203_v10 = vsub.f32 %v13719_v20, %v16430_v56  ;;  %v16438_v18 = vand.u32 4294901760, %v13742_v63  ;;  %v6210_v56 = vand.u32 4294901760, %v6209_v54  ;;  %v16437_v28 = vand.u32 4294901760, %v13746_v50 }
 0x5e5   : > { %11082 = vmatprep.subr.bf16.mxu0 %v11081_v3  ;;  %v6192_v29 = vand.u32 4294901760, %v6191_v0  ;;  %v6222_v62 = vand.u32 4294901760, %v6221_v51  ;;  %v16436_v0 = vand.u32 4294901760, %v13744_v15  ;;  %v16442_v51 = vand.u32 4294901760, %v13771_v19 }
 0x5e6   : > { %v6204_v33 = vand.u32 4294901760, %v6203_v10  ;;  %v6215_v3 = vsub.f32 %v13742_v63, %v16438_v18  ;;  %v6233_v54 = vsub.f32 %v13746_v50, %v16437_v28  ;;  %v16444_v18 = vand.u32 4294901760, %v13773_v60  ;;  %v5930_v50 = vld [vmem:[%s16277_s4 + $0xa8] sm:$0xff] }
 0x5e7   : > { %v14071_v10 = vpack.c.bf16 %v6222_v62, %v6210_v56  ;;  %v6227_v30 = vsub.f32 %v13744_v15, %v16436_v0  ;;  %v6251_v0 = vsub.f32 %v13771_v19, %v16442_v51  ;;  %v16447_v51 = vand.u32 4294901760, %v13794_v31 }
 0x5e8   : > { %v14065_v37 = vpack.c.bf16 %v6204_v33, %v6192_v29  ;;  %v6216_v36 = vand.u32 4294901760, %v6215_v3  ;;  %v16445_v29 = vand.u32 4294901760, %v13763_v40  ;;  %v16441_v33 = vand.u32 4294901760, %v13765_v41 }
 0x5e9   : > { %17071 = vst [vmem:[#allocation62_spill] sm:$0xff] %v14071_v10  ;;  %v6228_v43 = vand.u32 4294901760, %v6227_v30  ;;  %v6234_v3 = vand.u32 4294901760, %v6233_v54  ;;  %v6252_v27 = vand.u32 4294901760, %v6251_v0  ;;  %v6257_v54 = vsub.f32 %v13773_v60, %v16444_v18  ;;  %v5925_v60 = vld [vmem:[%s16277_s4 + $0x80] sm:$0xff] }
 0x5ea   : > { %17070 = vst [vmem:[#allocation61_spill] sm:$0xff] %v14065_v37  ;;  %v6245_v56 = vsub.f32 %v13763_v40, %v16445_v29  ;;  %v6239_v30 = vsub.f32 %v13765_v41, %v16441_v33  ;;  %v16465_v10 = vand.u32 4294901760, %v14021_v23  ;;  %v5936_v40 = vld [vmem:[%s16277_s4 + $0xd8] sm:$0xff]  ;;  %v7147_v38 = vand.u32 4294901760, %v5930_v50 }
 0x5eb   : > { %v14083_v62 = vpack.c.bf16 %v6228_v43, %v6216_v36  ;;  %v16443_v43 = vand.u32 4294901760, %v13784_v47 }
 0x5ec   : > { %v6246_v28 = vand.u32 4294901760, %v6245_v56  ;;  %v6240_v46 = vand.u32 4294901760, %v6239_v30  ;;  %v16446_v56 = vand.u32 4294901760, %v13786_v26  ;;  %v6258_v30 = vand.u32 4294901760, %v6257_v54 }
 0x5ed   : > { %17072 = vst [vmem:[#allocation63_spill] sm:$0xff] %v14083_v62  ;;  %v6269_v33 = vsub.f32 %v13784_v47, %v16443_v43  ;;  %v16449_v43 = vand.u32 4294901760, %v13800_v39  ;;  %v5927_v47 = vld [vmem:[%s16277_s4 + $0x90] sm:$0xff] }
 0x5ee   : > { %v14096_v36 = vpack.c.bf16 %v6246_v28, %v6234_v3  ;;  %v14098_v62 = vpack.c.bf16 %v6252_v27, %v6240_v46  ;;  %v6263_v28 = vsub.f32 %v13786_v26, %v16446_v56  ;;  %v6275_v46 = vsub.f32 %v13794_v31, %v16447_v51 }
 0x5ef   : > { %v6270_v0 = vand.u32 4294901760, %v6269_v33  ;;  %v16448_v3 = vand.u32 4294901760, %v13796_v44  ;;  %v6293_v54 = vsub.f32 %v13800_v39, %v16449_v43  ;;  %v16450_v51 = vand.u32 4294901760, %v13802_v53 }
 0x5f0   : > { %17073 = vst [vmem:[#allocation36_spill] sm:$0xff] %v14096_v36  ;;  %17074 = vst [vmem:[#allocation40_spill] sm:$0xff] %v14098_v62  ;;  %v6264_v18 = vand.u32 4294901760, %v6263_v28  ;;  %v6276_v29 = vand.u32 4294901760, %v6275_v46  ;;  %v16452_v43 = vand.u32 4294901760, %v13963_v49 }
 0x5f1   : > { %v14114_v27 = vpack.c.bf16 %v6270_v0, %v6258_v30  ;;  %v6281_v33 = vsub.f32 %v13796_v44, %v16448_v3  ;;  %v16451_v30 = vand.u32 4294901760, %v13810_v52  ;;  %v6287_v28 = vsub.f32 %v13802_v53, %v16450_v51 }
 0x5f2   : > { %v14124_v56 = vpack.c.bf16 %v6276_v29, %v6264_v18  ;;  %v16453_v18 = vand.u32 4294901760, %v13965_v57 }
 0x5f3   : > { %17075 = vst [vmem:[#allocation64_spill] sm:$0xff] %v14114_v27  ;;  %v6282_v0 = vand.u32 4294901760, %v6281_v33  ;;  %v6294_v27 = vand.u32 4294901760, %v6293_v54  ;;  %v6299_v46 = vsub.f32 %v13810_v52, %v16451_v30  ;;  %v6288_v29 = vand.u32 4294901760, %v6287_v28 }
 0x5f4   : > { %17076 = vst [vmem:[#allocation65_spill] sm:$0xff] %v14124_v56  ;;  %v6305_v33 = vsub.f32 %v13963_v49, %v16452_v43  ;;  %v6317_v54 = vsub.f32 %v13965_v57, %v16453_v18  ;;  %v16454_v30 = vand.u32 4294901760, %v13967_v7  ;;  %v16456_v18 = vand.u32 4294901760, %v13999_v4  ;;  %v5928_v57 = vld [vmem:[%s16277_s4 + $0x98] sm:$0xff] }
 0x5f5   : > { %v14134_v3 = vpack.c.bf16 %v6294_v27, %v6282_v0  ;;  %v6300_v56 = vand.u32 4294901760, %v6299_v46  ;;  %v16455_v27 = vand.u32 4294901760, %v13969_v12 }
 0x5f6   : > { %v6306_v0 = vand.u32 4294901760, %v6305_v33  ;;  %v6311_v28 = vsub.f32 %v13967_v7, %v16454_v30  ;;  %v6329_v33 = vsub.f32 %v13999_v4, %v16456_v18  ;;  %v16458_v30 = vand.u32 4294901760, %v14003_v25  ;;  %v5921_v7 = vld [vmem:[%s16277_s4 + $0x60] sm:$0xff] }
 0x5f7   : > { %17077 = vst [vmem:[#allocation66_spill] sm:$0xff] %v14134_v3  ;;  %v14144_v51 = vpack.c.bf16 %v6300_v56, %v6288_v29  ;;  %v6318_v3 = vand.u32 4294901760, %v6317_v54  ;;  %v6323_v46 = vsub.f32 %v13969_v12, %v16455_v27  ;;  %v16457_v56 = vand.u32 4294901760, %v14001_v35  ;;  %v5923_v12 = vld [vmem:[%s16277_s4 + $0x70] sm:$0xff] }
 0x5f8   : > { %v6312_v29 = vand.u32 4294901760, %v6311_v28  ;;  %v16461_v27 = vand.u32 4294901760, %v14005_v59  ;;  %v6330_v28 = vand.u32 4294901760, %v6329_v33  ;;  %v6335_v18 = vsub.f32 %v14003_v25, %v16458_v30  ;;  %v5922_v25 = vld [vmem:[%s16277_s4 + $0x68] sm:$0xff] }
 0x5f9   : > { %17078 = vst [vmem:[#allocation67_spill] sm:$0xff] %v14144_v51  ;;  %v14154_v43 = vpack.c.bf16 %v6318_v3, %v6306_v0  ;;  %v6324_v51 = vand.u32 4294901760, %v6323_v46  ;;  %v6341_v54 = vsub.f32 %v14001_v35, %v16457_v56  ;;  %v16463_v0 = vand.u32 4294901760, %v14032_v48  ;;  %v5924_v35 = vld [vmem:[%s16277_s4 + $0x78] sm:$0xff] }
 0x5fa   : > { %v13941_v42 = vpop.f32.mrb[10].mxu1  ;;  %v6347_v56 = vsub.f32 %v14005_v59, %v16461_v27  ;;  %v6336_v33 = vand.u32 4294901760, %v6335_v18  ;;  %v16467_v30 = vand.u32 4294901760, %v14014_v8  ;;  %v16464_v27 = vand.u32 4294901760, %v14016_v34 }
 0x5fb   : > { %v13952_v58 = vpop.f32.mrb[11].mxu1  ;;  %17079 = vst [vmem:[#allocation68_spill] sm:$0xff] %v14154_v43  ;;  %v14166_v3 = vpack.c.bf16 %v6324_v51, %v6312_v29  ;;  %v16462_v43 = vand.u32 4294901760, %v14034_v11  ;;  %v6342_v46 = vand.u32 4294901760, %v6341_v54  ;;  %v7273_v62 = vsub.f32 %v14032_v48, %v16463_v0 }
 0x5fc   : > { %v6348_v54 = vand.u32 4294901760, %v6347_v56  ;;  %v6359_v18 = vsub.f32 %v14021_v23, %v16465_v10  ;;  %v14279_v59 = vsub.f32 %v13993_v45, %v13997_v5  ;;  %v5926_v5 = vld [vmem:[%s16277_s4 + $0x88] sm:$0xff]  ;;  %v7135_v39 = vand.u32 4294901760, %v5924_v35 }
 0x5fd   : > { %17080 = vst [vmem:[#allocation69_spill] sm:$0xff] %v14166_v3  ;;  %v7285_v51 = vsub.f32 %v14034_v11, %v16462_v43  ;;  %v14182_v29 = vpack.c.bf16 %v6342_v46, %v6330_v28  ;;  %v7274_v3 = vand.u32 4294901760, %v7273_v62  ;;  %v6353_v43 = vsub.f32 %v14014_v8, %v16467_v30  ;;  %v5911_v30 = vld [vmem:[%s16277_s4 + $0x10] sm:$0xff] }
 0x5fe   : > { %v13975_v24 = vpop.f32.mrb[12].mxu1  ;;  %v14185_v6 = vpack.c.bf16 %v6348_v54, %v6336_v33  ;;  %v16466_v28 = vand.u32 4294901760, %v14023_v13  ;;  %v6365_v62 = vsub.f32 %v14016_v34, %v16464_v27  ;;  %v6360_v46 = vand.u32 4294901760, %v6359_v18  ;;  %v5915_v18 = vld [vmem:[%s16277_s4 + $0x30] sm:$0xff]  ;;  %v5920_v27 = vld [vmem:[%s16277_s4 + $0x58] sm:$0xff]  ;;  %17087 = vst [vmem:[#allocation76_spill] sm:$0xff] %v14279_v59 }
 0x5ff   : > { %v13984_v2 = vpop.f32.mrb[13].mxu1  ;;  %17081 = vst [vmem:[#allocation70_spill] sm:$0xff] %v14182_v29  ;;  %v7286_v36 = vand.u32 4294901760, %v7285_v51  ;;  %v6354_v56 = vand.u32 4294901760, %v6353_v43  ;;  %v5918_v43 = vld [vmem:[%s16277_s4 + $0x48] sm:$0xff]  ;;  %v7121_v23 = vand.u32 4294901760, %v5915_v18  ;;  %v14379_v29 = vsub.f32 %v5930_v50, %v7147_v38 }
 0x600   : > { %17082 = vst [vmem:[#allocation71_spill] sm:$0xff] %v14185_v6  ;;  %v5919_v8 = vld [vmem:[%s16277_s4 + $0x50] sm:$0xff]  ;;  %v7123_v11 = vand.u32 4294901760, %v5918_v43  ;;  %v7127_v4 = vand.u32 4294901760, %v5920_v27  ;;  %v7133_v26 = vand.u32 4294901760, %v5921_v7  ;;  %v7137_v31 = vand.u32 4294901760, %v5923_v12 }
 0x601   : > { %v14189_v37 = vpack.c.bf16 %v7286_v36, %v7274_v3  ;;  %v6371_v36 = vsub.f32 %v14023_v13, %v16466_v28  ;;  %v6366_v3 = vand.u32 4294901760, %v6365_v62  ;;  %v7113_v28 = vand.u32 4294901760, %v5911_v30  ;;  %v5917_v13 = vld [vmem:[%s16277_s4 + $0x40] sm:$0xff]  ;;  %17110 = vst [vmem:[#allocation99_spill] sm:$0xff] %v14379_v29  ;;  %v5940_v50 = vld [vmem:[%s16277_s4 + $0xf8] sm:$0xff] }
 0x602   : > { %v14018_v16 = vpop.f32.mrb[14].mxu1  ;;  %v14358_v15 = vsub.f32 %v5923_v12, %v7137_v31 }
 0x603   : > { %v14025_v61 = vpop.f32.mrb[15].mxu1  ;;  %17083 = vst [vmem:[#allocation72_spill] sm:$0xff] %v14189_v37  ;;  %v6372_v51 = vand.u32 4294901760, %v6371_v36  ;;  %v14204_v33 = vpack.c.bf16 %v6366_v3, %v6354_v56  ;;  %v5914_v56 = vld [vmem:[%s16277_s4 + $0x28] sm:$0xff]  ;;  %v5916_v36 = vld [vmem:[%s16277_s4 + $0x38] sm:$0xff]  ;;  %v14292_v49 = vsub.f32 %v5911_v30, %v7113_v28 }
 0x604   : > { %v7115_v62 = vand.u32 4294901760, %v5914_v56  ;;  %v7119_v10 = vand.u32 4294901760, %v5916_v36  ;;  %17103 = vst [vmem:[#allocation92_spill] sm:$0xff] %v14358_v15 }
 0x605   : > { %17084 = vst [vmem:[#allocation73_spill] sm:$0xff] %v14204_v33  ;;  %v14206_v54 = vpack.c.bf16 %v6372_v51, %v6360_v46  ;;  %v5909_v51 = vld [vmem:[%s16277_s4] sm:$0xff]  ;;  %17089 = vst [vmem:[#allocation78_spill] sm:$0xff] %v14292_v49  ;;  %v7159_v33 = vand.u32 4294901760, %v5936_v40 }
 0x606   : > { %v14036_v21 = vpop.f32.mrb[16].mxu1  ;;  %v7109_v3 = vand.u32 4294901760, %v5909_v51  ;;  %v5913_v46 = vld [vmem:[%s16277_s4 + $0x20] sm:$0xff]  ;;  %v14294_v45 = vpack.c.bf16 %v7119_v10, %v7115_v62  ;;  %v14302_v53 = vsub.f32 %v5914_v56, %v7115_v62  ;;  %v14304_v52 = vsub.f32 %v5916_v36, %v7119_v10 }
 0x607   : > { %v14040_v22 = vpop.f32.mrb[17].mxu1  ;;  %17085 = vst [vmem:[#allocation74_spill] sm:$0xff] %v14206_v54  ;;  %v7117_v0 = vand.u32 4294901760, %v5913_v46  ;;  %v14316_v62 = vsub.f32 %v5915_v18, %v7121_v23  ;;  %v14318_v10 = vpack.c.bf16 %v7127_v4, %v7123_v11  ;;  %v7139_v56 = vand.u32 4294901760, %v5926_v5  ;;  %v5929_v18 = vld [vmem:[%s16277_s4 + $0xa0] sm:$0xff] }
 0x608   : > { %v14272_v34 = vpack.c.bf16 %v7113_v28, %v7109_v3  ;;  %v14281_v48 = vsub.f32 %v5909_v51, %v7109_v3  ;;  %17090 = vst [vmem:[#allocation79_spill] sm:$0xff] %v14294_v45  ;;  %v7125_v3 = vand.u32 4294901760, %v5917_v13  ;;  %v7129_v51 = vand.u32 4294901760, %v5919_v8  ;;  %17091 = vst [vmem:[#allocation80_spill] sm:$0xff] %v14302_v53 }
 0x609   : > { %17092 = vst [vmem:[#allocation81_spill] sm:$0xff] %v14304_v52  ;;  %v14306_v44 = vpack.c.bf16 %v7121_v23, %v7117_v0  ;;  %v14308_v30 = vsub.f32 %v5913_v46, %v7117_v0  ;;  %v7131_v28 = vand.u32 4294901760, %v5922_v25  ;;  %17094 = vst [vmem:[#allocation83_spill] sm:$0xff] %v14318_v10  ;;  %v7143_v36 = vand.u32 4294901760, %v5928_v57  ;;  %v5932_v23 = vld [vmem:[%s16277_s4 + $0xb8] sm:$0xff] }
 0x60a   : > { %17086 = vst [vmem:[#allocation75_spill] sm:$0xff] %v14272_v34  ;;  %17088 = vst [vmem:[#allocation77_spill] sm:$0xff] %v14281_v48  ;;  %v14320_v0 = vsub.f32 %v5918_v43, %v7123_v11  ;;  %v14322_v46 = vsub.f32 %v5920_v27, %v7127_v4  ;;  %v14324_v41 = vpack.c.bf16 %v7129_v51, %v7125_v3  ;;  %v7141_v27 = vand.u32 4294901760, %v5925_v60 }
 0x60b   : > { %17093 = vst [vmem:[#allocation82_spill] sm:$0xff] %v14306_v44  ;;  %v14326_v19 = vsub.f32 %v5917_v13, %v7125_v3  ;;  %v14337_v11 = vsub.f32 %v5919_v8, %v7129_v51  ;;  %v14339_v4 = vsub.f32 %v5922_v25, %v7131_v28  ;;  %v7145_v43 = vand.u32 4294901760, %v5927_v47  ;;  %v5931_v13 = vld [vmem:[%s16277_s4 + $0xb0] sm:$0xff]  ;;  %v5934_v3 = vld [vmem:[%s16277_s4 + $0xc8] sm:$0xff] }
 0x60c   : > { %17095 = vst [vmem:[#allocation84_spill] sm:$0xff] %v14324_v41  ;;  %v14350_v63 = vpack.c.bf16 %v7135_v39, %v7131_v28  ;;  %v14352_v8 = vsub.f32 %v5924_v35, %v7135_v39  ;;  %v14354_v25 = vpack.c.bf16 %v7137_v31, %v7133_v26  ;;  %v14356_v51 = vsub.f32 %v5921_v7, %v7133_v26  ;;  %v5933_v39 = vld [vmem:[%s16277_s4 + $0xc0] sm:$0xff] }
 0x60d   : > { %17096 = vst [vmem:[#allocation85_spill] sm:$0xff] %v14326_v19  ;;  %17097 = vst [vmem:[#allocation86_spill] sm:$0xff] %v14337_v11  ;;  %v14360_v32 = vpack.c.bf16 %v7143_v36, %v7139_v56  ;;  %v7151_v17 = vand.u32 4294901760, %v5932_v23  ;;  %v7149_v9 = vand.u32 4294901760, %v5929_v18  ;;  %v7153_v14 = vand.u32 4294901760, %v5931_v13 }
 0x60e   : > { %17098 = vst [vmem:[#allocation87_spill] sm:$0xff] %v14339_v4  ;;  %17099 = vst [vmem:[#allocation88_spill] sm:$0xff] %v14350_v63  ;;  %v7155_v54 = vand.u32 4294901760, %v5934_v3  ;;  %v14368_v7 = vsub.f32 %v5926_v5, %v7139_v56  ;;  %v14370_v31 = vsub.f32 %v5928_v57, %v7143_v36  ;;  %v14372_v12 = vpack.c.bf16 %v7145_v43, %v7141_v27 }
 0x60f   : > { %17100 = vst [vmem:[#allocation89_spill] sm:$0xff] %v14352_v8  ;;  %17101 = vst [vmem:[#allocation90_spill] sm:$0xff] %v14354_v25  ;;  %v14375_v6 = vsub.f32 %v5925_v60, %v7141_v27  ;;  %v14377_v37 = vsub.f32 %v5927_v47, %v7145_v43  ;;  %v14386_v5 = vsub.f32 %v5932_v23, %v7151_v17  ;;  %v7157_v56 = vand.u32 4294901760, %v5933_v39  ;;  %v5938_v60 = vld [vmem:[%s16277_s4 + $0xe8] sm:$0xff] }
 0x610   : > { %17102 = vst [vmem:[#allocation91_spill] sm:$0xff] %v14356_v51  ;;  %17104 = vst [vmem:[#allocation93_spill] sm:$0xff] %v14360_v32  ;;  %v14388_v57 = vsub.f32 %v5929_v18, %v7149_v9  ;;  %v14398_v36 = vsub.f32 %v5931_v13, %v7153_v14  ;;  %v14407_v27 = vsub.f32 %v5936_v40, %v7159_v33  ;;  %v14421_v40 = vld [vmem:[%s16277_s4 + $0xe0] sm:$0xff] }
 0x611   : > { %17105 = vst [vmem:[#allocation94_spill] sm:$0xff] %v14368_v7  ;;  %17106 = vst [vmem:[#allocation95_spill] sm:$0xff] %v14370_v31 }
 0x612   : > { %17107 = vst [vmem:[#allocation96_spill] sm:$0xff] %v14372_v12  ;;  %17108 = vst [vmem:[#allocation97_spill] sm:$0xff] %v14375_v6 }
 0x613   : > { %17109 = vst [vmem:[#allocation98_spill] sm:$0xff] %v14377_v37  ;;  %17112 = vst [vmem:[#allocation101_spill] sm:$0xff] %v14386_v5  ;;  %v7167_v5 = vand.u32 4294901760, %v5940_v50 }
 0x614   : > { %17113 = vst [vmem:[#allocation102_spill] sm:$0xff] %v14388_v57  ;;  %17115 = vst [vmem:[#allocation104_spill] sm:$0xff] %v14398_v36 }
 0x615   : > { %17118 = vst [vmem:[#allocation107_spill] sm:$0xff] %v14407_v27  ;;  %17120 = vst [vmem:[#allocation109_spill] sm:$0xff] %v14421_v40 }
 0x694   : > { %v5876_v20 = vpop.f32.mrb[8].mxu0 }
 0x695   : > { %v14366_v35 = vadd.f32 %v5876_v20, %v13917_v1  ;;  %v5878_v26 = vpop.f32.mrb[9].mxu0  ;;  %v5935_v20 = vld [vmem:[%s16277_s4 + $0xd0] sm:$0xff]  ;;  %v14384_v1 = vpack.c.bf16 %v7151_v17, %v7147_v38  ;;  %v14400_v38 = vpack.c.bf16 %v7159_v33, %v7155_v54  ;;  %v14402_v17 = vsub.f32 %v5934_v3, %v7155_v54 }
 0x696   : > { %v11630_v28 = vadd.f32 %v5878_v26, %v13928_v55  ;;  %v14396_v55 = vpack.c.bf16 %v7153_v14, %v7149_v9  ;;  %v7161_v43 = vand.u32 4294901760, %v5935_v20  ;;  %v14409_v26 = vsub.f32 %v5933_v39, %v7157_v56  ;;  %v14429_v14 = vld [vmem:[%s16277_s4 + $0xf0] sm:$0xff] }
 0x697   : > { %17111 = vst [vmem:[#allocation100_spill] sm:$0xff] %v14384_v1  ;;  %17116 = vst [vmem:[#allocation105_spill] sm:$0xff] %v14400_v38  ;;  %v7163_v9 = vand.u32 4294901760, %v5938_v60  ;;  %v5988_v13 = vrot.slane %v14366_v35, 1  ;;  %v8222_v54 = vrot.slane %v14366_v35, 2 }
 0x698   : > { %v5883_v47 = vpop.f32.mrb[10].mxu0  ;;  %17114 = vst [vmem:[#allocation103_spill] sm:$0xff] %v14396_v55  ;;  %17117 = vst [vmem:[#allocation106_spill] sm:$0xff] %v14402_v17  ;;  %v5991_v3 = vrot.slane %v11630_v28, 1  ;;  %v8225_v33 = vrot.slane %v11630_v28, 2  ;;  %v14435_v36 = vpack.c.bf16 %v7161_v43, %v7157_v56  ;;  %v14437_v29 = vsub.f32 %v5935_v20, %v7161_v43  ;;  %v14454_v56 = vld [vmem:[%s16277_s4 + $0x108] sm:$0xff] }
 0x699   : > { %v14405_v23 = vadd.f32 %v5883_v47, %v13941_v42  ;;  %v5885_v18 = vpop.f32.mrb[11].mxu0  ;;  %17119 = vst [vmem:[#allocation108_spill] sm:$0xff] %v14409_v26  ;;  %17121 = vst [vmem:[#allocation110_spill] sm:$0xff] %v14429_v14  ;;  %v7099_v20 = vsel %vm6010_vm4, %v11630_v28, 0 }
 0x69a   : > { %v14412_v57 = vadd.f32 %v5885_v18, %v13952_v58  ;;  %17122 = vst [vmem:[#allocation111_spill] sm:$0xff] %v14435_v36  ;;  %17123 = vst [vmem:[#allocation112_spill] sm:$0xff] %v14437_v29 }
 0x69b   : > { %v5989_v42 = vrot.slane %v14405_v23, 1  ;;  %v16547_v58 = vrot.slane %v14405_v23, 2  ;;  %17125 = vst [vmem:[#allocation114_spill] sm:$0xff] %v14454_v56 }
 0x69c   : > { %v5992_v39 = vrot.slane %v14412_v57, 1  ;;  %v8226_v47 = vrot.slane %v14412_v57, 2  ;;  %v5890_v18 = vpop.f32.mrb[12].mxu0 }
 0x69d   : > { %v14432_v26 = vadd.f32 %v5890_v18, %v13975_v24  ;;  %v5892_v27 = vpop.f32.mrb[13].mxu0  ;;  %v5990_v17 = vsel %vm290_vm0, %v5988_v13, %v5989_v42  ;;  %v14442_v37 = vsel %vm2424_vm2, %v8222_v54, %v16547_v58  ;;  %v17126_v13 = vand.u32 4294901760, %v14281_v48 }
 0x69e   : > { %17124 = vst [vmem:[#allocation113_spill] sm:$0xff] %v14442_v37  ;;  %v14445_v6 = vsel %vm2424_vm2, %v8225_v33, %v8226_v47  ;;  %v14448_v31 = vadd.f32 %v5892_v27, %v13984_v2  ;;  %v5993_v24 = vsel %vm290_vm0, %v5991_v3, %v5992_v39  ;;  %v14465_v3 = vpack.c.bf16 %v7167_v5, %v7163_v9 }
 0x69f   : > { %v14461_v54 = vsub.f32 %v14281_v48, %v17126_v13  ;;  %v14467_v18 = vsub.f32 %v5938_v60, %v7163_v9  ;;  %v14469_v58 = vsub.f32 %v5940_v50, %v7167_v5  ;;  %v5994_v43 = vrot.slane %v14432_v26, 1 }
 0x6a0   : > { %v8230_v2 = vrot.slane %v14448_v31, 2  ;;  %v5897_v27 = vpop.f32.mrb[14].mxu0  ;;  %17127 = vst [vmem:[#allocation115_spill] sm:$0xff] %v14465_v3  ;;  %v14477_v48 = vand.u32 4294901760, %v14454_v56  ;;  %v5996_v33 = vrot.slane %v14448_v31, 1  ;;  %v6011_v5 = vsel %vm6010_vm4, %v5993_v24, 0 }
 0x6a1   : > { %17128 = vst [vmem:[#allocation116_spill] sm:$0xff] %v14467_v18  ;;  %17129 = vst [vmem:[#allocation117_spill] sm:$0xff] %v14469_v58  ;;  %v14474_v37 = vadd.f32 %v5897_v27, %v14018_v16  ;;  %v5899_v13 = vpop.f32.mrb[15].mxu0  ;;  %v14487_v28 = vand.u32 4294901760, %v5990_v17  ;;  %v17132_v50 = vand.u32 4294901760, %v14421_v40  ;;  %v17133_v16 = vand.u32 4294901760, %v14429_v14 }
 0x6a2   : > { %17130 = vst [vmem:[#allocation118_spill] sm:$0xff] %v14477_v48  ;;  %v14481_v29 = vsel %vm2424_vm2, %v8226_v47, %v8230_v2  ;;  %v14484_v60 = vadd.f32 %v5899_v13, %v14025_v61  ;;  %v17135_v56 = vand.u32 4294901760, %v14292_v49  ;;  %v14501_v58 = vand.u32 4294901760, %v7099_v20 }
 0x6a3   : > { %17131 = vst [vmem:[#allocation119_spill] sm:$0xff] %v14487_v28  ;;  %v14493_v9 = vpack.c.bf16 %v17133_v16, %v17132_v50  ;;  %v14504_v24 = vand.u32 4294901760, %v6011_v5  ;;  %v5998_v14 = vrot.slane %v14474_v37, 1  ;;  %v5997_v7 = vsel %vm290_vm0, %v5992_v39, %v5996_v33 }
 0x6a4   : > { %v14499_v47 = vsub.f32 %v14292_v49, %v17135_v56  ;;  %17136 = vst [vmem:[#allocation121_spill] sm:$0xff] %v14501_v58  ;;  %v8234_v61 = vrot.slane %v14484_v60, 2  ;;  %v5904_v13 = vpop.f32.mrb[16].mxu0  ;;  %v6000_v16 = vrot.slane %v14484_v60, 1  ;;  %v5995_v18 = vsel %vm290_vm0, %v5989_v42, %v5994_v43 }
 0x6a5   : > { %17134 = vst [vmem:[#allocation120_spill] sm:$0xff] %v14493_v9  ;;  %17137 = vst [vmem:[#allocation122_spill] sm:$0xff] %v14504_v24  ;;  %v11637_v27 = vadd.f32 %v5904_v13, %v14036_v21  ;;  %v5906_v40 = vpop.f32.mrb[17].mxu0  ;;  %7067 = vmatprep.mubr.f32.mxu1 %v14504_v24  ;;  %v14519_v15 = vsub.f32 %v5990_v17, %v14487_v28  ;;  %v6013_v21 = vsel %vm6010_vm4, %v5997_v7, 0  ;;  %v17141_v42 = vrot.slane %v14474_v37, 2 }
 0x6a6   : > { %v14512_v56 = vsel %vm2424_vm2, %v8230_v2, %v8234_v61  ;;  %v11638_v49 = vadd.f32 %v5906_v40, %v14040_v22  ;;  %7069 = vmatmul.mubr.f32.vlgmr.msra.gmra.mrb[18].mxu1 %v14487_v28  ;;  %v14524_v9 = vand.u32 4294901760, %v6013_v21  ;;  %v14526_v22 = vand.u32 4294901760, %v5995_v18 }
 0x6a7   : > { %17138 = vst [vmem:[#allocation123_spill] sm:$0xff] %v14519_v15  ;;  %v6002_v50 = vrot.slane %v11637_v27, 1  ;;  %v8236_v48 = vrot.slane %v11637_v27, 2  ;;  %11244 = vmatpush1.bf16.msra.mxu1 %v14272_v34  ;;  %v14536_v39 = vsub.f32 %v6011_v5, %v14504_v24  ;;  %v6001_v7 = vsel %vm290_vm0, %v5996_v33, %v6000_v16 }
 0x6a8   : > { %v6004_v2 = vrot.slane %v11638_v49, 1  ;;  %v8238_v13 = vrot.slane %v11638_v49, 2  ;;  %17139 = vst [vmem:[#allocation124_spill] sm:$0xff] %v14524_v9  ;;  %17140 = vst [vmem:[#allocation125_spill] sm:$0xff] %v14526_v22  ;;  %11246 = vmatprep.subr.bf16.mxu1 %v14294_v45  ;;  %v14540_v49 = vsub.f32 %v7099_v20, %v14501_v58  ;;  %7075 = vmatprep.mubr.f32.mxu1 %v14524_v9  ;;  %v16572_v20 = vand.u32 4294901760, %v14519_v15  ;;  %v17160_v45 = vld [vmem:[#allocation62_spill] sm:$0xff] }
 0x6a9   : > { %v6003_v40 = vsel %vm290_vm0, %v5998_v14, %v6002_v50  ;;  %v14532_v17 = vsel %vm2424_vm2, %v17141_v42, %v8236_v48  ;;  %v6015_v50 = vsel %vm6010_vm4, %v6001_v7, 0  ;;  %v16567_v33 = vand.u32 4294901760, %v14536_v39 }
 0x6aa   : > { %17142 = vst [vmem:[#allocation126_spill] sm:$0xff] %v14532_v17  ;;  %17143 = vst [vmem:[#allocation127_spill] sm:$0xff] %v14540_v49  ;;  %v6005_v27 = vsel %vm290_vm0, %v6000_v16, %v6004_v2  ;;  %v8239_v34 = vsel %vm2424_vm2, %v8234_v61, %v8238_v13  ;;  %7077 = vmatmul.mubr.f32.gmra.mrb[20].mxu1 %v14526_v22  ;;  %v14552_v5 = vand.u32 4294901760, %v6015_v50  ;;  %v14577_v2 = vand.u32 4294901760, %v6003_v40 }
 0x6ab   : > { %v6017_v48 = vsel %vm6010_vm4, %v6005_v27, 0  ;;  %v14548_v42 = vsel %vm6010_vm4, %v8239_v34, 0  ;;  %11248 = vmatpush1.bf16.msra.mxu1 %v14306_v44  ;;  %v5999_v61 = vsel %vm290_vm0, %v5994_v43, %v5998_v14  ;;  %v6120_v34 = vsub.f32 %v14536_v39, %v16567_v33  ;;  %v17157_v44 = vld [vmem:[#allocation61_spill] sm:$0xff] }
 0x6ac   : > { %17144 = vst [vmem:[#allocation128_spill] sm:$0xff] %v14548_v42  ;;  %17145 = vst [vmem:[#allocation129_spill] sm:$0xff] %v14552_v5  ;;  %7083 = vmatprep.mubr.f32.mxu1 %v14552_v5  ;;  %11250 = vmatprep.subr.bf16.mxu1 %v14318_v10  ;;  %v14564_v13 = vand.u32 4294901760, %v5999_v61  ;;  %v14567_v7 = vsub.f32 %v6013_v21, %v14524_v9  ;;  %v14569_v27 = vand.u32 4294901760, %v6017_v48  ;;  %v16573_v33 = vand.u32 4294901760, %v14540_v49 }
 0x6ad   : > { %v6126_v14 = vsub.f32 %v14519_v15, %v16572_v20  ;;  %v14575_v43 = vsub.f32 %v5995_v18, %v14526_v22  ;;  %17150 = vst [vmem:[#allocation134_spill] sm:$0xff] %v14577_v2  ;;  %v6121_v16 = vand.u32 4294901760, %v6120_v34  ;;  %v14583_v21 = vsub.f32 %v6015_v50, %v14552_v5 }
 0x6ae   : > { %17146 = vst [vmem:[#allocation130_spill] sm:$0xff] %v14564_v13  ;;  %17147 = vst [vmem:[#allocation131_spill] sm:$0xff] %v14567_v7  ;;  %7085 = vmatmul.mubr.f32.gmra.mrb[22].mxu1 %v14564_v13  ;;  %v16576_v42 = vand.u32 4294901760, %v14567_v7  ;;  %v14586_v17 = vsub.f32 %v5999_v61, %v14564_v13  ;;  %v7208_v34 = vsub.f32 %v14540_v49, %v16573_v33 }
 0x6af   : > { %17148 = vst [vmem:[#allocation132_spill] sm:$0xff] %v14569_v27  ;;  %17149 = vst [vmem:[#allocation133_spill] sm:$0xff] %v14575_v43  ;;  %v6127_v10 = vand.u32 4294901760, %v6126_v14  ;;  %11252 = vmatpush1.bf16.msra.mxu1 %v14324_v41  ;;  %7091 = vmatprep.mubr.f32.mxu1 %v14569_v27  ;;  %v14595_v20 = vsub.f32 %v6017_v48, %v14569_v27  ;;  %v14604_v18 = vsub.f32 %v6003_v40, %v14577_v2 }
 0x6b0   : > { %17151 = vst [vmem:[#allocation135_spill] sm:$0xff] %v14583_v21  ;;  %17152 = vst [vmem:[#allocation136_spill] sm:$0xff] %v14586_v17  ;;  %6122 = vmatprep.mubr.f32.mxu0 %v6121_v16  ;;  %v6136_v50 = vsub.f32 %v14567_v7, %v16576_v42  ;;  %11254 = vmatprep.subr.bf16.mxu1 %v14350_v63  ;;  %v17155_v33 = vand.u32 4294901760, %v14575_v43  ;;  %v17156_v41 = vand.u32 4294901760, %v14302_v53  ;;  %v7209_v40 = vand.u32 4294901760, %v7208_v34  ;;  %v17217_v7 = vld [vmem:[#allocation70_spill] sm:$0xff] }
 0x6b1   : > { %17153 = vst [vmem:[#allocation137_spill] sm:$0xff] %v14595_v20  ;;  %17154 = vst [vmem:[#allocation138_spill] sm:$0xff] %v14604_v18  ;;  %6128 = vmatmul.mubr.f32.vlgmr.msra.gmra.mrb[18].mxu0 %v6127_v10  ;;  %v17158_v10 = vand.u32 4294901760, %v14583_v21 }
 0x6b2   : > { %v6142_v48 = vsub.f32 %v14575_v43, %v17155_v33  ;;  %v7297_v42 = vsub.f32 %v14302_v53, %v17156_v41  ;;  %11084 = vmatpush1.bf16.msra.mxu0 %v17157_v44  ;;  %v6137_v61 = vand.u32 4294901760, %v6136_v50  ;;  %7093 = vmatmul.mubr.f32.gmra.mrb[24].mxu1 %v14577_v2  ;;  %v17159_v33 = vand.u32 4294901760, %v14304_v52 }
 0x6b3   : > { %v6152_v14 = vsub.f32 %v14583_v21, %v17158_v10  ;;  %11086 = vmatprep.subr.bf16.mxu0 %v17160_v45  ;;  %11256 = vmatpush1.bf16.msra.mxu1 %v14354_v25  ;;  %v17161_v41 = vand.u32 4294901760, %v14586_v17  ;;  %v17162_v50 = vand.u32 4294901760, %v14595_v20  ;;  %v7101_v10 = vsel %vm6010_vm4, %v14412_v57, 0  ;;  %v14636_v45 = vld [vmem:[%s16277_s4 + $0x100] sm:$0xff]  ;;  %v17164_v25 = vld [vmem:[#allocation42_spill] sm:$0xff] }
 0x6b4   : > { %v7309_v16 = vsub.f32 %v14304_v52, %v17159_v33  ;;  %v6143_v49 = vand.u32 4294901760, %v6142_v48  ;;  %6138 = vmatprep.mubr.f32.mxu0 %v6137_v61  ;;  %7210 = vmatprep.mubr.f32.mxu1 %v7209_v40  ;;  %v7292_v48 = vand.u32 4294901760, %v14499_v47  ;;  %v17167_v61 = vand.u32 4294901760, %v14316_v62 }
 0x6b5   : > { %v6158_v44 = vsub.f32 %v14586_v17, %v17161_v41  ;;  %v6168_v34 = vsub.f32 %v14595_v20, %v17162_v50  ;;  %v6153_v33 = vand.u32 4294901760, %v6152_v14  ;;  %v17163_v41 = vld [vmem:[#allocation43_spill] sm:$0xff]  ;;  %11258 = vmatprep.subr.bf16.mxu1 %v14360_v32  ;;  %v17166_v50 = vand.u32 4294901760, %v14308_v30 }
 0x6b6   : > { %v14641_v17 = vsub.f32 %v17164_v25, %v17163_v41  ;;  %6144 = vmatmul.mubr.f32.gmra.mrb[20].mxu0 %v6143_v49  ;;  %v7315_v14 = vsub.f32 %v14316_v62, %v17167_v61  ;;  %v14653_v47 = vand.u32 4294901760, %v14366_v35  ;;  %v17169_v25 = vld [vmem:[#allocation63_spill] sm:$0xff]  ;;  %v7298_v32 = vand.u32 4294901760, %v7297_v42 }
 0x6b7   : > { %v7303_v57 = vsub.f32 %v14308_v30, %v17166_v50  ;;  %11088 = vmatpush1.bf16.msra.mxu0 %v17169_v25  ;;  %6154 = vmatprep.mubr.f32.mxu0 %v6153_v33  ;;  %v6169_v49 = vand.u32 4294901760, %v6168_v34  ;;  %v7310_v41 = vand.u32 4294901760, %v7309_v16  ;;  %v14656_v20 = vand.u32 4294901760, %v7101_v10  ;;  %v17171_v50 = vld [vmem:[#allocation36_spill] sm:$0xff] }
 0x6b8   : > { %17165 = vst [vmem:[#allocation61_spill] sm:$0xff] %v14641_v17  ;;  %17168 = vst [vmem:[#allocation62_spill] sm:$0xff] %v14653_v47  ;;  %11090 = vmatprep.subr.bf16.mxu0 %v17171_v50  ;;  %v6159_v21 = vand.u32 4294901760, %v6158_v44  ;;  %11260 = vmatpush1.bf16.msra.mxu1 %v14372_v12  ;;  %v17172_v61 = vand.u32 4294901760, %v14604_v18  ;;  %v14664_v40 = vand.u32 4294901760, %v14636_v45  ;;  %v7103_v33 = vsel %vm6010_vm4, %v14448_v31, 0 }
 0x6b9   : > { %17170 = vst [vmem:[#allocation42_spill] sm:$0xff] %v14656_v20  ;;  %11262 = vmatprep.subr.bf16.mxu1 %v14384_v1  ;;  %v17174_v42 = vand.u32 4294901760, %v14461_v54  ;;  %v16600_v44 = vand.u32 4294901760, %v14641_v17  ;;  %v7304_v25 = vand.u32 4294901760, %v7303_v57  ;;  %v7316_v50 = vand.u32 4294901760, %v7315_v14 }
 0x6ba   : > { %v6174_v63 = vsub.f32 %v14604_v18, %v17172_v61  ;;  %17173 = vst [vmem:[#allocation63_spill] sm:$0xff] %v14664_v40  ;;  %6160 = vmatmul.mubr.f32.gmra.mrb[22].mxu0 %v6159_v21  ;;  %v17175_v61 = vand.u32 4294901760, %v14279_v59  ;;  %v17176_v31 = vand.u32 4294901760, %v14320_v0  ;;  %v14685_v54 = vsub.f32 %v14366_v35, %v14653_v47 }
 0x6bb   : > { %v14671_v16 = vpack.c.bf16 %v7292_v48, %v17174_v42  ;;  %v14688_v48 = vand.u32 4294901760, %v14405_v23  ;;  %v17179_v42 = vld [vmem:[#allocation40_spill] sm:$0xff]  ;;  %6170 = vmatprep.mubr.f32.mxu0 %v6169_v49  ;;  %v14691_v21 = vpack.c.bf16 %v7310_v41, %v7298_v32  ;;  %v14695_v14 = vsub.f32 %v7101_v10, %v14656_v20 }
 0x6bc   : > { %v14678_v12 = vsub.f32 %v14279_v59, %v17175_v61  ;;  %v7321_v1 = vsub.f32 %v14320_v0, %v17176_v31  ;;  %17177 = vst [vmem:[#allocation36_spill] sm:$0xff] %v14685_v54  ;;  %11092 = vmatpush1.bf16.msra.mxu0 %v17179_v42  ;;  %v14697_v61 = vand.u32 4294901760, %v7103_v33  ;;  %v17182_v31 = vld [vmem:[#allocation64_spill] sm:$0xff]  ;;  %v6175_v34 = vand.u32 4294901760, %v6174_v63  ;;  %11264 = vmatpush1.bf16.msra.mxu1 %v14396_v55 }
 0x6bd   : > { %17178 = vst [vmem:[#allocation139_spill] sm:$0xff] %v14688_v48  ;;  %17180 = vst [vmem:[#allocation40_spill] sm:$0xff] %v14695_v14  ;;  %11094 = vmatprep.subr.bf16.mxu0 %v17182_v31  ;;  %v14703_v35 = vsel %vm6010_vm4, %v14445_v6, 0  ;;  %v8228_v49 = vrot.slane %v14432_v26, 2  ;;  %v7105_v32 = vsel %vm6010_vm4, %v14484_v60, 0  ;;  %11266 = vmatprep.subr.bf16.mxu1 %v14400_v38  ;;  %v14712_v10 = vsub.f32 %v14641_v17, %v16600_v44  ;;  %v17187_v38 = vld [vmem:[#allocation65_spill] sm:$0xff] }
 0x6be   : > { %17181 = vst [vmem:[#allocation140_spill] sm:$0xff] %v14697_v61  ;;  %17183 = vst [vmem:[#allocation64_spill] sm:$0xff] %v14703_v35  ;;  %v17184_v63 = vand.u32 4294901760, %v14322_v46  ;;  %6176 = vmatmul.mubr.f32.gmra.mrb[24].mxu0 %v6175_v34  ;;  %v14717_v42 = vpack.c.bf16 %v7316_v50, %v7304_v25  ;;  %v7322_v31 = vand.u32 4294901760, %v7321_v1  ;;  %v14724_v35 = vsub.f32 %v14405_v23, %v14688_v48 }
 0x6bf   : > { %v14727_v44 = vand.u32 4294901760, %v14432_v26  ;;  %6417 = vmatprep.mubr.f32.mxu0 %v14504_v24  ;;  %v17188_v34 = vand.u32 4294901760, %v14326_v19  ;;  %v14735_v1 = vsub.f32 %v7103_v33, %v14697_v61  ;;  %v14737_v50 = vand.u32 4294901760, %v7105_v32  ;;  %v17215_v24 = vld [vmem:[#allocation95_spill] sm:$0xff] }
 0x6c0   : > { %v7333_v41 = vsub.f32 %v14322_v46, %v17184_v63  ;;  %17185 = vst [vmem:[#allocation141_spill] sm:$0xff] %v14724_v35  ;;  %11096 = vmatpush1.bf16.msra.mxu0 %v17187_v38  ;;  %v17191_v63 = vld [vmem:[#allocation66_spill] sm:$0xff]  ;;  %11268 = vmatpush1.bf16.msra.mxu1 %v14435_v36  ;;  %v14744_v38 = vsel %vm6010_vm4, %v14481_v29, 0  ;;  %v17193_v33 = vrot.slane %v14405_v23, 2  ;;  %v17196_v6 = vand.u32 4294901760, %v14337_v11 }
 0x6c1   : > { %17186 = vst [vmem:[#allocation142_spill] sm:$0xff] %v14727_v44  ;;  %v7327_v25 = vsub.f32 %v14326_v19, %v17188_v34  ;;  %17189 = vst [vmem:[#allocation65_spill] sm:$0xff] %v14735_v1  ;;  %11098 = vmatprep.subr.bf16.mxu0 %v17191_v63  ;;  %11270 = vmatprep.subr.bf16.mxu1 %v14465_v3  ;;  %v14755_v63 = vsel %vm6010_vm4, %v14512_v56, 0  ;;  %v14769_v23 = vsub.f32 %v14432_v26, %v14727_v44  ;;  %v17205_v26 = vld [vmem:[#allocation120_spill] sm:$0xff] }
 0x6c2   : > { %17190 = vst [vmem:[#allocation143_spill] sm:$0xff] %v14737_v50  ;;  %17192 = vst [vmem:[#allocation66_spill] sm:$0xff] %v14744_v38  ;;  %v7334_v60 = vand.u32 4294901760, %v7333_v41  ;;  %v14751_v57 = vsel %vm2424_vm2, %v17193_v33, %v8228_v49  ;;  %v7339_v36 = vsub.f32 %v14337_v11, %v17196_v6  ;;  %v17197_v41 = vrot.slane %v14474_v37, 2  ;;  %v17200_v33 = vld [vmem:[#allocation67_spill] sm:$0xff] }
 0x6c3   : > { %17194 = vst [vmem:[#allocation144_spill] sm:$0xff] %v14751_v57  ;;  %17195 = vst [vmem:[#allocation145_spill] sm:$0xff] %v14755_v63  ;;  %v17201_v56 = vand.u32 4294901760, %v14685_v54  ;;  %v14778_v38 = vand.u32 4294901760, %v14474_v37  ;;  %v17207_v57 = vld [vmem:[#allocation118_spill] sm:$0xff]  ;;  %v7328_v29 = vand.u32 4294901760, %v7327_v25 }
 0x6c4   : > { %v14765_v34 = vsel %vm2424_vm2, %v8228_v49, %v17197_v41  ;;  %17199 = vst [vmem:[#allocation147_spill] sm:$0xff] %v14769_v23  ;;  %11100 = vmatpush1.bf16.msra.mxu0 %v17200_v33  ;;  %v14781_v49 = vsub.f32 %v7105_v32, %v14737_v50  ;;  %v17204_v41 = vld [vmem:[#allocation68_spill] sm:$0xff]  ;;  %11272 = vmatpush1.bf16.msra.mxu1 %v17205_v26  ;;  %v17206_v33 = vand.u32 4294901760, %v14695_v14  ;;  %v17208_v3 = vand.u32 4294901760, %v14339_v4 }
 0x6c5   : > { %17198 = vst [vmem:[#allocation146_spill] sm:$0xff] %v14765_v34  ;;  %v7214_v63 = vsub.f32 %v14685_v54, %v17201_v56  ;;  %17202 = vst [vmem:[#allocation67_spill] sm:$0xff] %v14778_v38  ;;  %11102 = vmatprep.subr.bf16.mxu0 %v17204_v41  ;;  %7172 = vmatprep.subr.mxu1 %v17207_v57  ;;  %v11281_v6 = vpack.c.bf16 %v7334_v60, %v7322_v31  ;;  %v17209_v32 = vld [vmem:[#allocation92_spill] sm:$0xff]  ;;  %v7340_v54 = vand.u32 4294901760, %v7339_v36  ;;  %v17212_v56 = vld [vmem:[#allocation94_spill] sm:$0xff] }
 0x6c6   : > { %17203 = vst [vmem:[#allocation148_spill] sm:$0xff] %v14781_v49  ;;  %v7224_v34 = vsub.f32 %v14695_v14, %v17206_v33  ;;  %v7345_v55 = vsub.f32 %v14339_v4, %v17208_v3  ;;  %v17210_v41 = vand.u32 4294901760, %v14352_v8  ;;  %v17211_v18 = vand.u32 4294901760, %v14356_v51  ;;  %v17213_v31 = vld [vmem:[#allocation69_spill] sm:$0xff] }
 0x6c7   : > { %v7215_v60 = vand.u32 4294901760, %v7214_v63  ;;  %v17214_v25 = vand.u32 4294901760, %v14724_v35  ;;  %v17220_v43 = vand.u32 4294901760, %v17209_v32  ;;  %v17224_v14 = vld [vmem:[#allocation101_spill] sm:$0xff] }
 0x6c8   : > { %v7357_v26 = vsub.f32 %v14352_v8, %v17210_v41  ;;  %v14800_v33 = vsub.f32 %v14356_v51, %v17211_v18  ;;  %11104 = vmatpush1.bf16.msra.mxu0 %v17213_v31  ;;  %v14811_v41 = vsub.f32 %v14474_v37, %v14778_v38  ;;  %7174 = vmatpush1.msra.mxu1 %v14664_v40  ;;  %v7225_v18 = vand.u32 4294901760, %v7224_v34  ;;  %v17221_v37 = vld [vmem:[#allocation97_spill] sm:$0xff]  ;;  %v17222_v38 = vld [vmem:[#allocation98_spill] sm:$0xff]  ;;  %v17223_v51 = vld [vmem:[#allocation99_spill] sm:$0xff] }
 0x6c9   : > { %v7230_v3 = vsub.f32 %v14724_v35, %v17214_v25  ;;  %11106 = vmatprep.subr.bf16.mxu0 %v17217_v7  ;;  %v17218_v31 = vand.u32 4294901760, %v14735_v1  ;;  %7216 = vmatmul.mubr.f32.vlgmr.msra.gmra.mrb[18].mxu1 %v7215_v60  ;;  %v17219_v25 = vld [vmem:[#allocation72_spill] sm:$0xff]  ;;  %v7363_v36 = vsub.f32 %v17209_v32, %v17220_v43  ;;  %v11283_v34 = vpack.c.bf16 %v7340_v54, %v7328_v29  ;;  %v17225_v8 = vld [vmem:[#allocation71_spill] sm:$0xff]  ;;  %v17229_v54 = vld [vmem:[#allocation73_spill] sm:$0xff] }
 0x6ca   : > { %17216 = vst [vmem:[#allocation68_spill] sm:$0xff] %v14811_v41  ;;  %11274 = vmatprep.subr.bf16.mxu1 %v17219_v25  ;;  %7226 = vmatprep.mubr.f32.mxu1 %v7225_v18  ;;  %v17226_v43 = vand.u32 4294901760, %v14769_v23  ;;  %v17227_v7 = vand.u32 4294901760, %v17212_v56  ;;  %v17231_v60 = vand.u32 4294901760, %v17221_v37  ;;  %v17232_v15 = vand.u32 4294901760, %v17222_v38 }
 0x6cb   : > { %v7240_v63 = vsub.f32 %v14735_v1, %v17218_v31  ;;  %11276 = vmatpush1.bf16.msra.mxu1 %v14671_v16  ;;  %v7346_v31 = vand.u32 4294901760, %v7345_v55  ;;  %v7358_v1 = vand.u32 4294901760, %v7357_v26  ;;  %v7231_v25 = vand.u32 4294901760, %v7230_v3 }
 0x6cc   : > { %11108 = vmatpush1.bf16.msra.mxu0 %v17225_v8  ;;  %11278 = vmatprep.subr.bf16.mxu1 %v14691_v21  ;;  %v7246_v35 = vsub.f32 %v14769_v23, %v17226_v43  ;;  %v7369_v18 = vsub.f32 %v17212_v56, %v17227_v7  ;;  %v17228_v16 = vand.u32 4294901760, %v17215_v24  ;;  %v17230_v8 = vand.u32 4294901760, %v14781_v49  ;;  %v17236_v21 = vld [vmem:[#allocation104_spill] sm:$0xff] }
 0x6cd   : > { %11110 = vmatprep.subr.bf16.mxu0 %v17229_v54  ;;  %v7241_v29 = vand.u32 4294901760, %v7240_v63  ;;  %v7352_v3 = vand.u32 4294901760, %v14800_v33  ;;  %7232 = vmatmul.mubr.f32.gmra.mrb[20].mxu1 %v7231_v25  ;;  %v7364_v43 = vand.u32 4294901760, %v7363_v36  ;;  %v7375_v7 = vsub.f32 %v17221_v37, %v17231_v60  ;;  %v17235_v36 = vld [vmem:[#allocation102_spill] sm:$0xff] }
 0x6ce   : > { %v7381_v55 = vsub.f32 %v17215_v24, %v17228_v16  ;;  %v7256_v26 = vsub.f32 %v14781_v49, %v17230_v8  ;;  %v7387_v16 = vsub.f32 %v17222_v38, %v17232_v15  ;;  %v17233_v63 = vand.u32 4294901760, %v17223_v51  ;;  %v17237_v60 = vld [vmem:[#allocation106_spill] sm:$0xff] }
 0x6cf   : > { %7242 = vmatprep.mubr.f32.mxu1 %v7241_v29  ;;  %11280 = vmatpush1.bf16.msra.mxu1 %v14717_v42  ;;  %v17234_v8 = vand.u32 4294901760, %v17224_v14  ;;  %v17238_v37 = vld [vmem:[#allocation74_spill] sm:$0xff]  ;;  %v7247_v15 = vand.u32 4294901760, %v7246_v35  ;;  %v11285_v38 = vpack.c.bf16 %v7358_v1, %v7346_v31  ;;  %v7370_v24 = vand.u32 4294901760, %v7369_v18  ;;  %v17239_v29 = vld [vmem:[#allocation109_spill] sm:$0xff] }
 0x6d0   : > { %v7393_v54 = vsub.f32 %v17223_v51, %v17233_v63  ;;  %11112 = vmatpush1.bf16.msra.mxu0 %v17238_v37  ;;  %11282 = vmatprep.subr.bf16.mxu1 %v11281_v6  ;;  %v7382_v63 = vand.u32 4294901760, %v7381_v55  ;;  %v17240_v51 = vand.u32 4294901760, %v17239_v29  ;;  %v7257_v25 = vand.u32 4294901760, %v7256_v26  ;;  %v17245_v35 = vld [vmem:[#allocation110_spill] sm:$0xff] }
 0x6d1   : > { %v7405_v33 = vsub.f32 %v17224_v14, %v17234_v8  ;;  %v17242_v8 = vand.u32 4294901760, %v14712_v10  ;;  %v17243_v49 = vand.u32 4294901760, %v14811_v41  ;;  %v17244_v14 = vld [vmem:[#allocation107_spill] sm:$0xff]  ;;  %v17246_v6 = vand.u32 4294901760, %v17245_v35  ;;  %7248 = vmatmul.mubr.f32.gmra.mrb[22].mxu1 %v7247_v15 }
 0x6d2   : > { %v14865_v42 = vsub.f32 %v17239_v29, %v17240_v51  ;;  %v7376_v31 = vand.u32 4294901760, %v7375_v7  ;;  %v7388_v18 = vand.u32 4294901760, %v7387_v16  ;;  %v7394_v51 = vand.u32 4294901760, %v7393_v54  ;;  %7258 = vmatprep.mubr.f32.mxu1 %v7257_v25  ;;  %v17263_v54 = vld [vmem:[#allocation24_spill] sm:$0xff] }
 0x6d3   : > { %6379 = vmatprep.subr.mxu0 %v17242_v8  ;;  %v7262_v23 = vsub.f32 %v14811_v41, %v17243_v49  ;;  %v14876_v1 = vsub.f32 %v17245_v35, %v17246_v6  ;;  %11284 = vmatpush1.bf16.msra.mxu1 %v11283_v34  ;;  %v7406_v10 = vand.u32 4294901760, %v7405_v33  ;;  %v17248_v55 = vand.u32 4294901760, %v17235_v36  ;;  %v17252_v34 = vld [vmem:[#allocation108_spill] sm:$0xff]  ;;  %v17254_v6 = vld [vmem:[#allocation18_spill] sm:$0xff] }
 0x6d4   : > { %17241 = vst [vmem:[#allocation69_spill] sm:$0xff] %v14865_v42  ;;  %v17249_v49 = vand.u32 4294901760, %v17236_v21  ;;  %v17250_v8 = vand.u32 4294901760, %v17237_v60  ;;  %v17251_v15 = vand.u32 4294901760, %v14678_v12  ;;  %11286 = vmatprep.subr.bf16.mxu1 %v11285_v38  ;;  %v11287_v7 = vpack.c.bf16 %v7364_v43, %v7352_v3  ;;  %v17253_v33 = vld [vmem:[#allocation112_spill] sm:$0xff]  ;;  %v17259_v38 = vld [vmem:[#allocation117_spill] sm:$0xff] }
 0x6d5   : > { %17247 = vst [vmem:[#allocation70_spill] sm:$0xff] %v14876_v1  ;;  %v7399_v26 = vsub.f32 %v17235_v36, %v17248_v55  ;;  %v11289_v16 = vpack.c.bf16 %v7382_v63, %v7370_v24  ;;  %v17255_v55 = vld [vmem:[#allocation17_spill] sm:$0xff]  ;;  %v17257_v41 = vand.u32 4294901760, %v17244_v14  ;;  %v17258_v12 = vld [vmem:[#allocation116_spill] sm:$0xff]  ;;  %v17260_v24 = vld [vmem:[#allocation51_spill] sm:$0xff]  ;;  %v11291_v25 = vpack.c.bf16 %v7388_v18, %v7376_v31 }
 0x6d6   : > { %v7411_v29 = vsub.f32 %v17236_v21, %v17249_v49  ;;  %v7417_v35 = vsub.f32 %v17237_v60, %v17250_v8  ;;  %6385 = vmatpush1.msra.mxu0 %v17251_v15  ;;  %v17256_v37 = vpack.c.bf16 %v17254_v6, %v17255_v55  ;;  %v7263_v49 = vand.u32 4294901760, %v7262_v23  ;;  %v17261_v43 = vld [vmem:[#allocation19_spill] sm:$0xff] }
 0x6d7   : > { %6419 = vmatmul.mubr.f32.vlgmr.msra.gmra.mrb[18].mxu0 %v14487_v28  ;;  %v7429_v8 = vsub.f32 %v17244_v14, %v17257_v41  ;;  %v17262_v63 = vpack.c.bf16 %v17260_v24, %v17261_v43  ;;  %v17264_v28 = vld [vmem:[#allocation23_spill] sm:$0xff]  ;;  %v11293_v23 = vpack.c.bf16 %v7406_v10, %v7394_v51  ;;  %11288 = vmatpush1.bf16.msra.mxu1 %v11287_v7  ;;  %v17266_v3 = vand.u32 4294901760, %v17252_v34  ;;  %v17270_v7 = vld [vmem:[#allocation114_spill] sm:$0xff] }
 0x6d8   : > { %11114 = vmatprep.subr.bf16.mxu0 %v17256_v37  ;;  %6425 = vmatprep.mubr.f32.mxu0 %v14524_v9  ;;  %v17265_v6 = vpack.c.bf16 %v17263_v54, %v17264_v28  ;;  %v7400_v37 = vand.u32 4294901760, %v7399_v26  ;;  %v7412_v55 = vand.u32 4294901760, %v7411_v29  ;;  %v7418_v41 = vand.u32 4294901760, %v7417_v35 }
 0x6d9   : > { %11116 = vmatpush1.bf16.msra.mxu0 %v17262_v63  ;;  %7264 = vmatmul.mubr.f32.gmra.mrb[24].mxu1 %v7263_v49  ;;  %v7423_v15 = vsub.f32 %v17252_v34, %v17266_v3  ;;  %v17267_v9 = vand.u32 4294901760, %v17253_v33  ;;  %v7430_v51 = vand.u32 4294901760, %v7429_v8  ;;  %v17268_v10 = vand.u32 4294901760, %v17258_v12  ;;  %v17273_v3 = vld [vmem:[#allocation28_spill] sm:$0xff]  ;;  %v17276_v8 = vld [vmem:[#allocation34_spill] sm:$0xff] }
 0x6da   : > { %11118 = vmatprep.subr.bf16.mxu0 %v17265_v6  ;;  %7505 = vmatprep.mubr.f32.mxu1 %v14501_v58  ;;  %v17269_v29 = vand.u32 4294901760, %v17259_v38  ;;  %v14925_v49 = vsub.f32 %v17270_v7, %v17207_v57  ;;  %v11295_v18 = vpack.c.bf16 %v7412_v55, %v7400_v37  ;;  %v17279_v7 = vand.u32 4294901760, %v14865_v42  ;;  %v17282_v55 = vld [vmem:[#allocation35_spill] sm:$0xff]  ;;  %v17284_v37 = vld [vmem:[#allocation54_spill] sm:$0xff] }
 0x6db   : > { %v7435_v31 = vsub.f32 %v17253_v33, %v17267_v9  ;;  %6427 = vmatmul.mubr.f32.gmra.mrb[20].mxu0 %v14526_v22  ;;  %11290 = vmatprep.subr.bf16.mxu1 %v11289_v16  ;;  %v7441_v26 = vsub.f32 %v17258_v12, %v17268_v10  ;;  %v17272_v9 = vld [vmem:[#allocation29_spill] sm:$0xff]  ;;  %v14933_v16 = vsub.f32 %v14636_v45, %v14664_v40  ;;  %v17277_v10 = vld [vmem:[#allocation30_spill] sm:$0xff]  ;;  %v17280_v22 = vand.u32 4294901760, %v14876_v1 }
 0x6dc   : > { %v7453_v35 = vsub.f32 %v17259_v38, %v17269_v29  ;;  %17271 = vst [vmem:[#allocation72_spill] sm:$0xff] %v14925_v49  ;;  %6433 = vmatprep.mubr.f32.mxu0 %v14552_v5  ;;  %v17274_v63 = vpack.c.bf16 %v17272_v9, %v17273_v3  ;;  %v17278_v6 = vpack.c.bf16 %v17276_v8, %v17277_v10  ;;  %v7424_v29 = vand.u32 4294901760, %v7423_v15 }
 0x6dd   : > { %17275 = vst [vmem:[#allocation71_spill] sm:$0xff] %v14933_v16  ;;  %11292 = vmatpush1.bf16.msra.mxu1 %v11291_v25  ;;  %v7436_v58 = vand.u32 4294901760, %v7435_v31  ;;  %v7447_v5 = vsub.f32 %v14865_v42, %v17279_v7  ;;  %v11297_v45 = vpack.c.bf16 %v7430_v51, %v7418_v41  ;;  %v7442_v40 = vand.u32 4294901760, %v7441_v26  ;;  %v17281_v25 = vld [vmem:[#allocation38_spill] sm:$0xff]  ;;  %v17285_v31 = vld [vmem:[#allocation41_spill] sm:$0xff]  ;;  %v17287_v26 = vld [vmem:[#allocation11_spill] sm:$0xff] }
 0x6de   : > { %11120 = vmatpush1.bf16.msra.mxu0 %v17274_v63  ;;  %v7459_v63 = vsub.f32 %v14876_v1, %v17280_v22  ;;  %11294 = vmatprep.subr.bf16.mxu1 %v11293_v23  ;;  %v7454_v57 = vand.u32 4294901760, %v7453_v35  ;;  %v17283_v15 = vpack.c.bf16 %v17281_v25, %v17282_v55  ;;  %v17286_v7 = vpack.c.bf16 %v17284_v37, %v17285_v31  ;;  %v17288_v35 = vld [vmem:[#allocation52_spill] sm:$0xff] }
 0x6df   : > { %11122 = vmatprep.subr.bf16.mxu0 %v17278_v6  ;;  %6435 = vmatmul.mubr.f32.gmra.mrb[22].mxu0 %v14564_v13  ;;  %v16657_v6 = vand.u32 4294901760, %v14925_v49  ;;  %v11299_v22 = vpack.c.bf16 %v7436_v58, %v7424_v29  ;;  %v7448_v8 = vand.u32 4294901760, %v7447_v5  ;;  %v16660_v23 = vand.u32 4294901760, %v14933_v16  ;;  %v17291_v58 = vld [vmem:[#allocation12_spill] sm:$0xff] }
 0x6e0   : > { %6441 = vmatprep.mubr.f32.mxu0 %v14569_v27  ;;  %v7460_v13 = vand.u32 4294901760, %v7459_v63  ;;  %v11301_v41 = vpack.c.bf16 %v7454_v57, %v7442_v40  ;;  %v17293_v63 = vld [vmem:[#allocation8_spill] sm:$0xff] }
 0x6e1   : > { %11296 = vmatpush1.bf16.msra.mxu1 %v11295_v18  ;;  %v7465_v51 = vsub.f32 %v14925_v49, %v16657_v6  ;;  %v17290_v18 = vld [vmem:[#allocation5_spill] sm:$0xff]  ;;  %v7471_v40 = vsub.f32 %v14933_v16, %v16660_v23  ;;  %v17296_v6 = vld [vmem:[#allocation27_spill] sm:$0xff] }
 0x6e2   : > { %11124 = vmatpush1.bf16.msra.mxu0 %v17283_v15  ;;  %11298 = vmatprep.subr.bf16.mxu1 %v11297_v45  ;;  %v17289_v15 = vpack.c.bf16 %v17287_v26, %v17288_v35  ;;  %v17292_v5 = vpack.c.bf16 %v17290_v18, %v17291_v58  ;;  %v11303_v29 = vpack.c.bf16 %v7460_v13, %v7448_v8  ;;  %v17294_v45 = vld [vmem:[#allocation6_spill] sm:$0xff]  ;;  %v17303_v18 = vld [vmem:[#allocation45_spill] sm:$0xff] }
 0x6e3   : > { %11126 = vmatprep.subr.bf16.mxu0 %v17286_v7  ;;  %6443 = vmatmul.mubr.f32.gmra.mrb[24].mxu0 %v14577_v2  ;;  %v7466_v57 = vand.u32 4294901760, %v7465_v51  ;;  %v17295_v7 = vpack.c.bf16 %v17293_v63, %v17294_v45  ;;  %v7472_v27 = vand.u32 4294901760, %v7471_v40  ;;  %v17302_v8 = vld [vmem:[#allocation46_spill] sm:$0xff] }
 0x6e4   : > { %6583 = vmatprep.mubr.f32.mxu0 %v14536_v39  ;;  %v17304_v23 = vpack.c.bf16 %v17302_v8, %v17303_v18  ;;  %v17306_v51 = vld [vmem:[#allocation78_spill] sm:$0xff]  ;;  %v17314_v8 = vld [vmem:[#allocation53_spill] sm:$0xff] }
 0x6e5   : > { %11300 = vmatpush1.bf16.msra.mxu1 %v11299_v22  ;;  %v17300_v22 = vld [vmem:[#allocation31_spill] sm:$0xff] }
 0x6e6   : > { %11128 = vmatpush1.bf16.msra.mxu0 %v17289_v15  ;;  %11302 = vmatprep.subr.bf16.mxu1 %v11301_v41  ;;  %v17297_v15 = vld [vmem:[#allocation25_spill] sm:$0xff] }
 0x6e7   : > { %11130 = vmatprep.subr.bf16.mxu0 %v17292_v5  ;;  %v17298_v2 = vpack.c.bf16 %v17296_v6, %v17297_v15  ;;  %v17299_v5 = vld [vmem:[#allocation33_spill] sm:$0xff] }
 0x6e8   : > { %v17301_v13 = vpack.c.bf16 %v17299_v5, %v17300_v22  ;;  %v17305_v41 = vld [vmem:[#allocation77_spill] sm:$0xff] }
 0x6e9   : > { %11304 = vmatpush1.bf16.msra.mxu1 %v11303_v29  ;;  %v11307_v58 = vpack.c.bf16 %v17306_v51, %v17305_v41  ;;  %v17308_v29 = vld [vmem:[#allocation59_spill] sm:$0xff]  ;;  %v17311_v5 = vld [vmem:[#allocation49_spill] sm:$0xff] }
 0x6ea   : > { %11132 = vmatpush1.bf16.msra.mxu0 %v17295_v7  ;;  %7467 = vmatprep.subr.mxu1 %v7466_v57  ;;  %v11309_v7 = vpack.c.bf16 %v14304_v52, %v14302_v53  ;;  %v17310_v57 = vld [vmem:[#allocation50_spill] sm:$0xff]  ;;  %v17317_v52 = vld [vmem:[#allocation56_spill] sm:$0xff] }
 0x6eb   : > { %11134 = vmatprep.subr.bf16.mxu0 %v17298_v2  ;;  %v17307_v2 = vld [vmem:[#allocation60_spill] sm:$0xff] }
 0x6ec   : > { %v17309_v40 = vpack.c.bf16 %v17307_v2, %v17308_v29 }
 0x6ed   : > { %7473 = vmatpush1.msra.mxu1 %v7472_v27  ;;  %v11311_v27 = vpack.c.bf16 %v14316_v62, %v14308_v30 }
 0x6ee   : > { %11136 = vmatpush1.bf16.msra.mxu0 %v17301_v13  ;;  %7507 = vmatmul.mubr.f32.vlgmr.msra.gmra.mrb[18].mxu1 %v14653_v47  ;;  %v17312_v13 = vpack.c.bf16 %v17310_v57, %v17311_v5  ;;  %v11313_v47 = vpack.c.bf16 %v14322_v46, %v14320_v0 }
 0x6ef   : > { %11138 = vmatprep.subr.bf16.mxu0 %v17304_v23  ;;  %11306 = vmatprep.subr.bf16.mxu1 %v17309_v40  ;;  %v17313_v23 = vld [vmem:[#allocation55_spill] sm:$0xff]  ;;  %v17316_v40 = vld [vmem:[#allocation57_spill] sm:$0xff] }
 0x6f0   : > { %7513 = vmatprep.mubr.f32.mxu1 %v14656_v20  ;;  %11308 = vmatpush1.bf16.msra.mxu1 %v11307_v58  ;;  %v17315_v51 = vpack.c.bf16 %v17313_v23, %v17314_v8  ;;  %v17318_v53 = vpack.c.bf16 %v17316_v40, %v17317_v52  ;;  %v11315_v58 = vpack.c.bf16 %v14337_v11, %v14326_v19  ;;  %v17326_v20 = vld [vmem:[#allocation67_spill] sm:$0xff]  ;;  %v17331_v11 = vld [vmem:[#allocation26_spill] sm:$0xff]  ;;  %v17337_v19 = vld [vmem:[#allocation136_spill] sm:$0xff] }
 0x6f1   : > { %11310 = vmatprep.subr.bf16.mxu1 %v11309_v7 }
 0x6f2   : > { %11140 = vmatpush1.bf16.msra.mxu0 %v17312_v13  ;;  %7515 = vmatmul.mubr.f32.gmra.mrb[20].mxu1 %v14688_v48  ;;  %v17320_v13 = vld [vmem:[#allocation123_spill] sm:$0xff] }
 0x6f3   : > { %11142 = vmatprep.subr.bf16.mxu0 %v17315_v51  ;;  %7521 = vmatprep.mubr.f32.mxu1 %v14697_v61  ;;  %v17319_v51 = vld [vmem:[#allocation89_spill] sm:$0xff]  ;;  %v17323_v61 = vld [vmem:[#allocation20_spill] sm:$0xff] }
 0x6f4   : > { %11312 = vmatpush1.bf16.msra.mxu1 %v11311_v27  ;;  %v11317_v7 = vpack.c.bf16 %v17319_v51, %v14339_v4  ;;  %v17322_v27 = vld [vmem:[#allocation131_spill] sm:$0xff]  ;;  %v17328_v4 = vld [vmem:[#allocation133_spill] sm:$0xff] }
 0x6f5   : > { %11314 = vmatprep.subr.bf16.mxu1 %v11313_v47  ;;  %v17324_v47 = vld [vmem:[#allocation21_spill] sm:$0xff] }
 0x6f6   : > { %11144 = vmatpush1.bf16.msra.mxu0 %v17318_v53  ;;  %7523 = vmatmul.mubr.f32.gmra.mrb[22].mxu1 %v14727_v44  ;;  %v17321_v53 = vld [vmem:[#allocation13_spill] sm:$0xff]  ;;  %v17325_v44 = vld [vmem:[#allocation91_spill] sm:$0xff] }
 0x6f7   : > { %6547 = vmatprep.subr.mxu0 %v14641_v17  ;;  %7529 = vmatprep.mubr.f32.mxu1 %v14737_v50  ;;  %v11319_v48 = vpack.c.bf16 %v17209_v32, %v17325_v44  ;;  %v17327_v50 = vld [vmem:[#allocation95_spill] sm:$0xff]  ;;  %v17340_v17 = vld [vmem:[#allocation48_spill] sm:$0xff] }
 0x6f8   : > { %11316 = vmatpush1.bf16.msra.mxu1 %v11315_v58  ;;  %v11321_v51 = vpack.c.bf16 %v17327_v50, %v17212_v56  ;;  %v17333_v58 = vld [vmem:[#allocation97_spill] sm:$0xff]  ;;  %v17339_v56 = vld [vmem:[#allocation47_spill] sm:$0xff] }
 0x6f9   : > { %11318 = vmatprep.subr.bf16.mxu1 %v11317_v7  ;;  %v17336_v7 = vld [vmem:[#allocation101_spill] sm:$0xff] }
 0x6fa   : > { %6550 = vmatpush1.msra.mxu0 %v14279_v59  ;;  %7531 = vmatmul.mubr.f32.gmra.mrb[24].mxu1 %v17326_v20  ;;  %v17329_v59 = vld [vmem:[#allocation127_spill] sm:$0xff]  ;;  %v17338_v50 = vld [vmem:[#allocation137_spill] sm:$0xff] }
 0x6fb   : > { %6586 = vmatmul.mubr.f32.vlgmr.msra.gmra.mrb[18].mxu0 %v17320_v13  ;;  %11146 = vmatprep.subr.bf16.mxu0 %v17321_v53  ;;  %v17330_v53 = vld [vmem:[#allocation135_spill] sm:$0xff] }
 0x6fc   : > { %6593 = vmatprep.mubr.f32.mxu0 %v17322_v27  ;;  %11148 = vmatpush1.bf16.msra.mxu0 %v17323_v61  ;;  %v17332_v61 = vld [vmem:[#allocation32_spill] sm:$0xff]  ;;  %v17335_v20 = vld [vmem:[#allocation99_spill] sm:$0xff] }
 0x6fd   : > { %11150 = vmatprep.subr.bf16.mxu0 %v17324_v47  ;;  %7671 = vmatprep.mubr.f32.mxu1 %v17329_v59  ;;  %v17334_v47 = vld [vmem:[#allocation98_spill] sm:$0xff]  ;;  %v11325_v44 = vpack.c.bf16 %v17336_v7, %v17335_v20  ;;  %v17343_v7 = vand.u32 4294901760, %v14536_v39  ;;  %v17344_v20 = vld [vmem:[#allocation9_spill] sm:$0xff]  ;;  %v17347_v39 = vld [vmem:[#allocation15_spill] sm:$0xff] }
 0x6fe   : > { %11320 = vmatpush1.bf16.msra.mxu1 %v11319_v48  ;;  %v11323_v32 = vpack.c.bf16 %v17334_v47, %v17333_v58  ;;  %v11329_v48 = vpack.c.bf16 %v17244_v14, %v17237_v60 }
 0x6ff   : > { %6596 = vmatmul.mubr.f32.gmra.mrb[20].mxu0 %v17328_v4  ;;  %11322 = vmatprep.subr.bf16.mxu1 %v11321_v51  ;;  %v17341_v51 = vld [vmem:[#allocation138_spill] sm:$0xff] }
 0x700   : > { %6603 = vmatprep.mubr.f32.mxu0 %v17330_v53  ;;  %11152 = vmatpush1.bf16.msra.mxu0 %v17331_v11  ;;  %v11327_v11 = vpack.c.bf16 %v17236_v21, %v17235_v36 }
 0x701   : > { %11154 = vmatprep.subr.bf16.mxu0 %v17332_v61  ;;  %v17342_v61 = vld [vmem:[#allocation7_spill] sm:$0xff] }
 0x702   : > { %11324 = vmatpush1.bf16.msra.mxu1 %v11323_v32  ;;  %v17346_v32 = vld [vmem:[#allocation10_spill] sm:$0xff] }
 0x703   : > { %6606 = vmatmul.mubr.f32.gmra.mrb[22].mxu0 %v17337_v19  ;;  %11326 = vmatprep.subr.bf16.mxu1 %v11325_v44  ;;  %v11333_v44 = vpack.c.bf16 %v17259_v38, %v17258_v12  ;;  %v17365_v38 = vand.u32 4294901760, %v17261_v43  ;;  %v17367_v12 = vld [vmem:[#allocation44_spill] sm:$0xff]  ;;  %v17373_v43 = vand.u32 4294901760, %v17322_v27 }
 0x704   : > { %6613 = vmatprep.mubr.f32.mxu0 %v17338_v50  ;;  %11156 = vmatpush1.bf16.msra.mxu0 %v17339_v56  ;;  %v17345_v56 = vld [vmem:[#allocation14_spill] sm:$0xff]  ;;  %v17382_v27 = vld [vmem:[#allocation88_spill] sm:$0xff] }
 0x705   : > { %11158 = vmatprep.subr.bf16.mxu0 %v17340_v17  ;;  %v11331_v17 = vpack.c.bf16 %v17253_v33, %v17252_v34 }
 0x706   : > { %11328 = vmatpush1.bf16.msra.mxu1 %v11327_v11  ;;  %v17350_v11 = vld [vmem:[#allocation37_spill] sm:$0xff] }
 0x707   : > { %6616 = vmatmul.mubr.f32.gmra.mrb[24].mxu0 %v17341_v51  ;;  %11330 = vmatprep.subr.bf16.mxu1 %v11329_v48  ;;  %v17351_v48 = vld [vmem:[#allocation36_spill] sm:$0xff] }
 0x708   : > { %11160 = vmatpush1.bf16.msra.mxu0 %v17342_v61  ;;  %6723 = vmatprep.mubr.f32.mxu0 %v17343_v7  ;;  %v11335_v61 = vpack.c.bf16 %v14876_v1, %v14865_v42  ;;  %v17349_v7 = vld [vmem:[#allocation22_spill] sm:$0xff]  ;;  %v17363_v42 = vld [vmem:[#allocation65_spill] sm:$0xff] }
 0x709   : > { %11162 = vmatprep.subr.bf16.mxu0 %v17344_v20  ;;  %v17348_v20 = vld [vmem:[#allocation16_spill] sm:$0xff] }
 0x70a   : > { %11332 = vmatpush1.bf16.msra.mxu1 %v11331_v17  ;;  %v17352_v17 = vld [vmem:[#allocation58_spill] sm:$0xff] }
 0x70b   : > { %11334 = vmatprep.subr.bf16.mxu1 %v11333_v44  ;;  %v17354_v44 = vld [vmem:[#allocation75_spill] sm:$0xff] }
 0x70c   : > { %11164 = vmatpush1.bf16.msra.mxu0 %v17345_v56  ;;  %v17353_v56 = vld [vmem:[#allocation40_spill] sm:$0xff] }
 0x70d   : > { %11166 = vmatprep.subr.bf16.mxu0 %v17346_v32  ;;  %v17355_v32 = vld [vmem:[#allocation39_spill] sm:$0xff] }
 0x70e   : > { %11336 = vmatpush1.bf16.msra.mxu1 %v11335_v61  ;;  %v17356_v61 = vld [vmem:[#allocation79_spill] sm:$0xff] }
 0x70f   : > { %7635 = vmatprep.subr.mxu1 %v14925_v49  ;;  %v17360_v49 = vld [vmem:[#allocation18_spill] sm:$0xff] }
 0x710   : > { %11168 = vmatpush1.bf16.msra.mxu0 %v17347_v39  ;;  %v17357_v39 = vld [vmem:[#allocation43_spill] sm:$0xff] }
 0x711   : > { %11170 = vmatprep.subr.bf16.mxu0 %v17348_v20  ;;  %v17358_v20 = vld [vmem:[#allocation17_spill] sm:$0xff] }
 0x712   : > { %7638 = vmatpush1.msra.mxu1 %v14933_v16  ;;  %v17361_v16 = vand.u32 4294901760, %v17360_v49  ;;  %v17370_v49 = vand.u32 4294901760, %v17263_v54  ;;  %v17378_v54 = vand.u32 4294901760, %v17277_v10  ;;  %v17387_v10 = vand.u32 4294901760, %v17281_v25 }
 0x713   : > { %7674 = vmatmul.mubr.f32.vlgmr.msra.gmra.mrb[18].mxu1 %v17351_v48  ;;  %11338 = vmatprep.subr.bf16.mxu1 %v17352_v17  ;;  %v17364_v17 = vld [vmem:[#allocation82_spill] sm:$0xff]  ;;  %v17394_v25 = vand.u32 4294901760, %v17288_v35  ;;  %v17404_v35 = vand.u32 4294901760, %v17294_v45  ;;  %v17413_v45 = vld [vmem:[#allocation111_spill] sm:$0xff] }
 0x714   : > { %11172 = vmatpush1.bf16.msra.mxu0 %v17349_v7  ;;  %7681 = vmatprep.mubr.f32.mxu1 %v17353_v56  ;;  %v17359_v7 = vand.u32 4294901760, %v17358_v20  ;;  %v17371_v20 = vand.u32 4294901760, %v17320_v13  ;;  %v17379_v13 = vld [vmem:[#allocation34_spill] sm:$0xff] }
 0x715   : > { %11174 = vmatprep.subr.bf16.mxu0 %v17350_v11  ;;  %11340 = vmatpush1.bf16.msra.mxu1 %v17354_v44  ;;  %v17362_v11 = vld [vmem:[#allocation141_spill] sm:$0xff]  ;;  %v17366_v44 = vand.u32 4294901760, %v17260_v24  ;;  %v17376_v24 = vand.u32 4294901760, %v17272_v9  ;;  %v17385_v9 = vand.u32 4294901760, %v17329_v59  ;;  %v17393_v59 = vand.u32 4294901760, %v17338_v50  ;;  %v17403_v50 = vld [vmem:[#allocation122_spill] sm:$0xff] }
 0x716   : > { %11342 = vmatprep.subr.bf16.mxu1 %v17356_v61  ;;  %v11177_v1 = vpack.c.bf16 %v17361_v16, %v17359_v7  ;;  %v17368_v61 = vld [vmem:[#allocation83_spill] sm:$0xff] }
 0x717   : > { %7684 = vmatmul.mubr.f32.gmra.mrb[20].mxu1 %v17362_v11  ;;  %v17372_v7 = vld [vmem:[#allocation147_spill] sm:$0xff] }
 0x718   : > { %11176 = vmatpush1.bf16.msra.mxu0 %v17355_v32  ;;  %7691 = vmatprep.mubr.f32.mxu1 %v17363_v42  ;;  %v11179_v32 = vpack.c.bf16 %v17366_v44, %v17365_v38  ;;  %v17374_v38 = vld [vmem:[#allocation148_spill] sm:$0xff] }
 0x719   : > { %6687 = vmatprep.subr.mxu0 %v17357_v39  ;;  %11344 = vmatpush1.bf16.msra.mxu1 %v17364_v17  ;;  %v17369_v39 = vand.u32 4294901760, %v17264_v28  ;;  %v17377_v44 = vld [vmem:[#allocation84_spill] sm:$0xff] }
 0x71a   : > { %11346 = vmatprep.subr.bf16.mxu1 %v17368_v61 }
 0x71b   : > { %v11181_v16 = vpack.c.bf16 %v17370_v49, %v17369_v39  ;;  %7694 = vmatmul.mubr.f32.gmra.mrb[22].mxu1 %v17372_v7  ;;  %v17381_v49 = vand.u32 4294901760, %v17328_v4  ;;  %v17389_v4 = vand.u32 4294901760, %v17285_v31  ;;  %v17397_v31 = vld [vmem:[#allocation12_spill] sm:$0xff] }
 0x71c   : > { %6689 = vmatpush1.msra.mxu0 %v17367_v12  ;;  %7701 = vmatprep.mubr.f32.mxu1 %v17374_v38  ;;  %v17375_v12 = vand.u32 4294901760, %v17273_v3  ;;  %v17384_v3 = vand.u32 4294901760, %v17330_v53  ;;  %v17391_v53 = vand.u32 4294901760, %v17337_v19 }
 0x71d   : > { %6727 = vmatmul.mubr.f32.vlgmr.msra.gmra.mrb[18].mxu0 %v17371_v20  ;;  %11178 = vmatprep.subr.bf16.mxu0 %v11177_v1  ;;  %v17380_v1 = vand.u32 4294901760, %v17379_v13  ;;  %v17396_v13 = vld [vmem:[#allocation96_spill] sm:$0xff] }
 0x71e   : > { %6735 = vmatprep.mubr.f32.mxu0 %v17373_v43  ;;  %11180 = vmatpush1.bf16.msra.mxu0 %v11179_v32  ;;  %v11183_v28 = vpack.c.bf16 %v17376_v24, %v17375_v12  ;;  %v17383_v32 = vld [vmem:[#allocation68_spill] sm:$0xff]  ;;  %v17388_v43 = vld [vmem:[#allocation90_spill] sm:$0xff]  ;;  %v17390_v12 = vand.u32 4294901760, %v17284_v37  ;;  %v17398_v37 = vand.u32 4294901760, %v17397_v31  ;;  %v17419_v31 = vand.u32 4294901760, %v17310_v57 }
 0x71f   : > { %11348 = vmatpush1.bf16.msra.mxu1 %v17377_v44  ;;  %11182 = vmatprep.subr.bf16.mxu0 %v11181_v16  ;;  %v11185_v39 = vpack.c.bf16 %v17380_v1, %v17378_v54  ;;  %v17386_v16 = vand.u32 4294901760, %v17282_v55  ;;  %v17395_v55 = vand.u32 4294901760, %v17287_v26  ;;  %v17399_v1 = vld [vmem:[#allocation5_spill] sm:$0xff]  ;;  %v17405_v26 = vand.u32 4294901760, %v17293_v63 }
 0x720   : > { %11350 = vmatprep.subr.bf16.mxu1 %v17382_v27  ;;  %7704 = vmatmul.mubr.f32.gmra.mrb[24].mxu1 %v17383_v32  ;;  %v11189_v24 = vpack.c.bf16 %v17390_v12, %v17389_v4  ;;  %v17410_v12 = vand.u32 4294901760, %v17300_v22  ;;  %v17414_v63 = vand.u32 4294901760, %v17303_v18  ;;  %v17420_v22 = vld [vmem:[#allocation120_spill] sm:$0xff]  ;;  %v17423_v18 = vld [vmem:[#allocation118_spill] sm:$0xff] }
 0x721   : > { %6739 = vmatmul.mubr.f32.gmra.mrb[20].mxu0 %v17381_v49  ;;  %7811 = vmatprep.mubr.f32.mxu1 %v17385_v9  ;;  %v11187_v20 = vpack.c.bf16 %v17387_v10, %v17386_v16  ;;  %v11191_v54 = vpack.c.bf16 %v17395_v55, %v17394_v25  ;;  %v17401_v49 = vand.u32 4294901760, %v17341_v51  ;;  %v11195_v9 = vpack.c.bf16 %v17405_v26, %v17404_v35  ;;  %v17406_v16 = vld [vmem:[#allocation103_spill] sm:$0xff]  ;;  %v17409_v51 = vld [vmem:[#allocation105_spill] sm:$0xff]  ;;  %v17415_v25 = vld [vmem:[#allocation46_spill] sm:$0xff] }
 0x722   : > { %6747 = vmatprep.mubr.f32.mxu0 %v17384_v3  ;;  %11184 = vmatpush1.bf16.msra.mxu0 %v11183_v28  ;;  %v17392_v28 = vld [vmem:[#allocation93_spill] sm:$0xff]  ;;  %v17402_v3 = vld [vmem:[#allocation100_spill] sm:$0xff]  ;;  %v17407_v10 = vand.u32 4294901760, %v17297_v15  ;;  %v17416_v55 = vand.u32 4294901760, %v17415_v25  ;;  %v17417_v15 = vld [vmem:[#allocation115_spill] sm:$0xff]  ;;  %v17441_v25 = vand.u32 4294901760, %v14322_v46 }
 0x723   : > { %11352 = vmatpush1.bf16.msra.mxu1 %v17388_v43  ;;  %11186 = vmatprep.subr.bf16.mxu0 %v11185_v39  ;;  %v17400_v39 = vand.u32 4294901760, %v17399_v1  ;;  %v17421_v1 = vand.u32 4294901760, %v17314_v8  ;;  %v17427_v26 = vld [vmem:[#allocation78_spill] sm:$0xff]  ;;  %v17430_v8 = vand.u32 4294901760, %v17316_v40  ;;  %v17439_v40 = vand.u32 4294901760, %v14316_v62  ;;  %v17452_v46 = vld [vmem:[#allocation87_spill] sm:$0xff] }
 0x724   : > { %11354 = vmatprep.subr.bf16.mxu1 %v17392_v28  ;;  %v17428_v57 = vand.u32 4294901760, %v17427_v26  ;;  %v17459_v26 = vand.u32 4294901760, %v17374_v38  ;;  %v17471_v38 = vld [vmem:[#allocation121_spill] sm:$0xff] }
 0x725   : > { %6751 = vmatmul.mubr.f32.gmra.mrb[22].mxu0 %v17391_v53  ;;  %v11193_v19 = vpack.c.bf16 %v17400_v39, %v17398_v37  ;;  %v17422_v39 = vand.u32 4294901760, %v17313_v23  ;;  %v17431_v23 = vld [vmem:[#allocation80_spill] sm:$0xff] }
 0x726   : > { %6759 = vmatprep.mubr.f32.mxu0 %v17393_v59  ;;  %11188 = vmatpush1.bf16.msra.mxu0 %v11187_v20  ;;  %v17408_v20 = vand.u32 4294901760, %v17296_v6  ;;  %v17418_v6 = vand.u32 4294901760, %v17311_v5  ;;  %v17426_v5 = vand.u32 4294901760, %v17305_v41  ;;  %v17437_v41 = vand.u32 4294901760, %v17353_v56 }
 0x727   : > { %11356 = vmatpush1.bf16.msra.mxu1 %v17396_v13  ;;  %11190 = vmatprep.subr.bf16.mxu0 %v11189_v24  ;;  %v17411_v24 = vld [vmem:[#allocation33_spill] sm:$0xff]  ;;  %v17445_v56 = vand.u32 4294901760, %v17363_v42  ;;  %v17457_v42 = vand.u32 4294901760, %v17372_v7  ;;  %v17469_v7 = vand.u32 4294901760, %v17383_v32  ;;  %v17479_v32 = vld [vmem:[#allocation132_spill] sm:$0xff] }
 0x728   : > { %11358 = vmatprep.subr.bf16.mxu1 %v17402_v3  ;;  %v11197_v4 = vpack.c.bf16 %v17408_v20, %v17407_v10  ;;  %v17412_v53 = vand.u32 4294901760, %v17411_v24  ;;  %v11203_v37 = vpack.c.bf16 %v17419_v31, %v17418_v6  ;;  %v17429_v10 = vand.u32 4294901760, %v17317_v52  ;;  %v17448_v31 = vld [vmem:[#allocation86_spill] sm:$0xff] }
 0x729   : > { %6763 = vmatmul.mubr.f32.gmra.mrb[24].mxu0 %v17401_v49  ;;  %v17424_v49 = vand.u32 4294901760, %v17308_v29  ;;  %v17435_v29 = vld [vmem:[#allocation63_spill] sm:$0xff]  ;;  %v17438_v52 = vand.u32 4294901760, %v14308_v30  ;;  %v17444_v6 = vand.u32 4294901760, %v17362_v11  ;;  %v17446_v30 = vld [vmem:[#allocation85_spill] sm:$0xff] }
 0x72a   : > { %6936 = vmatprep.mubr.f32.mxu0 %v17403_v50  ;;  %11192 = vmatpush1.bf16.msra.mxu0 %v11191_v54  ;;  %v11199_v59 = vpack.c.bf16 %v17412_v53, %v17410_v12  ;;  %v11201_v54 = vpack.c.bf16 %v17416_v55, %v17414_v63  ;;  %v17425_v50 = vand.u32 4294901760, %v17307_v2  ;;  %v11207_v20 = vpack.c.bf16 %v17430_v8, %v17429_v10  ;;  %v17433_v12 = vld [vmem:[#allocation81_spill] sm:$0xff]  ;;  %v17456_v11 = vld [vmem:[#allocation119_spill] sm:$0xff]  ;;  %v17462_v10 = vld [vmem:[#allocation92_spill] sm:$0xff] }
 0x72b   : > { %11360 = vmatpush1.bf16.msra.mxu1 %v17406_v16  ;;  %11194 = vmatprep.subr.bf16.mxu0 %v11193_v19  ;;  %v11205_v19 = vpack.c.bf16 %v17422_v39, %v17421_v1  ;;  %v17434_v24 = vand.u32 4294901760, %v17433_v12  ;;  %v17436_v2 = vand.u32 4294901760, %v17351_v48  ;;  %v17440_v63 = vand.u32 4294901760, %v14320_v0  ;;  %v17450_v39 = vld [vmem:[#allocation76_spill] sm:$0xff]  ;;  %v17466_v12 = vld [vmem:[#allocation95_spill] sm:$0xff] }
 0x72c   : > { %11362 = vmatprep.subr.bf16.mxu1 %v17409_v51  ;;  %v11369_v35 = vpack.c.bf16 %v17425_v50, %v17424_v49  ;;  %v17447_v62 = vand.u32 4294901760, %v17446_v30  ;;  %v17451_v0 = vand.u32 4294901760, %v17450_v39  ;;  %v17454_v49 = vld [vmem:[#allocation89_spill] sm:$0xff]  ;;  %v17463_v8 = vand.u32 4294901760, %v17462_v10  ;;  %v17502_v10 = vld [vmem:[#allocation75_spill] sm:$0xff] }
 0x72d   : > { %v11377_v55 = vpack.c.bf16 %v17441_v25, %v17440_v63  ;;  %v17455_v50 = vand.u32 4294901760, %v17454_v49  ;;  %v17474_v63 = vld [vmem:[#allocation99_spill] sm:$0xff]  ;;  %v17481_v30 = vand.u32 4294901760, %v17236_v21  ;;  %v17486_v39 = vand.u32 4294901760, %v17253_v33 }
 0x72e   : > { %11196 = vmatpush1.bf16.msra.mxu0 %v11195_v9  ;;  %v11371_v9 = vpack.c.bf16 %v17428_v57, %v17426_v5  ;;  %v17458_v5 = vld [vmem:[#allocation124_spill] sm:$0xff]  ;;  %v17460_v57 = vld [vmem:[#allocation91_spill] sm:$0xff]  ;;  %v17475_v25 = vand.u32 4294901760, %v17474_v63 }
 0x72f   : > { %11364 = vmatpush1.bf16.msra.mxu1 %v17413_v45  ;;  %11198 = vmatprep.subr.bf16.mxu0 %v11197_v4  ;;  %v17432_v4 = vand.u32 4294901760, %v17431_v23  ;;  %v17464_v23 = vld [vmem:[#allocation94_spill] sm:$0xff] }
 0x730   : > { %11366 = vmatprep.subr.bf16.mxu1 %v17417_v15 }
 0x731   : > { %v11373_v53 = vpack.c.bf16 %v17434_v24, %v17432_v4  ;;  %v17465_v4 = vand.u32 4294901760, %v17464_v23  ;;  %v17467_v24 = vand.u32 4294901760, %v17466_v12  ;;  %v17505_v23 = vld [vmem:[#allocation140_spill] sm:$0xff]  ;;  %v17507_v12 = vld [vmem:[#allocation143_spill] sm:$0xff] }
 0x732   : > { %11200 = vmatpush1.bf16.msra.mxu0 %v11199_v59  ;;  %v11375_v59 = vpack.c.bf16 %v17439_v40, %v17438_v52  ;;  %v17472_v52 = vand.u32 4294901760, %v17333_v58  ;;  %v17473_v40 = vand.u32 4294901760, %v17334_v47  ;;  %v17482_v58 = vand.u32 4294901760, %v17237_v60 }
 0x733   : > { %11368 = vmatpush1.bf16.msra.mxu1 %v17420_v22  ;;  %11202 = vmatprep.subr.bf16.mxu0 %v11201_v54  ;;  %v17442_v54 = vld [vmem:[#allocation61_spill] sm:$0xff]  ;;  %v17483_v47 = vand.u32 4294901760, %v17244_v14 }
 0x734   : > { %7775 = vmatprep.subr.mxu1 %v17423_v18  ;;  %v17443_v48 = vand.u32 4294901760, %v17442_v54 }
 0x736   : > { %11204 = vmatpush1.bf16.msra.mxu0 %v11203_v37  ;;  %v17449_v37 = vand.u32 4294901760, %v17448_v31  ;;  %v11393_v31 = vpack.c.bf16 %v17483_v47, %v17482_v58  ;;  %v15362_v47 = vld [vmem:[%s16277_s4 + $0x268] sm:$0xff] }
 0x737   : > { %7777 = vmatpush1.msra.mxu1 %v17435_v29  ;;  %11206 = vmatprep.subr.bf16.mxu0 %v11205_v19  ;;  %v17453_v19 = vand.u32 4294901760, %v17452_v46  ;;  %v17487_v46 = vld [vmem:[#allocation116_spill] sm:$0xff] }
 0x738   : > { %7815 = vmatmul.mubr.f32.vlgmr.msra.gmra.mrb[18].mxu1 %v17436_v2  ;;  %11370 = vmatprep.subr.bf16.mxu1 %v11369_v35  ;;  %v11379_v1 = vpack.c.bf16 %v17449_v37, %v17447_v62  ;;  %v17468_v2 = vld [vmem:[#allocation125_spill] sm:$0xff]  ;;  %v17484_v37 = vld [vmem:[#allocation134_spill] sm:$0xff] }
 0x739   : > { %7823 = vmatprep.mubr.f32.mxu1 %v17437_v41  ;;  %11372 = vmatpush1.bf16.msra.mxu1 %v11371_v9  ;;  %v11381_v35 = vpack.c.bf16 %v17455_v50, %v17453_v19  ;;  %v17461_v9 = vand.u32 4294901760, %v17460_v57  ;;  %v17470_v41 = vld [vmem:[#allocation129_spill] sm:$0xff]  ;;  %v17500_v57 = vld [vmem:[#allocation58_spill] sm:$0xff] }
 0x73a   : > { %11208 = vmatpush1.bf16.msra.mxu0 %v11207_v20  ;;  %11374 = vmatprep.subr.bf16.mxu1 %v11373_v53  ;;  %v11385_v53 = vpack.c.bf16 %v17467_v24, %v17465_v4  ;;  %v17489_v19 = vld [vmem:[#allocation117_spill] sm:$0xff]  ;;  %v17506_v4 = vld [vmem:[#allocation142_spill] sm:$0xff]  ;;  %v17508_v24 = vld [vmem:[#allocation67_spill] sm:$0xff] }
 0x73b   : > { %6900 = vmatprep.subr.mxu0 %v17443_v48  ;;  %v11383_v20 = vpack.c.bf16 %v17463_v8, %v17461_v9  ;;  %v17490_v21 = vand.u32 4294901760, %v17489_v19  ;;  %v17491_v50 = vld [vmem:[#allocation69_spill] sm:$0xff]  ;;  %v17501_v9 = vld [vmem:[#allocation42_spill] sm:$0xff]  ;;  %v17503_v8 = vld [vmem:[#allocation79_spill] sm:$0xff] }
 0x73c   : > { %7827 = vmatmul.mubr.f32.gmra.mrb[20].mxu1 %v17444_v6  ;;  %v17478_v6 = vld [vmem:[#allocation130_spill] sm:$0xff]  ;;  %v17492_v60 = vand.u32 4294901760, %v17491_v50 }
 0x73d   : > { %7835 = vmatprep.mubr.f32.mxu1 %v17445_v56  ;;  %11376 = vmatpush1.bf16.msra.mxu1 %v11375_v59  ;;  %v11387_v59 = vpack.c.bf16 %v17473_v40, %v17472_v52  ;;  %v17480_v56 = vand.u32 4294901760, %v17235_v36  ;;  %v17488_v36 = vand.u32 4294901760, %v17487_v46 }
 0x73e   : > { %6904 = vmatpush1.msra.mxu0 %v17451_v0  ;;  %11378 = vmatprep.subr.bf16.mxu1 %v11377_v55  ;;  %v17476_v55 = vld [vmem:[#allocation101_spill] sm:$0xff] }
 0x73f   : > { %6938 = vmatmul.mubr.f32.vlgmr.msra.gmra.mrb[18].mxu0 %v17456_v11  ;;  %v17477_v54 = vand.u32 4294901760, %v17476_v55  ;;  %v11391_v62 = vpack.c.bf16 %v17481_v30, %v17480_v56  ;;  %v11397_v49 = vpack.c.bf16 %v17490_v21, %v17488_v36  ;;  %v15347_v30 = vld [vmem:[%s16277_s4 + $0x240] sm:$0xff] }
 0x740   : > { %7839 = vmatmul.mubr.f32.gmra.mrb[22].mxu1 %v17457_v42  ;;  %6944 = vmatprep.mubr.f32.mxu0 %v17458_v5  ;;  %v17495_v42 = vld [vmem:[#allocation72_spill] sm:$0xff] }
 0x741   : > { %7847 = vmatprep.mubr.f32.mxu1 %v17459_v26  ;;  %11380 = vmatpush1.bf16.msra.mxu1 %v11379_v1  ;;  %v11389_v48 = vpack.c.bf16 %v17477_v54, %v17475_v25  ;;  %v17485_v1 = vand.u32 4294901760, %v17252_v34  ;;  %v17496_v5 = vand.u32 4294901760, %v17495_v42  ;;  %v17497_v34 = vld [vmem:[#allocation71_spill] sm:$0xff]  ;;  %v17499_v26 = vld [vmem:[#allocation62_spill] sm:$0xff]  ;;  %v17520_v54 = vld [vmem:[#allocation128_spill] sm:$0xff] }
 0x742   : > { %11382 = vmatprep.subr.bf16.mxu1 %v11381_v35  ;;  %v17493_v35 = vld [vmem:[#allocation70_spill] sm:$0xff]  ;;  %v17498_v33 = vand.u32 4294901760, %v17497_v34 }
 0x743   : > { %6946 = vmatmul.mubr.f32.gmra.mrb[20].mxu0 %v17468_v2  ;;  %v11395_v0 = vpack.c.bf16 %v17486_v39, %v17485_v1  ;;  %v17494_v14 = vand.u32 4294901760, %v17493_v35  ;;  %v17518_v25 = vld [vmem:[#allocation146_spill] sm:$0xff] }
 0x744   : > { %7851 = vmatmul.mubr.f32.gmra.mrb[24].mxu1 %v17469_v7  ;;  %6952 = vmatprep.mubr.f32.mxu0 %v17470_v41  ;;  %v17513_v7 = vld [vmem:[#allocation66_spill] sm:$0xff]  ;;  %v15335_v55 = vand.u32 4294901760, %v17518_v25 }
 0x745   : > { %11384 = vmatpush1.bf16.msra.mxu1 %v11383_v20  ;;  %8024 = vmatprep.mubr.f32.mxu1 %v17471_v38  ;;  %v11399_v11 = vpack.c.bf16 %v17494_v14, %v17492_v60  ;;  %v17504_v20 = vld [vmem:[#allocation139_spill] sm:$0xff]  ;;  %v15323_v41 = vand.u32 4294901760, %v17513_v7  ;;  %v16690_v60 = vand.u32 4294901760, %v15362_v47  ;;  %v15423_v14 = vld [vmem:[%s16277_s4 + $0x260] sm:$0xff]  ;;  %v15434_v42 = vld [vmem:[%s16277_s4 + $0x288] sm:$0xff] }
 0x746   : > { %11386 = vmatprep.subr.bf16.mxu1 %v11385_v53  ;;  %v17512_v53 = vld [vmem:[#allocation64_spill] sm:$0xff]  ;;  %17519 = vst [vmem:[#allocation106_spill] sm:$0xff] %v15335_v55  ;;  %v15398_v36 = vsub.f32 %v17518_v25, %v15335_v55  ;;  %v15473_v25 = vld [vmem:[%s16277_s4 + $0x280] sm:$0xff] }
 0x747   : > { %6954 = vmatmul.mubr.f32.gmra.mrb[22].mxu0 %v17478_v6  ;;  %v15320_v2 = vand.u32 4294901760, %v17512_v53  ;;  %v15375_v1 = vsub.f32 %v17513_v7, %v15323_v41 }
 0x748   : > { %6960 = vmatprep.mubr.f32.mxu0 %v17479_v32  ;;  %17529 = vst [vmem:[#allocation24_spill] sm:$0xff] %v15398_v36 }
 0x749   : > { %11388 = vmatpush1.bf16.msra.mxu1 %v11387_v59  ;;  %v17516_v59 = vld [vmem:[#allocation145_spill] sm:$0xff]  ;;  %17524 = vst [vmem:[#allocation110_spill] sm:$0xff] %v15375_v1 }
 0x74a   : > { %11390 = vmatprep.subr.bf16.mxu1 %v11389_v48  ;;  %v15332_v63 = vand.u32 4294901760, %v17516_v59  ;;  %v15338_v48 = vand.u32 4294901760, %v17520_v54 }
 0x74b   : > { %6962 = vmatmul.mubr.f32.gmra.mrb[24].mxu0 %v17484_v37  ;;  %v15371_v37 = vsub.f32 %v17512_v53, %v15320_v2 }
 0x74c   : > { %17517 = vst [vmem:[#allocation104_spill] sm:$0xff] %v15332_v63  ;;  %17521 = vst [vmem:[#allocation74_spill] sm:$0xff] %v15338_v48  ;;  %v15394_v46 = vsub.f32 %v17516_v59, %v15332_v63 }
 0x74d   : > { %11392 = vmatpush1.bf16.msra.mxu1 %v11391_v62  ;;  %v15352_v62 = vld [vmem:[%s16277_s4 + $0x250] sm:$0xff]  ;;  %17523 = vst [vmem:[#allocation107_spill] sm:$0xff] %v15371_v37  ;;  %v16693_v34 = vand.u32 4294901760, %v15371_v37 }
 0x74e   : > { %11394 = vmatprep.subr.bf16.mxu1 %v11393_v31  ;;  %v15367_v31 = vld [vmem:[%s16277_s4 + $0x278] sm:$0xff]  ;;  %17528 = vst [vmem:[#allocation19_spill] sm:$0xff] %v15394_v46  ;;  %v16688_v21 = vand.u32 4294901760, %v15352_v62 }
 0x74f   : > { %v16689_v35 = vand.u32 4294901760, %v15367_v31 }
 0x751   : > { %11396 = vmatpush1.bf16.msra.mxu1 %v11395_v0 }
 0x752   : > { %11398 = vmatprep.subr.bf16.mxu1 %v11397_v49  ;;  %v15410_v49 = vsub.f32 %v17520_v54, %v15338_v48  ;;  %v15478_v54 = vld [vmem:[%s16277_s4 + $0x290] sm:$0xff] }
 0x754   : > { %17531 = vst [vmem:[#allocation114_spill] sm:$0xff] %v15410_v49  ;;  %v16706_v7 = vand.u32 4294901760, %v15410_v49 }
 0x755   : > { %11400 = vmatpush1.bf16.msra.mxu1 %v11399_v11  ;;  %v15428_v11 = vld [vmem:[%s16277_s4 + $0x270] sm:$0xff] }
 0x756   : > { %7988 = vmatprep.subr.mxu1 %v17496_v5  ;;  %v15439_v5 = vld [vmem:[%s16277_s4 + $0x298] sm:$0xff]  ;;  %v16701_v53 = vand.u32 4294901760, %v15428_v11 }
 0x757   : > { %v16707_v59 = vand.u32 4294901760, %v15439_v5 }
 0x759   : > { %7992 = vmatpush1.msra.mxu1 %v17498_v33 }
 0x75a   : > { %8026 = vmatmul.mubr.f32.vlgmr.msra.gmra.mrb[18].mxu1 %v17499_v26  ;;  %11402 = vmatprep.subr.bf16.mxu1 %v17500_v57  ;;  %v16696_v57 = vand.u32 4294901760, %v15375_v1 }
 0x75b   : > { %8032 = vmatprep.mubr.f32.mxu1 %v17501_v9  ;;  %11404 = vmatpush1.bf16.msra.mxu1 %v17502_v10 }
 0x75c   : > { %11406 = vmatprep.subr.bf16.mxu1 %v17503_v8  ;;  %v16698_v8 = vand.u32 4294901760, %v15398_v36 }
 0x75e   : > { %8034 = vmatmul.mubr.f32.gmra.mrb[20].mxu1 %v17504_v20 }
 0x75f   : > { %8040 = vmatprep.mubr.f32.mxu1 %v17505_v23  ;;  %11408 = vmatpush1.bf16.msra.mxu1 %v17364_v17  ;;  %v15285_v17 = vld [vmem:[%s16277_s4 + $0x228] sm:$0xff] }
 0x760   : > { %11410 = vmatprep.subr.bf16.mxu1 %v17368_v61  ;;  %v15290_v61 = vld [vmem:[%s16277_s4 + $0x238] sm:$0xff] }
 0x761   : > { %v16705_v40 = vand.u32 4294901760, %v15290_v61 }
 0x762   : > { %8042 = vmatmul.mubr.f32.gmra.mrb[22].mxu1 %v17506_v4 }
 0x763   : > { %8048 = vmatprep.mubr.f32.mxu1 %v17507_v12  ;;  %11412 = vmatpush1.bf16.msra.mxu1 %v17377_v44  ;;  %v17509_v44 = vld [vmem:[#allocation113_spill] sm:$0xff] }
 0x764   : > { %11414 = vmatprep.subr.bf16.mxu1 %v17382_v27  ;;  %v15293_v27 = vand.u32 4294901760, %v17509_v44 }
 0x766   : > { %8050 = vmatmul.mubr.f32.gmra.mrb[24].mxu1 %v17508_v24  ;;  %v15356_v58 = vsub.f32 %v17509_v44, %v15293_v27 }
 0x767   : > { %11416 = vmatpush1.bf16.msra.mxu1 %v17388_v43  ;;  %8155 = vmatprep.mubr.f32.mxu1 %v17471_v38  ;;  %v15298_v43 = vld [vmem:[%s16277_s4 + $0x220] sm:$0xff]  ;;  %v17514_v38 = vld [vmem:[#allocation144_spill] sm:$0xff] }
 0x768   : > { %11418 = vmatprep.subr.bf16.mxu1 %v17392_v28  ;;  %v15303_v28 = vld [vmem:[%s16277_s4 + $0x230] sm:$0xff]  ;;  %v15326_v52 = vand.u32 4294901760, %v17514_v38  ;;  %v16704_v6 = vand.u32 4294901760, %v15298_v43  ;;  %17522 = vst [vmem:[#allocation109_spill] sm:$0xff] %v15356_v58  ;;  %v16695_v33 = vand.u32 4294901760, %v15356_v58 }
 0x769   : > { %v16703_v32 = vand.u32 4294901760, %v15303_v28 }
 0x76a   : > { %17515 = vst [vmem:[#allocation102_spill] sm:$0xff] %v15326_v52 }
 0x76b   : > { %11420 = vmatpush1.bf16.msra.mxu1 %v17396_v13  ;;  %v17510_v13 = vld [vmem:[#allocation126_spill] sm:$0xff]  ;;  %v15404_v19 = vpack.c.bf16 %v16703_v32, %v16704_v6 }
 0x76c   : > { %11422 = vmatprep.subr.bf16.mxu1 %v17402_v3  ;;  %v15306_v3 = vand.u32 4294901760, %v17510_v13 }
 0x76d   : > { %17530 = vst [vmem:[#allocation23_spill] sm:$0xff] %v15404_v19 }
 0x76e   : > { %17511 = vst [vmem:[#allocation73_spill] sm:$0xff] %v15306_v3  ;;  %v15383_v39 = vsub.f32 %v17510_v13, %v15306_v3 }
 0x76f   : > { %11424 = vmatpush1.bf16.msra.mxu1 %v17406_v16  ;;  %v15312_v16 = vld [vmem:[%s16277_s4 + $0x248] sm:$0xff] }
 0x770   : > { %11426 = vmatprep.subr.bf16.mxu1 %v17409_v51  ;;  %v15317_v51 = vld [vmem:[%s16277_s4 + $0x258] sm:$0xff]  ;;  %v16694_v56 = vand.u32 4294901760, %v15312_v16  ;;  %17526 = vst [vmem:[#allocation112_spill] sm:$0xff] %v15383_v39  ;;  %v16700_v44 = vand.u32 4294901760, %v15383_v39  ;;  %v17546_v32 = vand.u32 4294901760, %v15312_v16 }
 0x773   : > { %11428 = vmatpush1.bf16.msra.mxu1 %v17413_v45  ;;  %v8252_v45 = vand.u32 4294901760, %v15285_v17 }
 0x774   : > { %11430 = vmatprep.subr.bf16.mxu1 %v17417_v15  ;;  %v16692_v15 = vand.u32 4294901760, %v15317_v51 }
 0x775   : > { %v15390_v0 = vpack.c.bf16 %v16705_v40, %v8252_v45  ;;  %v15561_v40 = vld [vmem:[%s16277_s4 + $0x2c8] sm:$0xff] }
 0x776   : > { %v15416_v50 = vpack.c.bf16 %v16692_v15, %v16694_v56  ;;  %v15501_v15 = vsub.f32 %v15375_v1, %v16696_v57  ;;  %v15522_v57 = vsub.f32 %v15383_v39, %v16700_v44  ;;  %v15547_v44 = vsub.f32 %v15410_v49, %v16706_v7  ;;  %v15566_v7 = vld [vmem:[%s16277_s4 + $0x2d8] sm:$0xff] }
 0x777   : > { %11432 = vmatpush1.bf16.msra.mxu1 %v17420_v22  ;;  %v15379_v22 = vsub.f32 %v17514_v38, %v15326_v52  ;;  %17527 = vst [vmem:[#allocation51_spill] sm:$0xff] %v15390_v0  ;;  %v16708_v38 = vand.u32 4294901760, %v15434_v42  ;;  %v15579_v39 = vsub.f32 %v15285_v17, %v8252_v45  ;;  %v17540_v45 = vand.u32 4294901760, %v15290_v61  ;;  %v15613_v17 = vld [vmem:[%s16277_s4 + $0x2d0] sm:$0xff] }
 0x778   : > { %8121 = vmatprep.subr.mxu1 %v17423_v18  ;;  %v16691_v18 = vand.u32 4294901760, %v15347_v30  ;;  %17532 = vst [vmem:[#allocation29_spill] sm:$0xff] %v15416_v50 }
 0x779   : > { %17525 = vst [vmem:[#allocation108_spill] sm:$0xff] %v15379_v22  ;;  %v16699_v10 = vand.u32 4294901760, %v15379_v22 }
 0x77a   : > { %v15456_v13 = vpack.c.bf16 %v16688_v21, %v16691_v18  ;;  %v8353_v21 = vsub.f32 %v15371_v37, %v16693_v34  ;;  %v15496_v18 = vsub.f32 %v15356_v58, %v16695_v33  ;;  %v15517_v33 = vsub.f32 %v15398_v36, %v16698_v8 }
 0x77b   : > { %8123 = vmatpush1.msra.mxu1 %v17435_v29  ;;  %v16697_v29 = vand.u32 4294901760, %v15394_v46  ;;  %v15506_v34 = vsub.f32 %v15379_v22, %v16699_v10  ;;  %v15537_v10 = vld [vmem:[%s16277_s4 + $0x2a0] sm:$0xff]  ;;  %v17548_v36 = vand.u32 4294901760, %v15347_v30  ;;  %v17590_v37 = vand.u32 4294901760, %v15561_v40 }
 0x77c   : > { %8157 = vmatmul.mubr.f32.vlgmr.msra.gmra.mrb[18].mxu1 %v17499_v26  ;;  %11434 = vmatprep.subr.bf16.mxu1 %v15390_v0  ;;  %17533 = vst [vmem:[#allocation28_spill] sm:$0xff] %v15456_v13  ;;  %v16702_v26 = vand.u32 4294901760, %v15423_v14  ;;  %v8354_v6 = vand.u32 4294901760, %v8353_v21 }
 0x77d   : > { %8163 = vmatprep.mubr.f32.mxu1 %v17501_v9  ;;  %11436 = vmatpush1.bf16.msra.mxu1 %v15404_v19  ;;  %v15466_v9 = vpack.c.bf16 %v16689_v35, %v16690_v60  ;;  %v15486_v35 = vld [vmem:[%s16277_s4 + $0x2a8] sm:$0xff]  ;;  %v15491_v60 = vld [vmem:[%s16277_s4 + $0x2b8] sm:$0xff]  ;;  %v15512_v56 = vsub.f32 %v15394_v46, %v16697_v29  ;;  %v17545_v29 = vand.u32 4294901760, %v15303_v28 }
 0x77e   : > { %11438 = vmatprep.subr.bf16.mxu1 %v15416_v50  ;;  %v17541_v8 = vand.u32 4294901760, %v15486_v35  ;;  %v17575_v50 = vand.u32 4294901760, %v15491_v60 }
 0x77f   : > { %17534 = vst [vmem:[#allocation30_spill] sm:$0xff] %v15466_v9  ;;  %v15633_v21 = vsub.f32 %v15303_v28, %v17545_v29  ;;  %v17552_v29 = vand.u32 4294901760, %v15362_v47 }
 0x780   : > { %8165 = vmatmul.mubr.f32.gmra.mrb[20].mxu1 %v17504_v20  ;;  %v15530_v20 = vpack.c.bf16 %v16701_v53, %v16702_v26  ;;  %v15554_v53 = vpack.c.bf16 %v16707_v59, %v16708_v38  ;;  %v17537_v38 = vand.u32 4294901760, %v15473_v25  ;;  %v15592_v26 = vld [vmem:[%s16277_s4 + $0x2c0] sm:$0xff] }
 0x781   : > { %8171 = vmatprep.mubr.f32.mxu1 %v17505_v23  ;;  %11440 = vmatpush1.bf16.msra.mxu1 %v15456_v13  ;;  %v15542_v23 = vld [vmem:[%s16277_s4 + $0x2b0] sm:$0xff] }
 0x782   : > { %17535 = vst [vmem:[#allocation38_spill] sm:$0xff] %v15530_v20  ;;  %11442 = vmatprep.subr.bf16.mxu1 %v15466_v9  ;;  %17536 = vst [vmem:[#allocation35_spill] sm:$0xff] %v15554_v53 }
 0x784   : > { %8173 = vmatmul.mubr.f32.gmra.mrb[22].mxu1 %v17506_v4  ;;  %v17538_v4 = vand.u32 4294901760, %v15478_v54 }
 0x785   : > { %8179 = vmatprep.mubr.f32.mxu1 %v17507_v12  ;;  %11444 = vmatpush1.bf16.msra.mxu1 %v15530_v20  ;;  %v15599_v12 = vsub.f32 %v15290_v61, %v17540_v45  ;;  %v15618_v61 = vld [vmem:[%s16277_s4 + $0x2e8] sm:$0xff]  ;;  %v15623_v45 = vld [vmem:[%s16277_s4 + $0x2f8] sm:$0xff]  ;;  %v17547_v20 = vand.u32 4294901760, %v15317_v51 }
 0x786   : > { %v15587_v59 = vpack.c.bf16 %v17538_v4, %v17537_v38  ;;  %11446 = vmatprep.subr.bf16.mxu1 %v15554_v53  ;;  %v17542_v38 = vand.u32 4294901760, %v15491_v60  ;;  %v15638_v53 = vsub.f32 %v15312_v16, %v17546_v32  ;;  %v15658_v16 = vsub.f32 %v15362_v47, %v17552_v29 }
 0x787   : > { %v15643_v49 = vsub.f32 %v15317_v51, %v17547_v20  ;;  %v17554_v51 = vand.u32 4294901760, %v15537_v10  ;;  %v17555_v32 = vand.u32 4294901760, %v15542_v23  ;;  %v17557_v29 = vand.u32 4294901760, %v15367_v31 }
 0x788   : > { %17539 = vst [vmem:[#allocation54_spill] sm:$0xff] %v15587_v59  ;;  %v15606_v4 = vpack.c.bf16 %v17542_v38, %v17541_v8  ;;  %v17544_v8 = vand.u32 4294901760, %v15298_v43  ;;  %17553 = vst [vmem:[#allocation8_spill] sm:$0xff] %v15658_v16  ;;  %8181 = vmatmul.mubr.f32.gmra.mrb[24].mxu1 %v17508_v24  ;;  %v17588_v58 = vand.u32 4294901760, %v15638_v53 }
 0x789   : > { %v15665_v20 = vpack.c.bf16 %v17555_v32, %v17554_v51  ;;  %11448 = vmatpush1.bf16.msra.mxu1 %v15587_v59  ;;  %8355 = vmatprep.mubr.f32.mxu1 %v8354_v6  ;;  %v15685_v51 = vsub.f32 %v15367_v31, %v17557_v29  ;;  %v17559_v32 = vand.u32 4294901760, %v15423_v14  ;;  %v17560_v6 = vand.u32 4294901760, %v15428_v11 }
 0x78a   : > { %17543 = vst [vmem:[#allocation41_spill] sm:$0xff] %v15606_v4  ;;  %v15628_v38 = vsub.f32 %v15298_v43, %v17544_v8  ;;  %v15648_v43 = vsub.f32 %v15347_v30, %v17548_v36  ;;  %v17550_v8 = vand.u32 4294901760, %v15352_v62  ;;  %v15670_v30 = vld [vmem:[%s16277_s4 + $0x2e0] sm:$0xff]  ;;  %11450 = vmatprep.subr.bf16.mxu1 %v15606_v4  ;;  %v17561_v36 = vand.u32 4294901760, %v15561_v40  ;;  %v15719_v4 = vld [vmem:[%s16277_s4 + $0x308] sm:$0xff] }
 0x78b   : > { %17556 = vst [vmem:[#allocation6_spill] sm:$0xff] %v15665_v20  ;;  %17558 = vst [vmem:[#allocation27_spill] sm:$0xff] %v15685_v51  ;;  %v15690_v9 = vsub.f32 %v15423_v14, %v17559_v32  ;;  %v15695_v24 = vsub.f32 %v15428_v11, %v17560_v6  ;;  %v17564_v31 = vand.u32 4294901760, %v15434_v42  ;;  %v17565_v14 = vand.u32 4294901760, %v15439_v5 }
 0x78c   : > { %17549 = vst [vmem:[#allocation11_spill] sm:$0xff] %v15648_v43  ;;  %v15653_v28 = vsub.f32 %v15352_v62, %v17550_v8  ;;  %v15675_v62 = vld [vmem:[%s16277_s4 + $0x2f0] sm:$0xff]  ;;  %v17562_v8 = vand.u32 4294901760, %v15566_v7  ;;  %v17568_v11 = vand.u32 4294901760, %v15592_v26  ;;  %v17569_v59 = vand.u32 4294901760, %v15613_v17 }
 0x78d   : > { %v15707_v29 = vsub.f32 %v15434_v42, %v17564_v31  ;;  %v15712_v32 = vsub.f32 %v15439_v5, %v17565_v14  ;;  %v17566_v42 = vand.u32 4294901760, %v15473_v25  ;;  %v17567_v5 = vand.u32 4294901760, %v15478_v54  ;;  %11452 = vmatpush1.bf16.msra.mxu1 %v15665_v20 }
 0x78e   : > { %17551 = vst [vmem:[#allocation52_spill] sm:$0xff] %v15653_v28  ;;  %v15702_v47 = vpack.c.bf16 %v17562_v8, %v17561_v36  ;;  %v15724_v36 = vld [vmem:[%s16277_s4 + $0x318] sm:$0xff]  ;;  %v15743_v13 = vpack.c.bf16 %v17569_v59, %v17568_v11  ;;  %v17574_v20 = vand.u32 4294901760, %v15486_v35  ;;  %v15776_v6 = vsub.f32 %v15491_v60, %v17575_v50 }
 0x78f   : > { %v15729_v8 = vsub.f32 %v15473_v25, %v17566_v42  ;;  %v15734_v31 = vsub.f32 %v15478_v54, %v17567_v5  ;;  %v17571_v25 = vand.u32 4294901760, %v15618_v61  ;;  %v17572_v42 = vand.u32 4294901760, %v15623_v45  ;;  %v15754_v54 = vld [vmem:[%s16277_s4 + $0x300] sm:$0xff]  ;;  %v15759_v5 = vld [vmem:[%s16277_s4 + $0x310] sm:$0xff] }
 0x790   : > { %17563 = vst [vmem:[#allocation25_spill] sm:$0xff] %v15702_v47  ;;  %17570 = vst [vmem:[#allocation31_spill] sm:$0xff] %v15743_v13  ;;  %11454 = vmatprep.subr.bf16.mxu1 %v15702_v47  ;;  %v15771_v22 = vsub.f32 %v15486_v35, %v17574_v20  ;;  %v17576_v59 = vand.u32 4294901760, %v15537_v10  ;;  %v17580_v20 = vand.u32 4294901760, %v15579_v39  ;;  %v17581_v60 = vand.u32 4294901760, %v15599_v12 }
 0x791   : > { %v15749_v46 = vpack.c.bf16 %v17572_v42, %v17571_v25  ;;  %v17577_v25 = vand.u32 4294901760, %v15670_v30  ;;  %v17578_v42 = vand.u32 4294901760, %v15675_v62  ;;  %11456 = vmatpush1.bf16.msra.mxu1 %v15743_v13  ;;  %v17585_v1 = vand.u32 4294901760, %v15719_v4 }
 0x792   : > { %v15781_v11 = vsub.f32 %v15537_v10, %v17576_v59  ;;  %v8418_v50 = vsub.f32 %v15579_v39, %v17580_v20  ;;  %v8430_v19 = vsub.f32 %v15599_v12, %v17581_v60  ;;  %v15801_v10 = vld [vmem:[%s16277_s4 + $0x328] sm:$0xff]  ;;  %v17582_v59 = vand.u32 4294901760, %v15628_v38 }
 0x793   : > { %17573 = vst [vmem:[#allocation45_spill] sm:$0xff] %v15749_v46  ;;  %v15787_v14 = vpack.c.bf16 %v17578_v42, %v17577_v25  ;;  %v17583_v42 = vand.u32 4294901760, %v15633_v21  ;;  %v17584_v60 = vand.u32 4294901760, %v15542_v23  ;;  %11458 = vmatprep.subr.bf16.mxu1 %v15749_v46  ;;  %v17586_v0 = vand.u32 4294901760, %v15724_v36 }
 0x794   : > { %v8424_v25 = vsub.f32 %v15628_v38, %v17582_v59  ;;  %v17589_v20 = vand.u32 4294901760, %v15643_v49  ;;  %v17595_v3 = vand.u32 4294901760, %v15759_v5 }
 0x795   : > { %17579 = vst [vmem:[#allocation77_spill] sm:$0xff] %v15787_v14  ;;  %v8436_v35 = vsub.f32 %v15633_v21, %v17583_v42  ;;  %v15814_v13 = vsub.f32 %v15542_v23, %v17584_v60  ;;  %v15821_v59 = vpack.c.bf16 %v17586_v0, %v17585_v1  ;;  %v8442_v42 = vsub.f32 %v15638_v53, %v17588_v58 }
 0x796   : > { %v8454_v47 = vsub.f32 %v15643_v49, %v17589_v20  ;;  %v15832_v23 = vsub.f32 %v15561_v40, %v17590_v37  ;;  %v17592_v60 = vand.u32 4294901760, %v15566_v7  ;;  %v17594_v58 = vand.u32 4294901760, %v15754_v54  ;;  %11460 = vmatpush1.bf16.msra.mxu1 %v15787_v14 }
 0x797   : > { %17587 = vst [vmem:[#allocation60_spill] sm:$0xff] %v15821_v59  ;;  %v15848_v20 = vand.u32 4294901760, %v15801_v10  ;;  %v8419_v40 = vand.u32 4294901760, %v8418_v50  ;;  %v8431_v37 = vand.u32 4294901760, %v8430_v19  ;;  %v8425_v55 = vand.u32 4294901760, %v8424_v25  ;;  %11462 = vmatprep.subr.bf16.mxu1 %v15821_v59 }
 0x798   : > { %17591 = vst [vmem:[#allocation59_spill] sm:$0xff] %v15832_v23  ;;  %v15837_v46 = vsub.f32 %v15566_v7, %v17592_v60  ;;  %v15845_v48 = vpack.c.bf16 %v17595_v3, %v17594_v58  ;;  %v8437_v7 = vand.u32 4294901760, %v8436_v35  ;;  %v17597_v60 = vand.u32 4294901760, %v15648_v43  ;;  %v15861_v3 = vld [vmem:[%s16277_s4 + $0x320] sm:$0xff] }
 0x799   : > { %v17598_v0 = vand.u32 4294901760, %v15653_v28  ;;  %v8443_v19 = vand.u32 4294901760, %v8442_v42  ;;  %v8455_v50 = vand.u32 4294901760, %v8454_v47  ;;  %v17599_v58 = vand.u32 4294901760, %v15592_v26 }
 0x79a   : > { %17593 = vst [vmem:[#allocation50_spill] sm:$0xff] %v15837_v46  ;;  %17596 = vst [vmem:[#allocation49_spill] sm:$0xff] %v15845_v48  ;;  %v8448_v1 = vsub.f32 %v15648_v43, %v17597_v60  ;;  %v17601_v14 = vand.u32 4294901760, %v15658_v16  ;;  %v17602_v47 = vand.u32 4294901760, %v15685_v51  ;;  %v17603_v35 = vand.u32 4294901760, %v15618_v61  ;;  %11464 = vmatpush1.bf16.msra.mxu1 %v15845_v48 }
 0x79b   : > { %v8460_v63 = vsub.f32 %v15653_v28, %v17598_v0  ;;  %v15868_v60 = vsub.f32 %v15592_v26, %v17599_v58  ;;  %v17600_v0 = vand.u32 4294901760, %v15613_v17  ;;  %v17604_v26 = vand.u32 4294901760, %v15623_v45  ;;  %8317 = vmatprep.subr.mxu1 %v15848_v20 }
 0x79c   : > { %v8466_v52 = vsub.f32 %v15658_v16, %v17601_v14  ;;  %v8478_v42 = vsub.f32 %v15685_v51, %v17602_v47  ;;  %v15884_v25 = vsub.f32 %v15618_v61, %v17603_v35  ;;  %v15895_v14 = vand.u32 4294901760, %v15861_v3 }
 0x79d   : > { %v15873_v59 = vsub.f32 %v15613_v17, %v17600_v0  ;;  %v15889_v58 = vsub.f32 %v15623_v45, %v17604_v26  ;;  %v11465_v47 = vpack.c.bf16 %v8431_v37, %v8419_v40  ;;  %v11467_v51 = vpack.c.bf16 %v8437_v7, %v8425_v55 }
 0x79e   : > { %v8449_v16 = vand.u32 4294901760, %v8448_v1  ;;  %v11469_v61 = vpack.c.bf16 %v8455_v50, %v8443_v19  ;;  %v8461_v35 = vand.u32 4294901760, %v8460_v63  ;;  %v17605_v28 = vand.u32 4294901760, %v15690_v9  ;;  %8319 = vmatpush1.msra.mxu1 %v15895_v14 }
 0x79f   : > { %v17606_v26 = vand.u32 4294901760, %v15695_v24  ;;  %v8467_v17 = vand.u32 4294901760, %v8466_v52  ;;  %v8479_v48 = vand.u32 4294901760, %v8478_v42  ;;  %v16776_v43 = vand.u32 4294901760, %v15729_v8  ;;  %11466 = vmatprep.subr.bf16.mxu1 %v11465_v47 }
 0x7a0   : > { %v8472_v45 = vsub.f32 %v15690_v9, %v17605_v28  ;;  %v17607_v55 = vand.u32 4294901760, %v15707_v29  ;;  %v17608_v63 = vand.u32 4294901760, %v15712_v32  ;;  %v17609_v19 = vand.u32 4294901760, %v15670_v30 }
 0x7a1   : > { %v8484_v0 = vsub.f32 %v15695_v24, %v17606_v26  ;;  %v17611_v7 = vand.u32 4294901760, %v15496_v18  ;;  %v11471_v28 = vpack.c.bf16 %v8461_v35, %v8449_v16  ;;  %v17612_v40 = vand.u32 4294901760, %v15501_v15 }
 0x7a2   : > { %v8490_v1 = vsub.f32 %v15707_v29, %v17607_v55  ;;  %v8502_v37 = vsub.f32 %v15712_v32, %v17608_v63  ;;  %v15917_v52 = vsub.f32 %v15670_v30, %v17609_v19  ;;  %v17610_v55 = vand.u32 4294901760, %v15675_v62 }
 0x7a3   : > { %8361 = vmatmul.mubr.f32.vlgmr.msra.gmra.mrb[18].mxu1 %v17611_v7  ;;  %v8473_v30 = vand.u32 4294901760, %v8472_v45  ;;  %v16775_v19 = vand.u32 4294901760, %v15837_v46  ;;  %v11473_v42 = vpack.c.bf16 %v8479_v48, %v8467_v17  ;;  %v8485_v50 = vand.u32 4294901760, %v8484_v0 }
 0x7a4   : > { %v15926_v63 = vsub.f32 %v15675_v62, %v17610_v55  ;;  %8371 = vmatprep.mubr.f32.mxu1 %v17612_v40  ;;  %11468 = vmatpush1.bf16.msra.mxu1 %v11467_v51  ;;  %v8496_v26 = vsub.f32 %v15729_v8, %v16776_v43  ;;  %v17613_v62 = vand.u32 4294901760, %v15734_v31  ;;  %v8491_v47 = vand.u32 4294901760, %v8490_v1 }
 0x7a5   : > { %11470 = vmatprep.subr.bf16.mxu1 %v11469_v61  ;;  %v8503_v16 = vand.u32 4294901760, %v8502_v37  ;;  %v17614_v35 = vand.u32 4294901760, %v15771_v22  ;;  %v17615_v15 = vand.u32 4294901760, %v15776_v6  ;;  %v17616_v51 = vand.u32 4294901760, %v15719_v4 }
 0x7a6   : > { %v8508_v18 = vsub.f32 %v15734_v31, %v17613_v62  ;;  %v17617_v0 = vand.u32 4294901760, %v15781_v11  ;;  %v17618_v61 = vand.u32 4294901760, %v15814_v13  ;;  %v17619_v37 = vand.u32 4294901760, %v15832_v23 }
 0x7a7   : > { %v8514_v45 = vsub.f32 %v15771_v22, %v17614_v35  ;;  %v8526_v48 = vsub.f32 %v15776_v6, %v17615_v15  ;;  %v15948_v17 = vsub.f32 %v15719_v4, %v17616_v51  ;;  %v17620_v55 = vand.u32 4294901760, %v15506_v34 }
 0x7a8   : > { %v8520_v40 = vsub.f32 %v15781_v11, %v17617_v0  ;;  %v8532_v1 = vsub.f32 %v15814_v13, %v17618_v61  ;;  %v8538_v7 = vsub.f32 %v15832_v23, %v17619_v37  ;;  %v8550_v4 = vsub.f32 %v15837_v46, %v16775_v19  ;;  %11472 = vmatpush1.bf16.msra.mxu1 %v11471_v28 }
 0x7a9   : > { %8377 = vmatmul.mubr.f32.gmra.mrb[20].mxu1 %v17620_v55  ;;  %v17621_v51 = vand.u32 4294901760, %v15724_v36  ;;  %v17622_v61 = vand.u32 4294901760, %v15512_v56  ;;  %v11475_v34 = vpack.c.bf16 %v8485_v50, %v8473_v30  ;;  %v8497_v37 = vand.u32 4294901760, %v8496_v26  ;;  %11474 = vmatprep.subr.bf16.mxu1 %v11473_v42 }
 0x7aa   : > { %v8509_v55 = vand.u32 4294901760, %v8508_v18  ;;  %v11477_v19 = vpack.c.bf16 %v8503_v16, %v8491_v47  ;;  %v8515_v43 = vand.u32 4294901760, %v8514_v45  ;;  %v8527_v62 = vand.u32 4294901760, %v8526_v48 }
 0x7ab   : > { %v15970_v0 = vsub.f32 %v15724_v36, %v17621_v51  ;;  %8387 = vmatprep.mubr.f32.mxu1 %v17622_v61  ;;  %v16789_v35 = vand.u32 4294901760, %v15889_v58  ;;  %v17623_v15 = vand.u32 4294901760, %v15754_v54  ;;  %v8521_v36 = vand.u32 4294901760, %v8520_v40 }
 0x7ac   : > { %v8533_v51 = vand.u32 4294901760, %v8532_v1  ;;  %v8539_v23 = vand.u32 4294901760, %v8538_v7  ;;  %v17624_v56 = vand.u32 4294901760, %v15517_v33  ;;  %v8551_v28 = vand.u32 4294901760, %v8550_v4  ;;  %11476 = vmatpush1.bf16.msra.mxu1 %v11475_v34 }
 0x7ad   : > { %v15978_v46 = vsub.f32 %v15754_v54, %v17623_v15  ;;  %v17625_v50 = vand.u32 4294901760, %v15868_v60  ;;  %v17626_v26 = vand.u32 4294901760, %v15873_v59  ;;  %v17627_v18 = vand.u32 4294901760, %v15884_v25  ;;  %11478 = vmatprep.subr.bf16.mxu1 %v11477_v19 }
 0x7ae   : > { %8393 = vmatmul.mubr.f32.gmra.mrb[22].mxu1 %v17624_v56  ;;  %v17628_v47 = vand.u32 4294901760, %v15759_v5  ;;  %v17629_v33 = vand.u32 4294901760, %v15547_v44  ;;  %v11479_v45 = vpack.c.bf16 %v8509_v55, %v8497_v37  ;;  %v16788_v48 = vand.u32 4294901760, %v15917_v52 }
 0x7af   : > { %v8544_v42 = vsub.f32 %v15868_v60, %v17625_v50  ;;  %v8556_v30 = vsub.f32 %v15873_v59, %v17626_v26  ;;  %v8562_v54 = vsub.f32 %v15884_v25, %v17627_v18  ;;  %v16787_v40 = vand.u32 4294901760, %v15926_v63 }
 0x7b0   : > { %v15994_v16 = vsub.f32 %v15759_v5, %v17628_v47  ;;  %8403 = vmatprep.mubr.f32.mxu1 %v17629_v33  ;;  %v11481_v1 = vpack.c.bf16 %v8527_v62, %v8515_v43  ;;  %v8574_v7 = vsub.f32 %v15889_v58, %v16789_v35  ;;  %v16786_v4 = vand.u32 4294901760, %v15948_v17  ;;  %11480 = vmatpush1.bf16.msra.mxu1 %v11479_v45  ;;  %v17661_v35 = vld [vmem:[#allocation25_spill] sm:$0xff] }
 0x7b1   : > { %v16785_v5 = vand.u32 4294901760, %v15970_v0  ;;  %v11483_v15 = vpack.c.bf16 %v8533_v51, %v8521_v36  ;;  %v17630_v44 = vand.u32 4294901760, %v15522_v57  ;;  %v11485_v61 = vpack.c.bf16 %v8551_v28, %v8539_v23 }
 0x7b2   : > { %v8545_v34 = vand.u32 4294901760, %v8544_v42  ;;  %v8557_v37 = vand.u32 4294901760, %v8556_v30  ;;  %v8563_v55 = vand.u32 4294901760, %v8562_v54  ;;  %v8568_v43 = vsub.f32 %v15917_v52, %v16788_v48  ;;  %11482 = vmatprep.subr.bf16.mxu1 %v11481_v1  ;;  %v17660_v48 = vld [vmem:[#allocation6_spill] sm:$0xff] }
 0x7b3   : > { %8409 = vmatmul.mubr.f32.gmra.mrb[24].mxu1 %v17630_v44  ;;  %v8580_v19 = vsub.f32 %v15926_v63, %v16787_v40  ;;  %v16784_v62 = vand.u32 4294901760, %v15978_v46  ;;  %v16783_v57 = vand.u32 4294901760, %v15994_v16  ;;  %v8575_v23 = vand.u32 4294901760, %v8574_v7  ;;  %v17659_v40 = vld [vmem:[#allocation41_spill] sm:$0xff] }
 0x7b4   : > { %8650 = vmatprep.mubr.f32.mxu1 %v15320_v2  ;;  %v8586_v36 = vsub.f32 %v15948_v17, %v16786_v4  ;;  %v8598_v51 = vsub.f32 %v15970_v0, %v16785_v5  ;;  %v16024_v56 = vsub.f32 %v15801_v10, %v15848_v20  ;;  %v16028_v28 = vsub.f32 %v15861_v3, %v15895_v14  ;;  %v17657_v5 = vld [vmem:[#allocation54_spill] sm:$0xff] }
 0x7b5   : > { %v11487_v50 = vpack.c.bf16 %v8557_v37, %v8545_v34  ;;  %11484 = vmatpush1.bf16.msra.mxu1 %v11483_v15  ;;  %v8569_v42 = vand.u32 4294901760, %v8568_v43  ;;  %v8581_v26 = vand.u32 4294901760, %v8580_v19  ;;  %v8592_v30 = vsub.f32 %v15978_v46, %v16784_v62  ;;  %v17656_v62 = vld [vmem:[#allocation112_spill] sm:$0xff] }
 0x7b6   : > { %v8604_v18 = vsub.f32 %v15994_v16, %v16783_v57  ;;  %11486 = vmatprep.subr.bf16.mxu1 %v11485_v61  ;;  %v11489_v54 = vpack.c.bf16 %v8575_v23, %v8563_v55  ;;  %v8587_v10 = vand.u32 4294901760, %v8586_v36  ;;  %v8599_v47 = vand.u32 4294901760, %v8598_v51  ;;  %v17631_v36 = vld [vmem:[#allocation11_spill] sm:$0xff]  ;;  %v17632_v51 = vld [vmem:[#allocation52_spill] sm:$0xff] }
 0x7b7   : > { %v16782_v33 = vand.u32 4294901760, %v16024_v56  ;;  %v11491_v3 = vpack.c.bf16 %v8581_v26, %v8569_v42  ;;  %v8593_v45 = vand.u32 4294901760, %v8592_v30  ;;  %v16781_v7 = vand.u32 4294901760, %v16028_v28  ;;  %v17633_v42 = vld [vmem:[#allocation8_spill] sm:$0xff]  ;;  %v17634_v26 = vld [vmem:[#allocation27_spill] sm:$0xff] }
 0x7b8   : > { %v8605_v1 = vand.u32 4294901760, %v8604_v18  ;;  %v11493_v15 = vpack.c.bf16 %v8599_v47, %v8587_v10  ;;  %v11497_v43 = vpack.c.bf16 %v15599_v12, %v15579_v39  ;;  %v11499_v19 = vpack.c.bf16 %v15633_v21, %v15628_v38  ;;  %v17635_v18 = vld [vmem:[#allocation102_spill] sm:$0xff]  ;;  %v17655_v57 = vld [vmem:[#allocation35_spill] sm:$0xff] }
 0x7b9   : > { %11488 = vmatpush1.bf16.msra.mxu1 %v11487_v50  ;;  %v8610_v44 = vsub.f32 %v16024_v56, %v16782_v33  ;;  %v8616_v61 = vsub.f32 %v16028_v28, %v16781_v7  ;;  %v11501_v23 = vpack.c.bf16 %v15643_v49, %v15638_v53  ;;  %v11503_v50 = vpack.c.bf16 %v17632_v51, %v17631_v36  ;;  %v17653_v7 = vld [vmem:[#allocation114_spill] sm:$0xff] }
 0x7ba   : > { %11490 = vmatprep.subr.bf16.mxu1 %v11489_v54  ;;  %v11495_v34 = vpack.c.bf16 %v8605_v1, %v8593_v45  ;;  %v11505_v30 = vpack.c.bf16 %v17634_v26, %v17633_v42  ;;  %v17636_v54 = vld [vmem:[#allocation104_spill] sm:$0xff]  ;;  %v11507_v10 = vpack.c.bf16 %v15695_v24, %v15690_v9  ;;  %v11509_v47 = vpack.c.bf16 %v15712_v32, %v15707_v29  ;;  %v17638_v45 = vld [vmem:[#allocation74_spill] sm:$0xff] }
 0x7bb   : > { %v8611_v37 = vand.u32 4294901760, %v8610_v44  ;;  %v8617_v55 = vand.u32 4294901760, %v8616_v61  ;;  %v11511_v1 = vpack.c.bf16 %v15734_v31, %v15729_v8  ;;  %v17639_v44 = vld [vmem:[#allocation73_spill] sm:$0xff]  ;;  %v11515_v61 = vpack.c.bf16 %v15814_v13, %v15781_v11  ;;  %v17654_v33 = vld [vmem:[#allocation38_spill] sm:$0xff] }
 0x7bd   : > { %11492 = vmatpush1.bf16.msra.mxu1 %v11491_v3  ;;  %v17637_v3 = vld [vmem:[#allocation106_spill] sm:$0xff] }
 0x7be   : > { %11494 = vmatprep.subr.bf16.mxu1 %v11493_v15  ;;  %v11513_v15 = vpack.c.bf16 %v15776_v6, %v15771_v22 }
 0x7c1   : > { %11496 = vmatpush1.bf16.msra.mxu1 %v11495_v34  ;;  %v17640_v34 = vld [vmem:[#allocation107_spill] sm:$0xff] }
 0x7c2   : > { %8612 = vmatprep.subr.mxu1 %v8611_v37  ;;  %v17641_v37 = vld [vmem:[#allocation59_spill] sm:$0xff]  ;;  %v17658_v4 = vand.u32 4294901760, %v17640_v34 }
 0x7c5   : > { %8618 = vmatpush1.msra.mxu1 %v8617_v55  ;;  %v17642_v55 = vld [vmem:[#allocation50_spill] sm:$0xff] }
 0x7c6   : > { %8652 = vmatmul.mubr.f32.vlgmr.msra.gmra.mrb[18].mxu1 %v15293_v27  ;;  %11498 = vmatprep.subr.bf16.mxu1 %v11497_v43  ;;  %v11517_v43 = vpack.c.bf16 %v17642_v55, %v17641_v37 }
 0x7c7   : > { %8658 = vmatprep.mubr.f32.mxu1 %v15323_v41  ;;  %11500 = vmatpush1.bf16.msra.mxu1 %v11499_v19  ;;  %v11519_v19 = vpack.c.bf16 %v15873_v59, %v15868_v60 }
 0x7c8   : > { %11502 = vmatprep.subr.bf16.mxu1 %v11501_v23  ;;  %v11521_v23 = vpack.c.bf16 %v15889_v58, %v15884_v25 }
 0x7ca   : > { %8660 = vmatmul.mubr.f32.gmra.mrb[20].mxu1 %v17635_v18 }
 0x7cb   : > { %8666 = vmatprep.mubr.f32.mxu1 %v17636_v54  ;;  %11504 = vmatpush1.bf16.msra.mxu1 %v11503_v50  ;;  %v11523_v50 = vpack.c.bf16 %v15926_v63, %v15917_v52 }
 0x7cc   : > { %11506 = vmatprep.subr.bf16.mxu1 %v11505_v30  ;;  %v11525_v30 = vpack.c.bf16 %v15970_v0, %v15948_v17 }
 0x7ce   : > { %8668 = vmatmul.mubr.f32.gmra.mrb[22].mxu1 %v17637_v3  ;;  %v17666_v3 = vld [vmem:[#allocation49_spill] sm:$0xff] }
 0x7cf   : > { %8674 = vmatprep.mubr.f32.mxu1 %v17638_v45  ;;  %11508 = vmatpush1.bf16.msra.mxu1 %v11507_v10  ;;  %v11527_v10 = vpack.c.bf16 %v15994_v16, %v15978_v46  ;;  %v17663_v45 = vld [vmem:[#allocation45_spill] sm:$0xff] }
 0x7d0   : > { %11510 = vmatprep.subr.bf16.mxu1 %v11509_v47  ;;  %v17643_v47 = vld [vmem:[#allocation109_spill] sm:$0xff] }
 0x7d2   : > { %8676 = vmatmul.mubr.f32.gmra.mrb[24].mxu1 %v17639_v44  ;;  %v17662_v44 = vld [vmem:[#allocation31_spill] sm:$0xff] }
 0x7d3   : > { %11512 = vmatpush1.bf16.msra.mxu1 %v11511_v1  ;;  %8816 = vmatprep.mubr.f32.mxu1 %v17640_v34  ;;  %v17644_v1 = vld [vmem:[#allocation51_spill] sm:$0xff]  ;;  %v17668_v34 = vand.u32 4294901760, %v15599_v12  ;;  %v17675_v12 = vand.u32 4294901760, %v17631_v36  ;;  %v17682_v36 = vand.u32 4294901760, %v15695_v24  ;;  %v17689_v24 = vand.u32 4294901760, %v15771_v22 }
 0x7d4   : > { %11514 = vmatprep.subr.bf16.mxu1 %v11513_v15  ;;  %v17645_v15 = vld [vmem:[#allocation110_spill] sm:$0xff]  ;;  %v17695_v22 = vand.u32 4294901760, %v17642_v55  ;;  %v17700_v55 = vand.u32 4294901760, %v15917_v52 }
 0x7d7   : > { %11516 = vmatpush1.bf16.msra.mxu1 %v11515_v61  ;;  %v17646_v61 = vld [vmem:[#allocation23_spill] sm:$0xff] }
 0x7d8   : > { %11518 = vmatprep.subr.bf16.mxu1 %v11517_v43  ;;  %v17647_v43 = vld [vmem:[#allocation29_spill] sm:$0xff] }
 0x7db   : > { %11520 = vmatpush1.bf16.msra.mxu1 %v11519_v19  ;;  %v17648_v19 = vld [vmem:[#allocation108_spill] sm:$0xff] }
 0x7dc   : > { %11522 = vmatprep.subr.bf16.mxu1 %v11521_v23  ;;  %v17649_v23 = vld [vmem:[#allocation19_spill] sm:$0xff] }
 0x7df   : > { %11524 = vmatpush1.bf16.msra.mxu1 %v11523_v50  ;;  %v17650_v50 = vld [vmem:[#allocation28_spill] sm:$0xff] }
 0x7e0   : > { %11526 = vmatprep.subr.bf16.mxu1 %v11525_v30  ;;  %v17651_v30 = vld [vmem:[#allocation30_spill] sm:$0xff] }
 0x7e3   : > { %11528 = vmatpush1.bf16.msra.mxu1 %v11527_v10  ;;  %v17652_v10 = vld [vmem:[#allocation24_spill] sm:$0xff] }
 0x7e4   : > { %8780 = vmatprep.subr.mxu1 %v16024_v56 }
 0x7e7   : > { %8783 = vmatpush1.msra.mxu1 %v16028_v28 }
 0x7e8   : > { %8819 = vmatmul.mubr.f32.vlgmr.msra.gmra.mrb[18].mxu1 %v17643_v47  ;;  %11530 = vmatprep.subr.bf16.mxu1 %v17644_v1 }
 0x7e9   : > { %8826 = vmatprep.mubr.f32.mxu1 %v17645_v15  ;;  %11532 = vmatpush1.bf16.msra.mxu1 %v17646_v61 }
 0x7ea   : > { %11534 = vmatprep.subr.bf16.mxu1 %v17647_v43 }
 0x7ec   : > { %8829 = vmatmul.mubr.f32.gmra.mrb[20].mxu1 %v17648_v19 }
 0x7ed   : > { %8836 = vmatprep.mubr.f32.mxu1 %v17649_v23  ;;  %11536 = vmatpush1.bf16.msra.mxu1 %v17650_v50 }
 0x7ee   : > { %11538 = vmatprep.subr.bf16.mxu1 %v17651_v30 }
 0x7f0   : > { %8839 = vmatmul.mubr.f32.gmra.mrb[22].mxu1 %v17652_v10 }
 0x7f1   : > { %8846 = vmatprep.mubr.f32.mxu1 %v17653_v7  ;;  %11540 = vmatpush1.bf16.msra.mxu1 %v17654_v33  ;;  %v17664_v33 = vld [vmem:[#allocation77_spill] sm:$0xff] }
 0x7f2   : > { %11542 = vmatprep.subr.bf16.mxu1 %v17655_v57  ;;  %v17665_v57 = vld [vmem:[#allocation60_spill] sm:$0xff] }
 0x7f4   : > { %8849 = vmatmul.mubr.f32.gmra.mrb[24].mxu1 %v17656_v62 }
 0x7f5   : > { %11544 = vmatpush1.bf16.msra.mxu1 %v17657_v5  ;;  %8956 = vmatprep.mubr.f32.mxu1 %v17658_v4  ;;  %v17667_v4 = vand.u32 4294901760, %v15579_v39  ;;  %v17674_v39 = vand.u32 4294901760, %v17645_v15 }
 0x7f6   : > { %11546 = vmatprep.subr.bf16.mxu1 %v17659_v40 }
 0x7f7   : > { %v11561_v40 = vpack.c.bf16 %v17668_v34, %v17667_v4  ;;  %v17697_v4 = vand.u32 4294901760, %v15873_v59  ;;  %v17702_v59 = vand.u32 4294901760, %v15948_v17  ;;  %v17707_v17 = vand.u32 4294901760, %v16028_v28  ;;  %v17712_v28 = vld [vmem:[#allocation73_spill] sm:$0xff] }
 0x7f9   : > { %11548 = vmatpush1.bf16.msra.mxu1 %v17660_v48  ;;  %v17669_v48 = vand.u32 4294901760, %v15628_v38 }
 0x7fa   : > { %11550 = vmatprep.subr.bf16.mxu1 %v17661_v35  ;;  %v17670_v35 = vand.u32 4294901760, %v15633_v21  ;;  %v17676_v21 = vand.u32 4294901760, %v17632_v51  ;;  %v17684_v51 = vand.u32 4294901760, %v15712_v32  ;;  %v17691_v32 = vand.u32 4294901760, %v17656_v62 }
 0x7fb   : > { %v17696_v62 = vand.u32 4294901760, %v15868_v60 }
 0x7fc   : > { %v11567_v38 = vpack.c.bf16 %v17676_v21, %v17675_v12  ;;  %v17701_v21 = vand.u32 4294901760, %v15926_v63 }
 0x7fd   : > { %11552 = vmatpush1.bf16.msra.mxu1 %v17662_v44  ;;  %v11563_v44 = vpack.c.bf16 %v17670_v35, %v17669_v48  ;;  %v17679_v48 = vand.u32 4294901760, %v17648_v19  ;;  %v17693_v19 = vand.u32 4294901760, %v15814_v13  ;;  %v11583_v34 = vpack.c.bf16 %v17697_v4, %v17696_v62 }
 0x7fe   : > { %11554 = vmatprep.subr.bf16.mxu1 %v17663_v45  ;;  %v17671_v45 = vand.u32 4294901760, %v15638_v53  ;;  %v17677_v53 = vand.u32 4294901760, %v17633_v42  ;;  %v17698_v13 = vand.u32 4294901760, %v15884_v25 }
 0x801   : > { %11556 = vmatpush1.bf16.msra.mxu1 %v17664_v33  ;;  %v17672_v33 = vand.u32 4294901760, %v15643_v49  ;;  %v17678_v49 = vand.u32 4294901760, %v17634_v26  ;;  %v17685_v26 = vand.u32 4294901760, %v17652_v10 }
 0x802   : > { %11558 = vmatprep.subr.bf16.mxu1 %v17665_v57 }
 0x803   : > { %v11565_v5 = vpack.c.bf16 %v17672_v33, %v17671_v45  ;;  %v11569_v35 = vpack.c.bf16 %v17678_v49, %v17677_v53  ;;  %v17681_v33 = vand.u32 4294901760, %v15690_v9  ;;  %v17686_v45 = vand.u32 4294901760, %v17653_v7 }
 0x804   : > { %v17688_v9 = vand.u32 4294901760, %v15734_v31  ;;  %v17692_v7 = vand.u32 4294901760, %v15781_v11  ;;  %v17694_v31 = vand.u32 4294901760, %v17641_v37  ;;  %v17703_v53 = vand.u32 4294901760, %v15970_v0  ;;  %v17709_v0 = vld [vmem:[#allocation74_spill] sm:$0xff] }
 0x805   : > { %11560 = vmatpush1.bf16.msra.mxu1 %v17666_v3  ;;  %v17673_v3 = vand.u32 4294901760, %v17643_v47 }
 0x806   : > { %8920 = vmatprep.subr.mxu1 %v15848_v20  ;;  %v11589_v49 = vpack.c.bf16 %v17703_v53, %v17702_v59 }
 0x809   : > { %8922 = vmatpush1.msra.mxu1 %v15895_v14 }
 0x80a   : > { %8960 = vmatmul.mubr.f32.vlgmr.msra.gmra.mrb[18].mxu1 %v17673_v3  ;;  %11562 = vmatprep.subr.bf16.mxu1 %v11561_v40  ;;  %v17680_v40 = vand.u32 4294901760, %v17649_v23  ;;  %v11571_v3 = vpack.c.bf16 %v17682_v36, %v17681_v33  ;;  %v17718_v33 = vld [vmem:[#allocation45_spill] sm:$0xff] }
 0x80b   : > { %8968 = vmatprep.mubr.f32.mxu1 %v17674_v39  ;;  %11564 = vmatpush1.bf16.msra.mxu1 %v11563_v44  ;;  %v17687_v44 = vand.u32 4294901760, %v15729_v8  ;;  %v11579_v8 = vpack.c.bf16 %v17693_v19, %v17692_v7  ;;  %v17699_v39 = vand.u32 4294901760, %v15889_v58  ;;  %v17704_v58 = vand.u32 4294901760, %v15978_v46  ;;  %v17708_v46 = vld [vmem:[#allocation106_spill] sm:$0xff]  ;;  %v17719_v36 = vld [vmem:[#allocation77_spill] sm:$0xff] }
 0x80c   : > { %11566 = vmatprep.subr.bf16.mxu1 %v11565_v5  ;;  %v17683_v5 = vand.u32 4294901760, %v15707_v29  ;;  %v17690_v29 = vand.u32 4294901760, %v15776_v6  ;;  %v11581_v6 = vpack.c.bf16 %v17695_v22, %v17694_v31 }
 0x80d   : > { %v11575_v47 = vpack.c.bf16 %v17688_v9, %v17687_v44  ;;  %v11585_v12 = vpack.c.bf16 %v17699_v39, %v17698_v13 }
 0x80e   : > { %8972 = vmatmul.mubr.f32.gmra.mrb[20].mxu1 %v17679_v48  ;;  %v11573_v42 = vpack.c.bf16 %v17684_v51, %v17683_v5  ;;  %v11577_v15 = vpack.c.bf16 %v17690_v29, %v17689_v24 }
 0x80f   : > { %8980 = vmatprep.mubr.f32.mxu1 %v17680_v40  ;;  %11568 = vmatpush1.bf16.msra.mxu1 %v11567_v38  ;;  %v11587_v38 = vpack.c.bf16 %v17701_v21, %v17700_v55  ;;  %v17706_v40 = vand.u32 4294901760, %v16024_v56  ;;  %v17711_v56 = vld [vmem:[#allocation35_spill] sm:$0xff] }
 0x810   : > { %11570 = vmatprep.subr.bf16.mxu1 %v11569_v35  ;;  %v17705_v35 = vand.u32 4294901760, %v15994_v16  ;;  %v17710_v16 = vld [vmem:[#allocation38_spill] sm:$0xff] }
 0x812   : > { %8984 = vmatmul.mubr.f32.gmra.mrb[22].mxu1 %v17685_v26  ;;  %v16168_v23 = vpop.f32.mrb[18].mxu0  ;;  %v11591_v48 = vpack.c.bf16 %v17705_v35, %v17704_v58 }
 0x813   : > { %8992 = vmatprep.mubr.f32.mxu1 %v17686_v45  ;;  %11572 = vmatpush1.bf16.msra.mxu1 %v11571_v3  ;;  %v16174_v10 = vpop.f32.mrb[19].mxu0  ;;  %v17720_v3 = vld [vmem:[#allocation49_spill] sm:$0xff] }
 0x814   : > { %11574 = vmatprep.subr.bf16.mxu1 %v11573_v42 }
 0x816   : > { %8996 = vmatmul.mubr.f32.gmra.mrb[24].mxu1 %v17691_v32  ;;  %v16180_v11 = vpop.f32.mrb[20].mxu0 }
 0x817   : > { %11576 = vmatpush1.bf16.msra.mxu1 %v11575_v47  ;;  %9169 = vmatprep.mubr.f32.mxu1 %v15320_v2  ;;  %v16186_v37 = vpop.f32.mrb[21].mxu0 }
 0x818   : > { %11578 = vmatprep.subr.bf16.mxu1 %v11577_v15 }
 0x81a   : > { %v16192_v60 = vpop.f32.mrb[22].mxu0 }
 0x81b   : > { %11580 = vmatpush1.bf16.msra.mxu1 %v11579_v8  ;;  %v16198_v25 = vpop.f32.mrb[23].mxu0 }
 0x81c   : > { %11582 = vmatprep.subr.bf16.mxu1 %v11581_v6 }
 0x81e   : > { %v16204_v52 = vpop.f32.mrb[24].mxu0 }
 0x81f   : > { %11584 = vmatpush1.bf16.msra.mxu1 %v11583_v34  ;;  %v16206_v63 = vpop.f32.mrb[25].mxu0 }
 0x820   : > { %11586 = vmatprep.subr.bf16.mxu1 %v11585_v12 }
 0x823   : > { %11588 = vmatpush1.bf16.msra.mxu1 %v11587_v38 }
 0x824   : > { %11590 = vmatprep.subr.bf16.mxu1 %v11589_v49 }
 0x827   : > { %11592 = vmatpush1.bf16.msra.mxu1 %v11591_v48 }
 0x828   : > { %9133 = vmatprep.subr.mxu1 %v17706_v40 }
 0x82b   : > { %9137 = vmatpush1.msra.mxu1 %v17707_v17 }
 0x82c   : > { %9171 = vmatmul.mubr.f32.vlgmr.msra.gmra.mrb[18].mxu1 %v15293_v27  ;;  %11594 = vmatprep.subr.bf16.mxu1 %v17644_v1  ;;  %v17713_v1 = vld [vmem:[#allocation54_spill] sm:$0xff] }
 0x82d   : > { %9177 = vmatprep.mubr.f32.mxu1 %v15323_v41  ;;  %11596 = vmatpush1.bf16.msra.mxu1 %v17646_v61  ;;  %v17714_v61 = vld [vmem:[#allocation41_spill] sm:$0xff] }
 0x82e   : > { %11598 = vmatprep.subr.bf16.mxu1 %v17647_v43  ;;  %v17715_v43 = vld [vmem:[#allocation6_spill] sm:$0xff] }
 0x830   : > { %9179 = vmatmul.mubr.f32.gmra.mrb[20].mxu1 %v17635_v18 }
 0x831   : > { %9185 = vmatprep.mubr.f32.mxu1 %v17636_v54  ;;  %11600 = vmatpush1.bf16.msra.mxu1 %v17650_v50  ;;  %v17716_v50 = vld [vmem:[#allocation25_spill] sm:$0xff] }
 0x832   : > { %11602 = vmatprep.subr.bf16.mxu1 %v17651_v30  ;;  %v17717_v30 = vld [vmem:[#allocation31_spill] sm:$0xff] }
 0x834   : > { %9187 = vmatmul.mubr.f32.gmra.mrb[22].mxu1 %v17708_v46 }
 0x835   : > { %9193 = vmatprep.mubr.f32.mxu1 %v17709_v0  ;;  %11604 = vmatpush1.bf16.msra.mxu1 %v17710_v16 }
 0x836   : > { %11606 = vmatprep.subr.bf16.mxu1 %v17711_v56 }
 0x838   : > { %9195 = vmatmul.mubr.f32.gmra.mrb[24].mxu1 %v17712_v28 }
 0x839   : > { %11608 = vmatpush1.bf16.msra.mxu1 %v17713_v1  ;;  %9300 = vmatprep.mubr.f32.mxu1 %v15320_v2  ;;  %v9342_v2 = vlaneseq }
 0x83a   : > { %11610 = vmatprep.subr.bf16.mxu1 %v17714_v61 }
 0x83d   : > { %11612 = vmatpush1.bf16.msra.mxu1 %v17715_v43 }
 0x83e   : > { %11614 = vmatprep.subr.bf16.mxu1 %v17716_v50 }
 0x841   : > { %11616 = vmatpush1.bf16.msra.mxu1 %v17717_v30 }
 0x842   : > { %11618 = vmatprep.subr.bf16.mxu1 %v17718_v33 }
 0x845   : > { %11620 = vmatpush1.bf16.msra.mxu1 %v17719_v36 }
 0x846   : > { %11622 = vmatprep.subr.bf16.mxu1 %v17665_v57  ;;  %v9343_v57 = vshrl.u32 %v9342_v2, 7 }
 0x849   : > { %11624 = vmatpush1.bf16.msra.mxu1 %v17720_v3 }
 0x84a   : > { %9266 = vmatprep.subr.mxu1 %v15848_v20  ;;  %v9344_v20 = vsub.s32 0, %v9343_v57 }
 0x84d   : > { %9268 = vmatpush1.msra.mxu1 %v15895_v14  ;;  %v9348_v14 = vsub.s32 1, %v9343_v57 }
 0x84e   : > { %9302 = vmatmul.mubr.f32.vlgmr.msra.gmra.mrb[18].mxu1 %v15293_v27  ;;  %v9340_v27 = vld [vmem:[%s16278_s5] sm:$0x3] }
 0x84f   : > { %9308 = vmatprep.mubr.f32.mxu1 %v15323_v41  ;;  %v9345_v41 = vrot.slane %v9340_v27, %v9344_v20 }
 0x852   : > { %9310 = vmatmul.mubr.f32.gmra.mrb[20].mxu1 %v17635_v18  ;;  %v9349_v18 = vrot.slane %v9340_v27, %v9348_v14 }
 0x853   : > { %9316 = vmatprep.mubr.f32.mxu1 %v17636_v54 }
 0x856   : > { %9318 = vmatmul.mubr.f32.gmra.mrb[22].mxu1 %v17708_v46 }
 0x857   : > { %9324 = vmatprep.mubr.f32.mxu1 %v17709_v0 }
 0x85a   : > { %9326 = vmatmul.mubr.f32.gmra.mrb[24].mxu1 %v17712_v28 }
 0x921   : > { %v9303_v5 = vpop.f32.mrb[18].mxu1 }
 0x922   : > { %v11639_v51 = vadd.f32 %v9303_v5, %v16168_v23  ;;  %v9305_v54 = vpop.f32.mrb[19].mxu1 }
 0x923   : > { %v11640_v42 = vadd.f32 %v9305_v54, %v16174_v10 }
 0x924   : > { %v9352_v26 = vadd.f32 %v11639_v51, %v9345_v41 }
 0x925   : > { %v9353_v45 = vadd.f32 %v11640_v42, %v9349_v18  ;;  %v9311_v44 = vpop.f32.mrb[20].mxu1 }
 0x926   : > { %v9360_v9 = vmax.f32 %v9352_v26, 0.0  ;;  %v11641_v47 = vadd.f32 %v9311_v44, %v16180_v11  ;;  %v9313_v24 = vpop.f32.mrb[21].mxu1 }
 0x927   : > { %v9361_v29 = vmax.f32 %v9353_v45, 0.0  ;;  %v11642_v15 = vadd.f32 %v9313_v24, %v16186_v37 }
 0x928   : > { %v9368_v32 = vmin.f32 %v9360_v9, 6.0  ;;  %v9354_v7 = vadd.f32 %v11641_v47, %v9345_v41 }
 0x929   : > { %v9369_v19 = vmin.f32 %v9361_v29, 6.0  ;;  %v9355_v8 = vadd.f32 %v11642_v15, %v9349_v18  ;;  %v9319_v23 = vpop.f32.mrb[22].mxu1 }
 0x92a   : > { %9376 = vst [vmem:[%s16255_s30] sm:$0xff] %v9368_v32  ;;  %v9362_v31 = vmax.f32 %v9354_v7, 0.0  ;;  %v11643_v22 = vadd.f32 %v9319_v23, %v16192_v60  ;;  %v9321_v6 = vpop.f32.mrb[23].mxu1 }
 0x92b   : > { %9377 = vst [vmem:[%s16255_s30 + $0x8] sm:$0xff] %v9369_v19  ;;  %v9363_v10 = vmax.f32 %v9355_v8, 0.0  ;;  %v11644_v62 = vadd.f32 %v9321_v6, %v16198_v25 }
 0x92c   : > { %v9370_v4 = vmin.f32 %v9362_v31, 6.0  ;;  %v9356_v34 = vadd.f32 %v11643_v22, %v9345_v41 }
 0x92d   : > { %v9371_v11 = vmin.f32 %v9363_v10, 6.0  ;;  %v9357_v13 = vadd.f32 %v11644_v62, %v9349_v18  ;;  %v9327_v39 = vpop.f32.mrb[24].mxu1 }
 0x92e   : > { %9378 = vst [vmem:[%s16255_s30 + $0x10] sm:$0xff] %v9370_v4  ;;  %v9364_v12 = vmax.f32 %v9356_v34, 0.0  ;;  %v11645_v37 = vadd.f32 %v9327_v39, %v16204_v52  ;;  %v9329_v55 = vpop.f32.mrb[25].mxu1 }
 0x92f   : > { %9379 = vst [vmem:[%s16255_s30 + $0x18] sm:$0xff] %v9371_v11  ;;  %v9365_v21 = vmax.f32 %v9357_v13, 0.0  ;;  %v11646_v38 = vadd.f32 %v9329_v55, %v16206_v63 }
 0x930   : > { %v9372_v60 = vmin.f32 %v9364_v12, 6.0  ;;  %v9358_v59 = vadd.f32 %v11645_v37, %v9345_v41 }
 0x931   : > { %v9373_v53 = vmin.f32 %v9365_v21, 6.0  ;;  %v9359_v49 = vadd.f32 %v11646_v38, %v9349_v18 }
 0x932   : > { %9380 = vst [vmem:[%s16255_s30 + $0x20] sm:$0xff] %v9372_v60  ;;  %v9366_v25 = vmax.f32 %v9358_v59, 0.0 }
 0x933   : > { %9381 = vst [vmem:[%s16255_s30 + $0x28] sm:$0xff] %v9373_v53  ;;  %v9367_v58 = vmax.f32 %v9359_v49, 0.0 }
 0x934   : > { %v9374_v35 = vmin.f32 %v9366_v25, 6.0 }
 0x935   : > { %v9375_v48 = vmin.f32 %v9367_v58, 6.0 }
 0x936   : > { %9382 = vst [vmem:[%s16255_s30 + $0x30] sm:$0xff] %v9374_v35 }
 0x937   : > { %9383 = vst [vmem:[%s16255_s30 + $0x38] sm:$0xff] %v9375_v48 }
 0x938 PF: > { %s17_s21 = sadd.s32 1, %s12019_s21  }
 0x939   : > { %p14_p3 = scmp.ge.s32.totalorder %s17_s21, 4  }
 0x93b   :  { %16 = sbr.rel (!%p14_p3) target bundleno = 1 (0x1), region = 85 }
 0x942   :  { %9405 = vsyncpa [#allocation3], 1 }
 0x943   :  { %9407 = vsyncpa [#allocation3 + $0x1], 1 }

</bundles_post_ra>
